<compile_context>
chip_gen: v5e
topology: v5e:2x2
jax: 0.10.0
libtpu: 0.0.40
codegen_flags: <defaults>
</compile_context>

<pallas_src>
import functools
import math

import jax
import jax.numpy as jnp
from jax.experimental import pallas as pl
from jax.experimental.pallas import tpu as pltpu


LEAKY_SLOPE = 0.2
INV_SQRT2 = 1.0 / math.sqrt(2.0)

# Scoped VMEM budget: stay within v7x's 64 MiB (v5e/v6e have 128 MiB physical).
try:
    _VMEM_CAP = int(pltpu.get_tpu_info().vmem_capacity_bytes)
except Exception:  # pragma: no cover - conservative fallback
    _VMEM_CAP = 128 * 1024 * 1024
VMEM_LIMIT = min(64 * 1024 * 1024, (_VMEM_CAP * 3) // 4)


def _leaky(y):
    return jnp.where(y >= 0.0, y, LEAKY_SLOPE * y)


def _pick_cout_tile(cout):
    # Block last dim must be a multiple of 128 or equal the full dim.
    if cout > 128 and cout % 128 == 0:
        return 128
    return cout


# ---------------------------------------------------------------------------
# Kernel 1: conv3x3 stride-1 pad-1 + bias + LeakyReLU
#   grid = (batch, cout_tiles); block = full (padded) image per batch element.
#   The 3x3 conv is 9 shifted matmuls of the resident VMEM block -> no im2col.
# ---------------------------------------------------------------------------
def _conv3x3_s1_kernel(x_ref, w_ref, b_ref, o_ref, *, H, W):
    cin = x_ref.shape[-1]
    tn = o_ref.shape[-1]
    xb = x_ref[0]                                    # (H+2, W+2, Cin) VMEM-resident
    acc = jnp.zeros((H * W, tn), jnp.float32)
    for di in range(3):
        for dj in range(3):
            xi = xb[di:di + H, dj:dj + W, :].reshape(H * W, cin)
            acc = acc + jnp.dot(xi, w_ref[di * 3 + dj],
                                preferred_element_type=jnp.float32)
    y = _leaky(acc + b_ref[...])
    o_ref[...] = y.reshape(1, H, W, tn).astype(o_ref.dtype)


def conv3x3_s1_leaky(x, w, b):
    """x: (B,H,W,Cin) NHWC; w: (3,3,Cin,Cout); b: (Cout,) -> LeakyReLU(conv)."""
    B, H, W, Cin = x.shape
    Cout = w.shape[-1]
    tn = _pick_cout_tile(Cout)
    nj = Cout // tn

    xp = jnp.pad(x, ((0, 0), (1, 1), (1, 1), (0, 0)))
    w9 = w.reshape(9, Cin, Cout).astype(jnp.float32)
    b2 = b.reshape(1, Cout).astype(jnp.float32)

    flops = 2 * 9 * B * H * W * Cin * Cout
    bytes_accessed = 4 * (xp.size + w9.size + b2.size + B * H * W * Cout)

    return pl.pallas_call(
        functools.partial(_conv3x3_s1_kernel, H=H, W=W),
        out_shape=jax.ShapeDtypeStruct((B, H, W, Cout), jnp.float32),
        grid=(B, nj),
        in_specs=[
            pl.BlockSpec((1, H + 2, W + 2, Cin), lambda bb, j: (bb, 0, 0, 0)),
            pl.BlockSpec((9, Cin, tn), lambda bb, j: (0, 0, j)),
            pl.BlockSpec((1, tn), lambda bb, j: (0, j)),
        ],
        out_specs=pl.BlockSpec((1, H, W, tn), lambda bb, j: (bb, 0, 0, j)),
        compiler_params=pltpu.CompilerParams(
            dimension_semantics=("parallel", "parallel"),
            vmem_limit_bytes=VMEM_LIMIT),
        cost_estimate=pl.CostEstimate(flops=int(flops), transcendentals=0,
                                      bytes_accessed=int(bytes_accessed)),
    )(xp, w9, b2)


# ---------------------------------------------------------------------------
# Kernel 2 (fully fused tail):
#   LeakyReLU(conv3x3 stride-2 pad-1 on y1)  +  conv1x1 stride-2 proj on x,
#   residual add, * 1/sqrt(2).
# Stride-2 is handled by wrapper-side space-to-depth: the 1-padded y1 is split
# into 4 even/odd phase tensors; tap (di,dj) of the stride-2 conv then reads
# phase (di%2, dj%2) at dense offset (di//2, dj//2) -> no strided loads.
# ---------------------------------------------------------------------------
def _fused_s2_kernel(p00_ref, p01_ref, p10_ref, p11_ref, xe_ref,
                     w2_ref, b2_ref, wp_ref, bp_ref, o_ref, *, Hh, Wh):
    cmid = p00_ref.shape[-1]
    cin = xe_ref.shape[-1]
    tn = o_ref.shape[-1]
    phases = (p00_ref[0], p01_ref[0], p10_ref[0], p11_ref[0])  # (Hh+1, Wh+1, Cmid)

    acc = jnp.zeros((Hh * Wh, tn), jnp.float32)
    for di in range(3):
        for dj in range(3):
            ph = phases[(di % 2) * 2 + (dj % 2)]
            dy, dx = di // 2, dj // 2
            xi = ph[dy:dy + Hh, dx:dx + Wh, :].reshape(Hh * Wh, cmid)
            acc = acc + jnp.dot(xi, w2_ref[di * 3 + dj],
                                preferred_element_type=jnp.float32)
    y = _leaky(acc + b2_ref[...])

    ident = jnp.dot(xe_ref[0].reshape(Hh * Wh, cin), wp_ref[...],
                    preferred_element_type=jnp.float32) + bp_ref[...]

    out = (y + ident) * INV_SQRT2
    o_ref[...] = out.reshape(1, Hh, Wh, tn).astype(o_ref.dtype)


def fused_stride2_tail(x, y1, w2, b2, wp, bp):
    """x: (B,H,W,Cin); y1: (B,H,W,Cmid) -> (B,H/2,W/2,Cout)."""
    B, H, W, Cin = x.shape
    Cmid = y1.shape[-1]
    Cout = w2.shape[-1]
    assert H % 2 == 0 and W % 2 == 0, "even spatial dims expected (power-of-two maps)"
    Hh, Wh = H // 2, W // 2
    tn = _pick_cout_tile(Cout)
    nj = Cout // tn

    # Space-to-depth of the 1-padded intermediate (each phase: (B, Hh+1, Wh+1, Cmid)).
    y1p = jnp.pad(y1, ((0, 0), (1, 1), (1, 1), (0, 0)))
    p00 = y1p[:, 0::2, 0::2, :]
    p01 = y1p[:, 0::2, 1::2, :]
    p10 = y1p[:, 1::2, 0::2, :]
    p11 = y1p[:, 1::2, 1::2, :]
    xe = x[:, 0::2, 0::2, :]                         # inputs read by the 1x1 s2 proj

    w29 = w2.reshape(9, Cmid, Cout).astype(jnp.float32)
    wp2 = wp.reshape(Cin, Cout).astype(jnp.float32)
    b2r = b2.reshape(1, Cout).astype(jnp.float32)
    bpr = bp.reshape(1, Cout).astype(jnp.float32)

    flops = 2 * B * Hh * Wh * (9 * Cmid + Cin) * Cout
    bytes_accessed = 4 * (4 * p00.size + xe.size + w29.size + wp2.size +
                          b2r.size + bpr.size + B * Hh * Wh * Cout)

    phase_spec = pl.BlockSpec((1, Hh + 1, Wh + 1, Cmid), lambda bb, j: (bb, 0, 0, 0))
    return pl.pallas_call(
        functools.partial(_fused_s2_kernel, Hh=Hh, Wh=Wh),
        out_shape=jax.ShapeDtypeStruct((B, Hh, Wh, Cout), jnp.float32),
        grid=(B, nj),
        in_specs=[
            phase_spec, phase_spec, phase_spec, phase_spec,
            pl.BlockSpec((1, Hh, Wh, Cin), lambda bb, j: (bb, 0, 0, 0)),
            pl.BlockSpec((9, Cmid, tn), lambda bb, j: (0, 0, j)),
            pl.BlockSpec((1, tn), lambda bb, j: (0, j)),
            pl.BlockSpec((Cin, tn), lambda bb, j: (0, j)),
            pl.BlockSpec((1, tn), lambda bb, j: (0, j)),
        ],
        out_specs=pl.BlockSpec((1, Hh, Wh, tn), lambda bb, j: (bb, 0, 0, j)),
        compiler_params=pltpu.CompilerParams(
            dimension_semantics=("parallel", "parallel"),
            vmem_limit_bytes=VMEM_LIMIT),
        cost_estimate=pl.CostEstimate(flops=int(flops), transcendentals=0,
                                      bytes_accessed=int(bytes_accessed)),
    )(p00, p01, p10, p11, xe, w29, b2r, wp2, bpr)


# ---------------------------------------------------------------------------
# Public forward (NCHW in / NCHW out, like the PyTorch module)
# ---------------------------------------------------------------------------
def strided_residual_conv_block(params, x_nchw):
    x = jnp.transpose(x_nchw, (0, 2, 3, 1)).astype(jnp.float32)     # NHWC
    y1 = conv3x3_s1_leaky(x, params["w1"], params["b1"])
    y = fused_stride2_tail(x, y1, params["w2"], params["b2"],
                           params["wp"], params["bp"])
    return jnp.transpose(y, (0, 3, 1, 2))                           # NCHW


# ---------------------------------------------------------------------------
# Pure-JAX reference (independent path: lax.conv) for numerical validation
# ---------------------------------------------------------------------------
def _conv_ref(x, w, b, stride, padding):
    y = jax.lax.conv_general_dilated(
        x, w, window_strides=(stride, stride),
        padding=((padding, padding), (padding, padding)),
        dimension_numbers=("NHWC", "HWIO", "NHWC"),
        precision=jax.lax.Precision.HIGHEST)
    return y + b


def reference_forward(params, x_nchw):
    x = jnp.transpose(x_nchw, (0, 2, 3, 1)).astype(jnp.float32)
    h = _leaky(_conv_ref(x, params["w1"], params["b1"], 1, 1))
    h = _leaky(_conv_ref(h, params["w2"], params["b2"], 2, 1))
    ident = _conv_ref(x, params["wp"], params["bp"], 2, 0)
    y = (h + ident) * INV_SQRT2
    return jnp.transpose(y, (0, 3, 1, 2))


# ---------------------------------------------------------------------------
# Deterministic parameter initialization (kaiming-style; no checkpoint load)
# ---------------------------------------------------------------------------
def _init_conv(key, ksize, cin, cout):
    fan_in = ksize * ksize * cin
    std = math.sqrt(2.0 / ((1.0 + LEAKY_SLOPE ** 2) * fan_in))
    kw_, kb_ = jax.random.split(key)
    w = jax.random.normal(kw_, (ksize, ksize, cin, cout), jnp.float32) * std
    bound = 1.0 / math.sqrt(fan_in)
    b = jax.random.uniform(kb_, (cout,), jnp.float32, -bound, bound)
    return w, b


def init_params(key, inplanes, planes, kernel_size=3):
    k1, k2, k3 = jax.random.split(key, 3)
    w1, b1 = _init_conv(k1, kernel_size, inplanes, planes)
    w2, b2 = _init_conv(k2, kernel_size, planes, planes)
    wp, bp = _init_conv(k3, 1, inplanes, planes)
    return dict(w1=w1, b1=b1, w2=w2, b2=b2, wp=wp, bp=bp)


if __name__ == "__main__":
    key = jax.random.PRNGKey(0)
    pkey, xkey = jax.random.split(key)

    B, inplanes, planes, H, W = 2, 32, 64, 16, 16
    params = init_params(pkey, inplanes, planes)
    x = jax.random.normal(xkey, (B, inplanes, H, W), jnp.float32)   # NCHW like PyTorch

    fwd = jax.jit(strided_residual_conv_block)
    out = jax.block_until_ready(fwd(params, x))

    assert out.shape == (B, planes, H // 2, W // 2)
    assert bool(jnp.all(jnp.isfinite(out)))

    ref = jax.block_until_ready(reference_forward(params, x))
    max_err = float(jnp.max(jnp.abs(out - ref)))
    assert max_err < 2e-3, f"mismatch vs reference conv: max_err={max_err}"

    print("KERNEL_OK")
</pallas_src>

<mosaic_0001>
module attributes {stable_mosaic.version = 11 : i64} {
  func.func @_conv3x3_s1_kernel(%arg0: i32, %arg1: i32, %arg2: memref<1x18x18x32xf32, #tpu.memory_space<vmem>>, %arg3: memref<9x32x64xf32, #tpu.memory_space<vmem>>, %arg4: memref<1x64xf32, #tpu.memory_space<vmem>>, %arg5: memref<1x16x16x64xf32, #tpu.memory_space<vmem>>) attributes {dimension_semantics = [#tpu.dimension_semantics<parallel>, #tpu.dimension_semantics<parallel>], iteration_bounds = array<i64: 2, 1>, scalar_prefetch = 0 : i64, scratch_operands = 0 : i64, tpu.core_type = #tpu.core_type<tc>, window_params = [{transform_indices = @transform_0, window_bounds = array<i64: 1, 18, 18, 32>}, {transform_indices = @transform_1, window_bounds = array<i64: 9, 32, 64>}, {transform_indices = @transform_2, window_bounds = array<i64: 1, 64>}, {transform_indices = @transform_3, window_bounds = array<i64: 1, 16, 16, 64>}]} {
    %c0 = arith.constant 0 : index
    %c0_0 = arith.constant 0 : index
    %c0_1 = arith.constant 0 : index
    %c0_2 = arith.constant 0 : index
    %0 = vector.load %arg2[%c0, %c0_0, %c0_1, %c0_2] : memref<1x18x18x32xf32, #tpu.memory_space<vmem>>, vector<1x18x18x32xf32>
    %1 = vector.shape_cast %0 : vector<1x18x18x32xf32> to vector<18x18x32xf32>
    %cst = arith.constant 0.000000e+00 : f32
    %2 = vector.broadcast %cst : f32 to vector<256x64xf32>
    %3 = vector.extract_strided_slice %1 {offsets = [0, 0, 0], sizes = [16, 16, 32], strides = [1, 1, 1]} : vector<18x18x32xf32> to vector<16x16x32xf32>
    %4 = vector.shape_cast %3 : vector<16x16x32xf32> to vector<256x32xf32>
    %c0_3 = arith.constant 0 : index
    %c0_4 = arith.constant 0 : index
    %c0_5 = arith.constant 0 : index
    %5 = vector.load %arg3[%c0_3, %c0_4, %c0_5] : memref<9x32x64xf32, #tpu.memory_space<vmem>>, vector<1x32x64xf32>
    %6 = vector.shape_cast %5 : vector<1x32x64xf32> to vector<32x64xf32>
    %cst_6 = arith.constant dense<0.000000e+00> : vector<256x64xf32>
    %7 = tpu.matmul %4, %6, %cst_6 {dimension_numbers = #tpu.dot_dimension_numbers<[1], [0], [0], [1], [0, 0, 1, 1], [], []>} : vector<256x32xf32>, vector<32x64xf32>, vector<256x64xf32> -> vector<256x64xf32>
    %8 = arith.addf %2, %7 : vector<256x64xf32>
    %9 = vector.extract_strided_slice %1 {offsets = [0, 1, 0], sizes = [16, 16, 32], strides = [1, 1, 1]} : vector<18x18x32xf32> to vector<16x16x32xf32>
    %10 = vector.shape_cast %9 : vector<16x16x32xf32> to vector<256x32xf32>
    %c1 = arith.constant 1 : index
    %c0_7 = arith.constant 0 : index
    %c0_8 = arith.constant 0 : index
    %11 = vector.load %arg3[%c1, %c0_7, %c0_8] : memref<9x32x64xf32, #tpu.memory_space<vmem>>, vector<1x32x64xf32>
    %12 = vector.shape_cast %11 : vector<1x32x64xf32> to vector<32x64xf32>
    %cst_9 = arith.constant dense<0.000000e+00> : vector<256x64xf32>
    %13 = tpu.matmul %10, %12, %cst_9 {dimension_numbers = #tpu.dot_dimension_numbers<[1], [0], [0], [1], [0, 0, 1, 1], [], []>} : vector<256x32xf32>, vector<32x64xf32>, vector<256x64xf32> -> vector<256x64xf32>
    %14 = arith.addf %8, %13 : vector<256x64xf32>
    %15 = vector.extract_strided_slice %1 {offsets = [0, 2, 0], sizes = [16, 16, 32], strides = [1, 1, 1]} : vector<18x18x32xf32> to vector<16x16x32xf32>
    %16 = vector.shape_cast %15 : vector<16x16x32xf32> to vector<256x32xf32>
    %c2 = arith.constant 2 : index
    %c0_10 = arith.constant 0 : index
    %c0_11 = arith.constant 0 : index
    %17 = vector.load %arg3[%c2, %c0_10, %c0_11] : memref<9x32x64xf32, #tpu.memory_space<vmem>>, vector<1x32x64xf32>
    %18 = vector.shape_cast %17 : vector<1x32x64xf32> to vector<32x64xf32>
    %cst_12 = arith.constant dense<0.000000e+00> : vector<256x64xf32>
    %19 = tpu.matmul %16, %18, %cst_12 {dimension_numbers = #tpu.dot_dimension_numbers<[1], [0], [0], [1], [0, 0, 1, 1], [], []>} : vector<256x32xf32>, vector<32x64xf32>, vector<256x64xf32> -> vector<256x64xf32>
    %20 = arith.addf %14, %19 : vector<256x64xf32>
    %21 = vector.extract_strided_slice %1 {offsets = [1, 0, 0], sizes = [16, 16, 32], strides = [1, 1, 1]} : vector<18x18x32xf32> to vector<16x16x32xf32>
    %22 = vector.shape_cast %21 : vector<16x16x32xf32> to vector<256x32xf32>
    %c3 = arith.constant 3 : index
    %c0_13 = arith.constant 0 : index
    %c0_14 = arith.constant 0 : index
    %23 = vector.load %arg3[%c3, %c0_13, %c0_14] : memref<9x32x64xf32, #tpu.memory_space<vmem>>, vector<1x32x64xf32>
    %24 = vector.shape_cast %23 : vector<1x32x64xf32> to vector<32x64xf32>
    %cst_15 = arith.constant dense<0.000000e+00> : vector<256x64xf32>
    %25 = tpu.matmul %22, %24, %cst_15 {dimension_numbers = #tpu.dot_dimension_numbers<[1], [0], [0], [1], [0, 0, 1, 1], [], []>} : vector<256x32xf32>, vector<32x64xf32>, vector<256x64xf32> -> vector<256x64xf32>
    %26 = arith.addf %20, %25 : vector<256x64xf32>
    %27 = vector.extract_strided_slice %1 {offsets = [1, 1, 0], sizes = [16, 16, 32], strides = [1, 1, 1]} : vector<18x18x32xf32> to vector<16x16x32xf32>
    %28 = vector.shape_cast %27 : vector<16x16x32xf32> to vector<256x32xf32>
    %c4 = arith.constant 4 : index
    %c0_16 = arith.constant 0 : index
    %c0_17 = arith.constant 0 : index
    %29 = vector.load %arg3[%c4, %c0_16, %c0_17] : memref<9x32x64xf32, #tpu.memory_space<vmem>>, vector<1x32x64xf32>
    %30 = vector.shape_cast %29 : vector<1x32x64xf32> to vector<32x64xf32>
    %cst_18 = arith.constant dense<0.000000e+00> : vector<256x64xf32>
    %31 = tpu.matmul %28, %30, %cst_18 {dimension_numbers = #tpu.dot_dimension_numbers<[1], [0], [0], [1], [0, 0, 1, 1], [], []>} : vector<256x32xf32>, vector<32x64xf32>, vector<256x64xf32> -> vector<256x64xf32>
    %32 = arith.addf %26, %31 : vector<256x64xf32>
    %33 = vector.extract_strided_slice %1 {offsets = [1, 2, 0], sizes = [16, 16, 32], strides = [1, 1, 1]} : vector<18x18x32xf32> to vector<16x16x32xf32>
    %34 = vector.shape_cast %33 : vector<16x16x32xf32> to vector<256x32xf32>
    %c5 = arith.constant 5 : index
    %c0_19 = arith.constant 0 : index
    %c0_20 = arith.constant 0 : index
    %35 = vector.load %arg3[%c5, %c0_19, %c0_20] : memref<9x32x64xf32, #tpu.memory_space<vmem>>, vector<1x32x64xf32>
    %36 = vector.shape_cast %35 : vector<1x32x64xf32> to vector<32x64xf32>
    %cst_21 = arith.constant dense<0.000000e+00> : vector<256x64xf32>
    %37 = tpu.matmul %34, %36, %cst_21 {dimension_numbers = #tpu.dot_dimension_numbers<[1], [0], [0], [1], [0, 0, 1, 1], [], []>} : vector<256x32xf32>, vector<32x64xf32>, vector<256x64xf32> -> vector<256x64xf32>
    %38 = arith.addf %32, %37 : vector<256x64xf32>
    %39 = vector.extract_strided_slice %1 {offsets = [2, 0, 0], sizes = [16, 16, 32], strides = [1, 1, 1]} : vector<18x18x32xf32> to vector<16x16x32xf32>
    %40 = vector.shape_cast %39 : vector<16x16x32xf32> to vector<256x32xf32>
    %c6 = arith.constant 6 : index
    %c0_22 = arith.constant 0 : index
    %c0_23 = arith.constant 0 : index
    %41 = vector.load %arg3[%c6, %c0_22, %c0_23] : memref<9x32x64xf32, #tpu.memory_space<vmem>>, vector<1x32x64xf32>
    %42 = vector.shape_cast %41 : vector<1x32x64xf32> to vector<32x64xf32>
    %cst_24 = arith.constant dense<0.000000e+00> : vector<256x64xf32>
    %43 = tpu.matmul %40, %42, %cst_24 {dimension_numbers = #tpu.dot_dimension_numbers<[1], [0], [0], [1], [0, 0, 1, 1], [], []>} : vector<256x32xf32>, vector<32x64xf32>, vector<256x64xf32> -> vector<256x64xf32>
    %44 = arith.addf %38, %43 : vector<256x64xf32>
    %45 = vector.extract_strided_slice %1 {offsets = [2, 1, 0], sizes = [16, 16, 32], strides = [1, 1, 1]} : vector<18x18x32xf32> to vector<16x16x32xf32>
    %46 = vector.shape_cast %45 : vector<16x16x32xf32> to vector<256x32xf32>
    %c7 = arith.constant 7 : index
    %c0_25 = arith.constant 0 : index
    %c0_26 = arith.constant 0 : index
    %47 = vector.load %arg3[%c7, %c0_25, %c0_26] : memref<9x32x64xf32, #tpu.memory_space<vmem>>, vector<1x32x64xf32>
    %48 = vector.shape_cast %47 : vector<1x32x64xf32> to vector<32x64xf32>
    %cst_27 = arith.constant dense<0.000000e+00> : vector<256x64xf32>
    %49 = tpu.matmul %46, %48, %cst_27 {dimension_numbers = #tpu.dot_dimension_numbers<[1], [0], [0], [1], [0, 0, 1, 1], [], []>} : vector<256x32xf32>, vector<32x64xf32>, vector<256x64xf32> -> vector<256x64xf32>
    %50 = arith.addf %44, %49 : vector<256x64xf32>
    %51 = vector.extract_strided_slice %1 {offsets = [2, 2, 0], sizes = [16, 16, 32], strides = [1, 1, 1]} : vector<18x18x32xf32> to vector<16x16x32xf32>
    %52 = vector.shape_cast %51 : vector<16x16x32xf32> to vector<256x32xf32>
    %c8 = arith.constant 8 : index
    %c0_28 = arith.constant 0 : index
    %c0_29 = arith.constant 0 : index
    %53 = vector.load %arg3[%c8, %c0_28, %c0_29] : memref<9x32x64xf32, #tpu.memory_space<vmem>>, vector<1x32x64xf32>
    %54 = vector.shape_cast %53 : vector<1x32x64xf32> to vector<32x64xf32>
    %cst_30 = arith.constant dense<0.000000e+00> : vector<256x64xf32>
    %55 = tpu.matmul %52, %54, %cst_30 {dimension_numbers = #tpu.dot_dimension_numbers<[1], [0], [0], [1], [0, 0, 1, 1], [], []>} : vector<256x32xf32>, vector<32x64xf32>, vector<256x64xf32> -> vector<256x64xf32>
    %56 = arith.addf %50, %55 : vector<256x64xf32>
    %c0_31 = arith.constant 0 : index
    %c0_32 = arith.constant 0 : index
    %57 = vector.load %arg4[%c0_31, %c0_32] : memref<1x64xf32, #tpu.memory_space<vmem>>, vector<1x64xf32>
    %58 = vector.broadcast %57 : vector<1x64xf32> to vector<256x64xf32>
    %59 = arith.addf %56, %58 : vector<256x64xf32>
    %cst_33 = arith.constant 0.000000e+00 : f32
    %60 = vector.broadcast %cst_33 : f32 to vector<256x64xf32>
    %61 = arith.cmpf oge, %59, %60 : vector<256x64xf32>
    %cst_34 = arith.constant 2.000000e-01 : f32
    %62 = vector.broadcast %cst_34 : f32 to vector<256x64xf32>
    %63 = arith.mulf %62, %59 : vector<256x64xf32>
    %64 = arith.select %61, %59, %63 : vector<256x64xi1>, vector<256x64xf32>
    %65 = vector.shape_cast %64 : vector<256x64xf32> to vector<1x16x16x64xf32>
    %c0_35 = arith.constant 0 : index
    %c0_36 = arith.constant 0 : index
    %c0_37 = arith.constant 0 : index
    %c0_38 = arith.constant 0 : index
    %66 = vector.load %arg5[%c0_35, %c0_36, %c0_37, %c0_38] : memref<1x16x16x64xf32, #tpu.memory_space<vmem>>, vector<1x16x16x64xf32>
    tpu.vector_store %arg5[%c0_35, %c0_36, %c0_37, %c0_38], %65 {strides = array<i32>} : memref<1x16x16x64xf32, #tpu.memory_space<vmem>>, vector<1x16x16x64xf32>,
    return
  }
  func.func @transform_0(%arg0: i32, %arg1: i32) -> (i32, i32, i32, i32) {
    %c0_i32 = arith.constant 0 : i32
    %c0_i32_0 = arith.constant 0 : i32
    %c0_i32_1 = arith.constant 0 : i32
    %c0_i32_2 = arith.constant 0 : i32
    return %arg0, %c0_i32, %c0_i32_0, %c0_i32_1 : i32, i32, i32, i32
  }
  func.func @transform_1(%arg0: i32, %arg1: i32) -> (i32, i32, i32) {
    %c0_i32 = arith.constant 0 : i32
    %c0_i32_0 = arith.constant 0 : i32
    %c0_i32_1 = arith.constant 0 : i32
    return %c0_i32, %c0_i32_0, %arg1 : i32, i32, i32
  }
  func.func @transform_2(%arg0: i32, %arg1: i32) -> (i32, i32) {
    %c0_i32 = arith.constant 0 : i32
    %c0_i32_0 = arith.constant 0 : i32
    return %c0_i32, %arg1 : i32, i32
  }
  func.func @transform_3(%arg0: i32, %arg1: i32) -> (i32, i32, i32, i32) {
    %c0_i32 = arith.constant 0 : i32
    %c0_i32_0 = arith.constant 0 : i32
    %c0_i32_1 = arith.constant 0 : i32
    return %arg0, %c0_i32, %c0_i32_0, %arg1 : i32, i32, i32, i32
  }
}

module attributes {stable_mosaic.version = 11 : i64} {
  func.func @_fused_s2_kernel(%arg0: i32, %arg1: i32, %arg2: memref<1x9x9x64xf32, #tpu.memory_space<vmem>>, %arg3: memref<1x9x9x64xf32, #tpu.memory_space<vmem>>, %arg4: memref<1x9x9x64xf32, #tpu.memory_space<vmem>>, %arg5: memref<1x9x9x64xf32, #tpu.memory_space<vmem>>, %arg6: memref<1x8x8x32xf32, #tpu.memory_space<vmem>>, %arg7: memref<9x64x64xf32, #tpu.memory_space<vmem>>, %arg8: memref<1x64xf32, #tpu.memory_space<vmem>>, %arg9: memref<32x64xf32, #tpu.memory_space<vmem>>, %arg10: memref<1x64xf32, #tpu.memory_space<vmem>>, %arg11: memref<1x8x8x64xf32, #tpu.memory_space<vmem>>) attributes {dimension_semantics = [#tpu.dimension_semantics<parallel>, #tpu.dimension_semantics<parallel>], iteration_bounds = array<i64: 2, 1>, scalar_prefetch = 0 : i64, scratch_operands = 0 : i64, tpu.core_type = #tpu.core_type<tc>, window_params = [{transform_indices = @transform_0, window_bounds = array<i64: 1, 9, 9, 64>}, {transform_indices = @transform_1, window_bounds = array<i64: 1, 9, 9, 64>}, {transform_indices = @transform_2, window_bounds = array<i64: 1, 9, 9, 64>}, {transform_indices = @transform_3, window_bounds = array<i64: 1, 9, 9, 64>}, {transform_indices = @transform_4, window_bounds = array<i64: 1, 8, 8, 32>}, {transform_indices = @transform_5, window_bounds = array<i64: 9, 64, 64>}, {transform_indices = @transform_6, window_bounds = array<i64: 1, 64>}, {transform_indices = @transform_7, window_bounds = array<i64: 32, 64>}, {transform_indices = @transform_8, window_bounds = array<i64: 1, 64>}, {transform_indices = @transform_9, window_bounds = array<i64: 1, 8, 8, 64>}]} {
    %c0 = arith.constant 0 : index
    %c0_0 = arith.constant 0 : index
    %c0_1 = arith.constant 0 : index
    %c0_2 = arith.constant 0 : index
    %0 = vector.load %arg2[%c0, %c0_0, %c0_1, %c0_2] : memref<1x9x9x64xf32, #tpu.memory_space<vmem>>, vector<1x9x9x64xf32>
    %1 = vector.shape_cast %0 : vector<1x9x9x64xf32> to vector<9x9x64xf32>
    %c0_3 = arith.constant 0 : index
    %c0_4 = arith.constant 0 : index
    %c0_5 = arith.constant 0 : index
    %c0_6 = arith.constant 0 : index
    %2 = vector.load %arg3[%c0_3, %c0_4, %c0_5, %c0_6] : memref<1x9x9x64xf32, #tpu.memory_space<vmem>>, vector<1x9x9x64xf32>
    %3 = vector.shape_cast %2 : vector<1x9x9x64xf32> to vector<9x9x64xf32>
    %c0_7 = arith.constant 0 : index
    %c0_8 = arith.constant 0 : index
    %c0_9 = arith.constant 0 : index
    %c0_10 = arith.constant 0 : index
    %4 = vector.load %arg4[%c0_7, %c0_8, %c0_9, %c0_10] : memref<1x9x9x64xf32, #tpu.memory_space<vmem>>, vector<1x9x9x64xf32>
    %5 = vector.shape_cast %4 : vector<1x9x9x64xf32> to vector<9x9x64xf32>
    %c0_11 = arith.constant 0 : index
    %c0_12 = arith.constant 0 : index
    %c0_13 = arith.constant 0 : index
    %c0_14 = arith.constant 0 : index
    %6 = vector.load %arg5[%c0_11, %c0_12, %c0_13, %c0_14] : memref<1x9x9x64xf32, #tpu.memory_space<vmem>>, vector<1x9x9x64xf32>
    %7 = vector.shape_cast %6 : vector<1x9x9x64xf32> to vector<9x9x64xf32>
    %cst = arith.constant 0.000000e+00 : f32
    %8 = vector.broadcast %cst : f32 to vector<64x64xf32>
    %9 = vector.extract_strided_slice %1 {offsets = [0, 0, 0], sizes = [8, 8, 64], strides = [1, 1, 1]} : vector<9x9x64xf32> to vector<8x8x64xf32>
    %10 = vector.shape_cast %9 : vector<8x8x64xf32> to vector<64x64xf32>
    %c0_15 = arith.constant 0 : index
    %c0_16 = arith.constant 0 : index
    %c0_17 = arith.constant 0 : index
    %11 = vector.load %arg7[%c0_15, %c0_16, %c0_17] : memref<9x64x64xf32, #tpu.memory_space<vmem>>, vector<1x64x64xf32>
    %12 = vector.shape_cast %11 : vector<1x64x64xf32> to vector<64x64xf32>
    %cst_18 = arith.constant dense<0.000000e+00> : vector<64x64xf32>
    %13 = tpu.matmul %10, %12, %cst_18 {dimension_numbers = #tpu.dot_dimension_numbers<[1], [0], [0], [1], [0, 0, 1, 1], [], []>} : vector<64x64xf32>, vector<64x64xf32>, vector<64x64xf32> -> vector<64x64xf32>
    %14 = arith.addf %8, %13 : vector<64x64xf32>
    %15 = vector.extract_strided_slice %3 {offsets = [0, 0, 0], sizes = [8, 8, 64], strides = [1, 1, 1]} : vector<9x9x64xf32> to vector<8x8x64xf32>
    %16 = vector.shape_cast %15 : vector<8x8x64xf32> to vector<64x64xf32>
    %c1 = arith.constant 1 : index
    %c0_19 = arith.constant 0 : index
    %c0_20 = arith.constant 0 : index
    %17 = vector.load %arg7[%c1, %c0_19, %c0_20] : memref<9x64x64xf32, #tpu.memory_space<vmem>>, vector<1x64x64xf32>
    %18 = vector.shape_cast %17 : vector<1x64x64xf32> to vector<64x64xf32>
    %cst_21 = arith.constant dense<0.000000e+00> : vector<64x64xf32>
    %19 = tpu.matmul %16, %18, %cst_21 {dimension_numbers = #tpu.dot_dimension_numbers<[1], [0], [0], [1], [0, 0, 1, 1], [], []>} : vector<64x64xf32>, vector<64x64xf32>, vector<64x64xf32> -> vector<64x64xf32>
    %20 = arith.addf %14, %19 : vector<64x64xf32>
    %21 = vector.extract_strided_slice %1 {offsets = [0, 1, 0], sizes = [8, 8, 64], strides = [1, 1, 1]} : vector<9x9x64xf32> to vector<8x8x64xf32>
    %22 = vector.shape_cast %21 : vector<8x8x64xf32> to vector<64x64xf32>
    %c2 = arith.constant 2 : index
    %c0_22 = arith.constant 0 : index
    %c0_23 = arith.constant 0 : index
    %23 = vector.load %arg7[%c2, %c0_22, %c0_23] : memref<9x64x64xf32, #tpu.memory_space<vmem>>, vector<1x64x64xf32>
    %24 = vector.shape_cast %23 : vector<1x64x64xf32> to vector<64x64xf32>
    %cst_24 = arith.constant dense<0.000000e+00> : vector<64x64xf32>
    %25 = tpu.matmul %22, %24, %cst_24 {dimension_numbers = #tpu.dot_dimension_numbers<[1], [0], [0], [1], [0, 0, 1, 1], [], []>} : vector<64x64xf32>, vector<64x64xf32>, vector<64x64xf32> -> vector<64x64xf32>
    %26 = arith.addf %20, %25 : vector<64x64xf32>
    %27 = vector.extract_strided_slice %5 {offsets = [0, 0, 0], sizes = [8, 8, 64], strides = [1, 1, 1]} : vector<9x9x64xf32> to vector<8x8x64xf32>
    %28 = vector.shape_cast %27 : vector<8x8x64xf32> to vector<64x64xf32>
    %c3 = arith.constant 3 : index
    %c0_25 = arith.constant 0 : index
    %c0_26 = arith.constant 0 : index
    %29 = vector.load %arg7[%c3, %c0_25, %c0_26] : memref<9x64x64xf32, #tpu.memory_space<vmem>>, vector<1x64x64xf32>
    %30 = vector.shape_cast %29 : vector<1x64x64xf32> to vector<64x64xf32>
    %cst_27 = arith.constant dense<0.000000e+00> : vector<64x64xf32>
    %31 = tpu.matmul %28, %30, %cst_27 {dimension_numbers = #tpu.dot_dimension_numbers<[1], [0], [0], [1], [0, 0, 1, 1], [], []>} : vector<64x64xf32>, vector<64x64xf32>, vector<64x64xf32> -> vector<64x64xf32>
    %32 = arith.addf %26, %31 : vector<64x64xf32>
    %33 = vector.extract_strided_slice %7 {offsets = [0, 0, 0], sizes = [8, 8, 64], strides = [1, 1, 1]} : vector<9x9x64xf32> to vector<8x8x64xf32>
    %34 = vector.shape_cast %33 : vector<8x8x64xf32> to vector<64x64xf32>
    %c4 = arith.constant 4 : index
    %c0_28 = arith.constant 0 : index
    %c0_29 = arith.constant 0 : index
    %35 = vector.load %arg7[%c4, %c0_28, %c0_29] : memref<9x64x64xf32, #tpu.memory_space<vmem>>, vector<1x64x64xf32>
    %36 = vector.shape_cast %35 : vector<1x64x64xf32> to vector<64x64xf32>
    %cst_30 = arith.constant dense<0.000000e+00> : vector<64x64xf32>
    %37 = tpu.matmul %34, %36, %cst_30 {dimension_numbers = #tpu.dot_dimension_numbers<[1], [0], [0], [1], [0, 0, 1, 1], [], []>} : vector<64x64xf32>, vector<64x64xf32>, vector<64x64xf32> -> vector<64x64xf32>
    %38 = arith.addf %32, %37 : vector<64x64xf32>
    %39 = vector.extract_strided_slice %5 {offsets = [0, 1, 0], sizes = [8, 8, 64], strides = [1, 1, 1]} : vector<9x9x64xf32> to vector<8x8x64xf32>
    %40 = vector.shape_cast %39 : vector<8x8x64xf32> to vector<64x64xf32>
    %c5 = arith.constant 5 : index
    %c0_31 = arith.constant 0 : index
    %c0_32 = arith.constant 0 : index
    %41 = vector.load %arg7[%c5, %c0_31, %c0_32] : memref<9x64x64xf32, #tpu.memory_space<vmem>>, vector<1x64x64xf32>
    %42 = vector.shape_cast %41 : vector<1x64x64xf32> to vector<64x64xf32>
    %cst_33 = arith.constant dense<0.000000e+00> : vector<64x64xf32>
    %43 = tpu.matmul %40, %42, %cst_33 {dimension_numbers = #tpu.dot_dimension_numbers<[1], [0], [0], [1], [0, 0, 1, 1], [], []>} : vector<64x64xf32>, vector<64x64xf32>, vector<64x64xf32> -> vector<64x64xf32>
    %44 = arith.addf %38, %43 : vector<64x64xf32>
    %45 = vector.extract_strided_slice %1 {offsets = [1, 0, 0], sizes = [8, 8, 64], strides = [1, 1, 1]} : vector<9x9x64xf32> to vector<8x8x64xf32>
    %46 = vector.shape_cast %45 : vector<8x8x64xf32> to vector<64x64xf32>
    %c6 = arith.constant 6 : index
    %c0_34 = arith.constant 0 : index
    %c0_35 = arith.constant 0 : index
    %47 = vector.load %arg7[%c6, %c0_34, %c0_35] : memref<9x64x64xf32, #tpu.memory_space<vmem>>, vector<1x64x64xf32>
    %48 = vector.shape_cast %47 : vector<1x64x64xf32> to vector<64x64xf32>
    %cst_36 = arith.constant dense<0.000000e+00> : vector<64x64xf32>
    %49 = tpu.matmul %46, %48, %cst_36 {dimension_numbers = #tpu.dot_dimension_numbers<[1], [0], [0], [1], [0, 0, 1, 1], [], []>} : vector<64x64xf32>, vector<64x64xf32>, vector<64x64xf32> -> vector<64x64xf32>
    %50 = arith.addf %44, %49 : vector<64x64xf32>
    %51 = vector.extract_strided_slice %3 {offsets = [1, 0, 0], sizes = [8, 8, 64], strides = [1, 1, 1]} : vector<9x9x64xf32> to vector<8x8x64xf32>
    %52 = vector.shape_cast %51 : vector<8x8x64xf32> to vector<64x64xf32>
    %c7 = arith.constant 7 : index
    %c0_37 = arith.constant 0 : index
    %c0_38 = arith.constant 0 : index
    %53 = vector.load %arg7[%c7, %c0_37, %c0_38] : memref<9x64x64xf32, #tpu.memory_space<vmem>>, vector<1x64x64xf32>
    %54 = vector.shape_cast %53 : vector<1x64x64xf32> to vector<64x64xf32>
    %cst_39 = arith.constant dense<0.000000e+00> : vector<64x64xf32>
    %55 = tpu.matmul %52, %54, %cst_39 {dimension_numbers = #tpu.dot_dimension_numbers<[1], [0], [0], [1], [0, 0, 1, 1], [], []>} : vector<64x64xf32>, vector<64x64xf32>, vector<64x64xf32> -> vector<64x64xf32>
    %56 = arith.addf %50, %55 : vector<64x64xf32>
    %57 = vector.extract_strided_slice %1 {offsets = [1, 1, 0], sizes = [8, 8, 64], strides = [1, 1, 1]} : vector<9x9x64xf32> to vector<8x8x64xf32>
    %58 = vector.shape_cast %57 : vector<8x8x64xf32> to vector<64x64xf32>
    %c8 = arith.constant 8 : index
    %c0_40 = arith.constant 0 : index
    %c0_41 = arith.constant 0 : index
    %59 = vector.load %arg7[%c8, %c0_40, %c0_41] : memref<9x64x64xf32, #tpu.memory_space<vmem>>, vector<1x64x64xf32>
    %60 = vector.shape_cast %59 : vector<1x64x64xf32> to vector<64x64xf32>
    %cst_42 = arith.constant dense<0.000000e+00> : vector<64x64xf32>
    %61 = tpu.matmul %58, %60, %cst_42 {dimension_numbers = #tpu.dot_dimension_numbers<[1], [0], [0], [1], [0, 0, 1, 1], [], []>} : vector<64x64xf32>, vector<64x64xf32>, vector<64x64xf32> -> vector<64x64xf32>
    %62 = arith.addf %56, %61 : vector<64x64xf32>
    %c0_43 = arith.constant 0 : index
    %c0_44 = arith.constant 0 : index
    %63 = vector.load %arg8[%c0_43, %c0_44] : memref<1x64xf32, #tpu.memory_space<vmem>>, vector<1x64xf32>
    %64 = vector.broadcast %63 : vector<1x64xf32> to vector<64x64xf32>
    %65 = arith.addf %62, %64 : vector<64x64xf32>
    %cst_45 = arith.constant 0.000000e+00 : f32
    %66 = vector.broadcast %cst_45 : f32 to vector<64x64xf32>
    %67 = arith.cmpf oge, %65, %66 : vector<64x64xf32>
    %cst_46 = arith.constant 2.000000e-01 : f32
    %68 = vector.broadcast %cst_46 : f32 to vector<64x64xf32>
    %69 = arith.mulf %68, %65 : vector<64x64xf32>
    %70 = arith.select %67, %65, %69 : vector<64x64xi1>, vector<64x64xf32>
    %c0_47 = arith.constant 0 : index
    %c0_48 = arith.constant 0 : index
    %c0_49 = arith.constant 0 : index
    %c0_50 = arith.constant 0 : index
    %71 = vector.load %arg6[%c0_47, %c0_48, %c0_49, %c0_50] : memref<1x8x8x32xf32, #tpu.memory_space<vmem>>, vector<1x8x8x32xf32>
    %72 = vector.shape_cast %71 : vector<1x8x8x32xf32> to vector<8x8x32xf32>
    %73 = vector.shape_cast %72 : vector<8x8x32xf32> to vector<64x32xf32>
    %c0_51 = arith.constant 0 : index
    %c0_52 = arith.constant 0 : index
    %74 = vector.load %arg9[%c0_51, %c0_52] : memref<32x64xf32, #tpu.memory_space<vmem>>, vector<32x64xf32>
    %cst_53 = arith.constant dense<0.000000e+00> : vector<64x64xf32>
    %75 = tpu.matmul %73, %74, %cst_53 {dimension_numbers = #tpu.dot_dimension_numbers<[1], [0], [0], [1], [0, 0, 1, 1], [], []>} : vector<64x32xf32>, vector<32x64xf32>, vector<64x64xf32> -> vector<64x64xf32>
    %c0_54 = arith.constant 0 : index
    %c0_55 = arith.constant 0 : index
    %76 = vector.load %arg10[%c0_54, %c0_55] : memref<1x64xf32, #tpu.memory_space<vmem>>, vector<1x64xf32>
    %77 = vector.broadcast %76 : vector<1x64xf32> to vector<64x64xf32>
    %78 = arith.addf %75, %77 : vector<64x64xf32>
    %79 = arith.addf %70, %78 : vector<64x64xf32>
    %cst_56 = arith.constant 0.707106769 : f32
    %80 = vector.broadcast %cst_56 : f32 to vector<64x64xf32>
    %81 = arith.mulf %79, %80 : vector<64x64xf32>
    %82 = vector.shape_cast %81 : vector<64x64xf32> to vector<1x8x8x64xf32>
    %c0_57 = arith.constant 0 : index
    %c0_58 = arith.constant 0 : index
    %c0_59 = arith.constant 0 : index
    %c0_60 = arith.constant 0 : index
    %83 = vector.load %arg11[%c0_57, %c0_58, %c0_59, %c0_60] : memref<1x8x8x64xf32, #tpu.memory_space<vmem>>, vector<1x8x8x64xf32>
    tpu.vector_store %arg11[%c0_57, %c0_58, %c0_59, %c0_60], %82 {strides = array<i32>} : memref<1x8x8x64xf32, #tpu.memory_space<vmem>>, vector<1x8x8x64xf32>,
    return
  }
  func.func @transform_0(%arg0: i32, %arg1: i32) -> (i32, i32, i32, i32) {
    %c0_i32 = arith.constant 0 : i32
    %c0_i32_0 = arith.constant 0 : i32
    %c0_i32_1 = arith.constant 0 : i32
    %c0_i32_2 = arith.constant 0 : i32
    return %arg0, %c0_i32, %c0_i32_0, %c0_i32_1 : i32, i32, i32, i32
  }
  func.func @transform_1(%arg0: i32, %arg1: i32) -> (i32, i32, i32, i32) {
    %c0_i32 = arith.constant 0 : i32
    %c0_i32_0 = arith.constant 0 : i32
    %c0_i32_1 = arith.constant 0 : i32
    %c0_i32_2 = arith.constant 0 : i32
    return %arg0, %c0_i32, %c0_i32_0, %c0_i32_1 : i32, i32, i32, i32
  }
  func.func @transform_2(%arg0: i32, %arg1: i32) -> (i32, i32, i32, i32) {
    %c0_i32 = arith.constant 0 : i32
    %c0_i32_0 = arith.constant 0 : i32
    %c0_i32_1 = arith.constant 0 : i32
    %c0_i32_2 = arith.constant 0 : i32
    return %arg0, %c0_i32, %c0_i32_0, %c0_i32_1 : i32, i32, i32, i32
  }
  func.func @transform_3(%arg0: i32, %arg1: i32) -> (i32, i32, i32, i32) {
    %c0_i32 = arith.constant 0 : i32
    %c0_i32_0 = arith.constant 0 : i32
    %c0_i32_1 = arith.constant 0 : i32
    %c0_i32_2 = arith.constant 0 : i32
    return %arg0, %c0_i32, %c0_i32_0, %c0_i32_1 : i32, i32, i32, i32
  }
  func.func @transform_4(%arg0: i32, %arg1: i32) -> (i32, i32, i32, i32) {
    %c0_i32 = arith.constant 0 : i32
    %c0_i32_0 = arith.constant 0 : i32
    %c0_i32_1 = arith.constant 0 : i32
    %c0_i32_2 = arith.constant 0 : i32
    return %arg0, %c0_i32, %c0_i32_0, %c0_i32_1 : i32, i32, i32, i32
  }
  func.func @transform_5(%arg0: i32, %arg1: i32) -> (i32, i32, i32) {
    %c0_i32 = arith.constant 0 : i32
    %c0_i32_0 = arith.constant 0 : i32
    %c0_i32_1 = arith.constant 0 : i32
    return %c0_i32, %c0_i32_0, %arg1 : i32, i32, i32
  }
  func.func @transform_6(%arg0: i32, %arg1: i32) -> (i32, i32) {
    %c0_i32 = arith.constant 0 : i32
    %c0_i32_0 = arith.constant 0 : i32
    return %c0_i32, %arg1 : i32, i32
  }
  func.func @transform_7(%arg0: i32, %arg1: i32) -> (i32, i32) {
    %c0_i32 = arith.constant 0 : i32
    %c0_i32_0 = arith.constant 0 : i32
    return %c0_i32, %arg1 : i32, i32
  }
  func.func @transform_8(%arg0: i32, %arg1: i32) -> (i32, i32) {
    %c0_i32 = arith.constant 0 : i32
    %c0_i32_0 = arith.constant 0 : i32
    return %c0_i32, %arg1 : i32, i32
  }
  func.func @transform_9(%arg0: i32, %arg1: i32) -> (i32, i32, i32, i32) {
    %c0_i32 = arith.constant 0 : i32
    %c0_i32_0 = arith.constant 0 : i32
    %c0_i32_1 = arith.constant 0 : i32
    return %arg0, %c0_i32, %c0_i32_0, %arg1 : i32, i32, i32, i32
  }
}

</mosaic_0001>

<bundles_post_ra>
// kernel: strided_residual_conv_block.3
= control target key start
LH: loop header
LB: loop body
LE: loop exit
PB: predicated region body
PF: predicated region fallthrough
CT: control target
= control target key end

     0   :  { %s2692_s0 = inlined_call_operand.vmem [shape: f32[2,9,9,64], index: 0, kind: input, shape index: {}]   ;;  %s2693_s1 = inlined_call_operand.vmem [shape: f32[2,9,9,64], index: 1, kind: input, shape index: {}]   ;;  %s2694_s2 = inlined_call_operand.vmem [shape: f32[2,9,9,64], index: 2, kind: input, shape index: {}]   ;;  %s2695_s3 = inlined_call_operand.vmem [shape: f32[2,9,9,64], index: 3, kind: input, shape index: {}]   ;;  %s2696_s4 = inlined_call_operand.vmem [shape: f32[2,8,8,32], index: 4, kind: input, shape index: {}]   ;;  %s2697_s5 = inlined_call_operand.vmem [shape: f32[9,64,64], index: 5, kind: input, shape index: {}]   ;;  %s2698_s6 = inlined_call_operand.vmem [shape: f32[1,64], index: 6, kind: input, shape index: {}]   ;;  %s2699_s7 = inlined_call_operand.vmem [shape: f32[32,64], index: 7, kind: input, shape index: {}]   ;;  %s2700_s8 = inlined_call_operand.vmem [shape: f32[1,64], index: 8, kind: input, shape index: {}]   ;;  %s2701_s9 = inlined_call_operand.hbm [shape: f32[2,8,8,64], index: 9, kind: output, shape index: {}]  }
   0x1   :  { %2703 = sst [smem:[#allocation6_spill]] %s2692_s0 }
   0x2   :  { %14 = vsyncpa [#allocation3], 0 }
   0x3   :  { %16 = vsyncpa [#allocation3 + $0x1], 0  ;;  %s1957_s30 = smov 0   ;;  %s1959_s10 = smov 0  }
   0x4   :  { %s1961_s11 = smov 0   ;;  %s1963_s12 = smov 0  }
   0x5   :  { %s1965_s13 = smov 0   ;;  %s1967_s14 = smov 0  }
   0x6 LB: > { %s1582_s15 = sadd.s32 4294967295, %s1903_s14   ;;  %s1583_s16 = sadd.s32 4294967294, %s1903_s14   ;;  %s1903_s14 = sphi %s1967_s14, %s22_s14   ;;  %s1899_s13 = sphi %s1965_s13, %s2713_s13   ;;  %s1895_s12 = sphi %s1963_s12, %s2712_s12   ;;  %s1891_s11 = sphi %s1961_s11, %s2711_s11   ;;  %s1887_s10 = sphi %s1959_s10, %s2710_s10   ;;  %s1883_s30 = sphi %s1957_s30, %s2709_s30  }
   0x7   : > { %s34_s17 = sadd.s32 1, %s1899_s13  ;;  %s277_s18 = sadd.s32 1, %s1891_s11 }
   0x8   : > { %p36_p0 = scmp.ge.s32.totalorder %s34_s17, 2  ;;  %p287_p1 = scmp.ne.s32.totalorder %s1891_s11, %s1887_s10 }
   0x9   : > { %p288_p2 = scmp.eq.s32.totalorder %s1582_s15, 1  ;;  %p293_p3 = scmp.ne.s32.totalorder %s1887_s10, %s1883_s30 }
   0xa   : > { %s2715_s17 = smov (%p36_p0, %s34_s17), 0  ;;  %p294_p5 = scmp.eq.s32.totalorder %s1583_s16, 1 }
   0xb   : > { %2704 = sst [smem:[#allocation5_spill]] %s2715_s17  ;;  %p1997_p4 = por %p288_p2, %p287_p1 }
   0xc   : > { %s272_s20 = ssub.s32 %s1899_s13, %s2715_s17  ;;  %p1590_p6 = scmp.ge.s32.totalorder %s1903_s14, 1 }
   0xd   : > { %p275_p7 = scmp.eq.s32.totalorder %s272_s20, 0  ;;  %p2004_p8 = por %p294_p5, %p293_p3 }
   0xe   : > { %p378_p9 = scmp.lt.s32.totalorder %s1903_s14, 3 }
   0xf   : > { %s2010_s22 = scalar_select %p275_p7, %s1891_s11, %s277_s18  }
  0x10   : > { %p379_p10 = pnand %p1590_p6, %p378_p9 }
  0x11   : > { %p448_p11 = scmp.lt.s32.totalorder (!%p379_p10), %s1895_s12, 1  ;;  %s2707_s0 = sld [smem:[#allocation6_spill]] (!%p379_p10) }
  0x12   : > { %382 = sbr.rel (%p379_p10) target bundleno = 342 (0x156), region = 56  ;;  %s445_s17 = sand.u32 (!%p379_p10), 1, %s1887_s10  }
  0x13   : > { %s1748_s25 = sshll.u32 (!%p379_p10), %s1895_s12, 6 }
  0x17   : > { %v1605_v0 = vld [vmem:[%s2697_s5 + $0x78] sm:$0xff]  ;;  %v1604_v2 = vld [vmem:[%s2697_s5 + $0x70] sm:$0xff]  ;;  %v1603_v4 = vld [vmem:[%s2697_s5 + $0x68] sm:$0xff]  ;;  %s2032_s24 = scalar_select %p448_p11, %s1895_s12, 1  ;;  %vm555_vm0 = vcmask 523264   ;;  %vm694_vm1 = vcmask 1046528  }
  0x18   : > { %v545_v1 = vld [vmem:[%s2697_s5 + $0x38] sm:$0xff]  ;;  %1749 = vmatpush.msra.mxu2 %v1605_v0  ;;  %v544_v3 = vld [vmem:[%s2697_s5 + $0x30] sm:$0xff]  ;;  %v543_v5 = vld [vmem:[%s2697_s5 + $0x28] sm:$0xff]  ;;  %588 = vmatpush.msra.mxu0 %v1605_v0  ;;  %vm1301_vm2 = vcmask 261120  }
  0x19   : > { %1757 = vmatpush.msra.mxu3 %v545_v1  ;;  %653 = vmatpush.msra.mxu1 %v545_v1  ;;  %v1602_v6 = vld [vmem:[%s2697_s5 + $0x60] sm:$0xff]  ;;  %v1601_v8 = vld [vmem:[%s2697_s5 + $0x58] sm:$0xff]  ;;  %s2047_s20 = smul.u32 144, %s2032_s24  ;;  %v1600_v10 = vld [vmem:[%s2697_s5 + $0x50] sm:$0xff]  ;;  %s1747_s28 = sshll.u32 %s2032_s24, 6 }
  0x1a   : > { %1750 = vmatpush.msra.mxu2 %v1604_v2  ;;  %v542_v7 = vld [vmem:[%s2697_s5 + $0x20] sm:$0xff]  ;;  %589 = vmatpush.msra.mxu0 %v1604_v2  ;;  %v541_v9 = vld [vmem:[%s2697_s5 + $0x18] sm:$0xff]  ;;  %v540_v11 = vld [vmem:[%s2697_s5 + $0x10] sm:$0xff]  ;;  %s2461_s16 = scalar_lea.vmem %s2696_s4, %s1747_s28 }
  0x1b   : > { %1758 = vmatpush.msra.mxu3 %v544_v3  ;;  %654 = vmatpush.msra.mxu1 %v544_v3  ;;  %v1599_v12 = vld [vmem:[%s2697_s5 + $0x48] sm:$0xff]  ;;  %s2065_s23 = scalar_lea.vmem %s2707_s0, %s2047_s20  ;;  %s2071_s27 = scalar_lea.vmem %s2693_s1, %s2047_s20  ;;  %v1598_v14 = vld [vmem:[%s2697_s5 + $0x40] sm:$0xff]  ;;  %v1629_v18 = vld [vmem:[%s2697_s5 + $0xb8] sm:$0xff] }
  0x1c   : > { %1751 = vmatpush.msra.mxu2 %v1603_v4  ;;  %590 = vmatpush.msra.mxu0 %v1603_v4  ;;  %v539_v13 = vld [vmem:[%s2697_s5 + $0x8] sm:$0xff]  ;;  %v538_v15 = vld [vmem:[%s2697_s5] sm:$0xff]  ;;  %v1645_v19 = vld [vmem:[%s2697_s5 + $0xf8] sm:$0xff]  ;;  %s2271_s0 = scalar_lea.vmem %s2694_s2, %s2047_s20  ;;  %s2307_s15 = scalar_lea.vmem %s2695_s3, %s2047_s20 }
  0x1d   : > { %1759 = vmatpush.msra.mxu3 %v543_v5  ;;  %655 = vmatpush.msra.mxu1 %v543_v5  ;;  %v2080_v16 = vld [vmem:[%s2071_s27 + $0x40] sm:$0xff]  ;;  %v1628_v20 = vld [vmem:[%s2697_s5 + $0xb0] sm:$0xff]  ;;  %v1627_v24 = vld [vmem:[%s2697_s5 + $0xa8] sm:$0xff]  ;;  %s1591_s20 = sshll.u32 %s445_s17, 6 }
  0x1e   : > { %1752 = vmatpush.msra.mxu2 %v1602_v6  ;;  %591 = vmatpush.msra.mxu0 %v1602_v6  ;;  %v2083_v17 = vld [vmem:[%s2065_s23 + $0x40] sm:$0xff]  ;;  %v1644_v21 = vld [vmem:[%s2697_s5 + $0xf0] sm:$0xff]  ;;  %v1643_v25 = vld [vmem:[%s2697_s5 + $0xe8] sm:$0xff]  ;;  %s2600_s18 = scalar_lea.vmem [#allocation2], %s1591_s20  ;;  %s1845_s20 = scalar_lea.hbm %s2701_s9, 128 }
  0x1f   : > { %1760 = vmatpush.msra.mxu3 %v542_v7  ;;  %656 = vmatpush.msra.mxu1 %v542_v7  ;;  %v505_v22 = vld [vmem:[%s2071_s27] sm:$0xff]  ;;  %v1661_v26 = vld [vmem:[%s2697_s5 + $0x138] sm:$0xff]  ;;  %v2127_v30 = vld [vmem:[%s2071_s27 + $0x50] sm:$0xff]  ;;  %s1405_s29 = sshll.u32 %s2600_s18, 4  ;;  %s1406_s29 = int_to_ptr.vmem [resolvable:$true] %s1405_s29 }
  0x20   : > { %1753 = vmatpush.msra.mxu2 %v1601_v8  ;;  %592 = vmatpush.msra.mxu0 %v1601_v8  ;;  %v2103_v23 = vld [vmem:[%s2065_s23] sm:$0xff]  ;;  %v1677_v27 = vld [vmem:[%s2697_s5 + $0x178] sm:$0xff]  ;;  %v2130_v31 = vld [vmem:[%s2065_s23 + $0x50] sm:$0xff] }
  0x21   : > { %1761 = vmatpush.msra.mxu3 %v541_v9  ;;  %657 = vmatpush.msra.mxu1 %v541_v9  ;;  %v1626_v28 = vld [vmem:[%s2697_s5 + $0xa0] sm:$0xff]  ;;  %v1660_v32 = vld [vmem:[%s2697_s5 + $0x130] sm:$0xff]  ;;  %v1625_v33 = vld [vmem:[%s2697_s5 + $0x98] sm:$0xff]  ;;  %v695_v7 = vrot.slane %v2103_v23, 1 }
  0x22   : > { %1754 = vmatpush.msra.mxu2 %v1600_v10  ;;  %593 = vmatpush.msra.mxu0 %v1600_v10  ;;  %v1642_v29 = vld [vmem:[%s2697_s5 + $0xe0] sm:$0xff]  ;;  %v1641_v34 = vld [vmem:[%s2697_s5 + $0xd8] sm:$0xff]  ;;  %v1676_v35 = vld [vmem:[%s2697_s5 + $0x170] sm:$0xff] }
  0x23   : > { %1762 = vmatpush.msra.mxu3 %v540_v11  ;;  %658 = vmatpush.msra.mxu1 %v540_v11  ;;  %v1659_v36 = vld [vmem:[%s2697_s5 + $0x128] sm:$0xff]  ;;  %v1624_v37 = vld [vmem:[%s2697_s5 + $0x90] sm:$0xff]  ;;  %v1658_v41 = vld [vmem:[%s2697_s5 + $0x120] sm:$0xff] }
  0x24   : > { %1755 = vmatpush.msra.mxu2 %v1599_v12  ;;  %594 = vmatpush.msra.mxu0 %v1599_v12  ;;  %v2155_v38 = vld [vmem:[%s2071_s27 + $0x10] sm:$0xff]  ;;  %v1675_v42 = vld [vmem:[%s2697_s5 + $0x168] sm:$0xff]  ;;  %v1657_v45 = vld [vmem:[%s2697_s5 + $0x118] sm:$0xff] }
  0x25   : > { %1763 = vmatpush.msra.mxu3 %v539_v13  ;;  %659 = vmatpush.msra.mxu1 %v539_v13  ;;  %v2158_v39 = vld [vmem:[%s2065_s23 + $0x10] sm:$0xff]  ;;  %v1623_v43 = vld [vmem:[%s2697_s5 + $0x88] sm:$0xff]  ;;  %v2183_v46 = vld [vmem:[%s2071_s27 + $0x60] sm:$0xff] }
  0x26   : > { %1756 = vmatpush.msra.mxu2 %v1598_v14  ;;  %595 = vmatpush.msra.mxu0 %v1598_v14  ;;  %v1640_v40 = vld [vmem:[%s2697_s5 + $0xd0] sm:$0xff]  ;;  %v1639_v44 = vld [vmem:[%s2697_s5 + $0xc8] sm:$0xff]  ;;  %v2186_v47 = vld [vmem:[%s2065_s23 + $0x60] sm:$0xff] }
  0x27   : > { %1764 = vmatpush.msra.mxu3 %v538_v15  ;;  %1610 = vmatmul.msk.f32.vlgmr.msra.gmra.mxu2 %vm555_vm0, %v2080_v16  ;;  %v1674_v48 = vld [vmem:[%s2697_s5 + $0x160] sm:$0xff]  ;;  %v1656_v51 = vld [vmem:[%s2697_s5 + $0x110] sm:$0xff]  ;;  %v1673_v52 = vld [vmem:[%s2697_s5 + $0x158] sm:$0xff] }
  0x28   : > { %1618 = vmatmul.msk.f32.vlgmr.msra.gmra.mxu3 %vm555_vm0, %v2083_v17  ;;  %752 = vmatpush.msrb.mxu2 %v1629_v18  ;;  %v1622_v49 = vld [vmem:[%s2697_s5 + $0x80] sm:$0xff]  ;;  %v1693_v53 = vld [vmem:[%s2697_s5 + $0x1b8] sm:$0xff]  ;;  %v1655_v56 = vld [vmem:[%s2697_s5 + $0x108] sm:$0xff] }
  0x29   : > { %834 = vmatpush.msrb.mxu3 %v1645_v19  ;;  %660 = vmatpush.msra.mxu1 %v538_v15  ;;  %v1638_v50 = vld [vmem:[%s2697_s5 + $0xc0] sm:$0xff]  ;;  %v1709_v57 = vld [vmem:[%s2697_s5 + $0x1f8] sm:$0xff]  ;;  %v1672_v58 = vld [vmem:[%s2697_s5 + $0x150] sm:$0xff] }
  0x2a   : > { %753 = vmatpush.msrb.mxu2 %v1628_v20  ;;  %1606 = vmatmul.msk.f32.vlgmr.msra.gmra.mxu0 %vm555_vm0, %v505_v22  ;;  %v2211_v54 = vld [vmem:[%s2071_s27 + $0x20] sm:$0xff]  ;;  %v1692_v59 = vld [vmem:[%s2697_s5 + $0x1b0] sm:$0xff]  ;;  %v488_v0 = vld [vmem:[%s2065_s23 + $0x8] sm:$0x1] }
  0x2b   : > { %835 = vmatpush.msrb.mxu3 %v1644_v21  ;;  %1614 = vmatmul.msk.f32.vlgmr.msra.gmra.mxu1 %vm555_vm0, %v2103_v23  ;;  %v2214_v55 = vld [vmem:[%s2065_s23 + $0x20] sm:$0xff]  ;;  %v1708_v61 = vld [vmem:[%s2697_s5 + $0x1f0] sm:$0xff]  ;;  %v1671_v1 = vld [vmem:[%s2697_s5 + $0x148] sm:$0xff]  ;;  %v696_v8 = vrot.slane %v488_v0, 1 }
  0x2c   : > { %754 = vmatpush.msrb.mxu2 %v1627_v24  ;;  %916 = vmatpush.msrb.mxu0 %v1661_v26  ;;  %v1654_v60 = vld [vmem:[%s2697_s5 + $0x100] sm:$0xff]  ;;  %v2239_v62 = vld [vmem:[%s2071_s27 + $0x70] sm:$0xff]  ;;  %v1725_v2 = vld [vmem:[%s2697_s5 + $0x238] sm:$0xff] }
  0x2d   : > { %836 = vmatpush.msrb.mxu3 %v1643_v25  ;;  %1022 = vmatpush.msrb.mxu1 %v1677_v27  ;;  %v2242_v63 = vld [vmem:[%s2065_s23 + $0x70] sm:$0xff]  ;;  %v1691_v3 = vld [vmem:[%s2697_s5 + $0x1a8] sm:$0xff]  ;;  %v1670_v5 = vld [vmem:[%s2697_s5 + $0x140] sm:$0xff]  ;;  %v697_v20 = vsel %vm694_vm1, %v695_v7, %v696_v8  ;;  %v698_v25 = vrot.slane %v2158_v39, 1 }
  0x2e   : > { %755 = vmatpush.msrb.mxu2 %v1626_v28  ;;  %917 = vmatpush.msrb.mxu0 %v1660_v32  ;;  %v1707_v4 = vld [vmem:[%s2697_s5 + $0x1e8] sm:$0xff]  ;;  %v1724_v6 = vld [vmem:[%s2697_s5 + $0x230] sm:$0xff]  ;;  %v1296_v12 = vld [vmem:[%s2699_s7 + $0x18] sm:$0xff] }
  0x2f   : > { %837 = vmatpush.msrb.mxu3 %v1642_v29  ;;  %1611 = vmatmul.msk.f32.gmra.mxu2 %vm555_vm0, %v2127_v30  ;;  %v2275_v9 = vld [vmem:[%s2071_s27 + $0x30] sm:$0xff]  ;;  %v515_v11 = vld [vmem:[%s2271_s0 + $0x8] sm:$0x1]  ;;  %v1690_v13 = vld [vmem:[%s2697_s5 + $0x1a0] sm:$0xff] }
  0x30   : > { %1619 = vmatmul.msk.f32.gmra.mxu3 %vm555_vm0, %v2130_v31  ;;  %756 = vmatpush.msrb.mxu2 %v1625_v33  ;;  %v2278_v10 = vld [vmem:[%s2065_s23 + $0x30] sm:$0xff]  ;;  %v1706_v14 = vld [vmem:[%s2697_s5 + $0x1e0] sm:$0xff]  ;;  %v1723_v15 = vld [vmem:[%s2697_s5 + $0x228] sm:$0xff]  ;;  %v966_v22 = vrot.slane %v515_v11, 1 }
  0x31   : > { %838 = vmatpush.msrb.mxu3 %v1641_v34  ;;  %1023 = vmatpush.msrb.mxu1 %v1676_v35  ;;  %v514_v18 = vld [vmem:[%s2271_s0] sm:$0xff]  ;;  %v1295_v19 = vld [vmem:[%s2699_s7 + $0x10] sm:$0xff]  ;;  %v490_v23 = vld [vmem:[%s2065_s23 + $0x18] sm:$0x1] }
  0x32   : > { %918 = vmatpush.msrb.mxu0 %v1659_v36  ;;  %757 = vmatpush.msrb.mxu2 %v1624_v37  ;;  %v965_v21 = vrot.slane %v514_v18, 1  ;;  %v1689_v24 = vld [vmem:[%s2697_s5 + $0x198] sm:$0xff]  ;;  %v699_v26 = vrot.slane %v490_v23, 1  ;;  %v530_v27 = vld [vmem:[%s2307_s15] sm:$0xff]  ;;  %v516_v34 = vld [vmem:[%s2271_s0 + $0x10] sm:$0xff] }
  0x33   : > { %1607 = vmatmul.msk.f32.gmra.mxu0 %vm555_vm0, %v2155_v38  ;;  %1615 = vmatmul.msk.f32.gmra.mxu1 %vm555_vm0, %v2158_v39  ;;  %v1705_v29 = vld [vmem:[%s2697_s5 + $0x1d8] sm:$0xff]  ;;  %v1722_v32 = vld [vmem:[%s2697_s5 + $0x220] sm:$0xff]  ;;  %v968_v36 = vrot.slane %v516_v34, 1  ;;  %v496_v11 = vld [vmem:[%s2065_s23 + $0x48] sm:$0x1] }
  0x34   : > { %839 = vmatpush.msrb.mxu3 %v1640_v40  ;;  %919 = vmatpush.msrb.mxu0 %v1658_v41  ;;  %v967_v28 = vsel %vm694_vm1, %v965_v21, %v966_v22  ;;  %v517_v33 = vld [vmem:[%s2271_s0 + $0x18] sm:$0x1]  ;;  %v2328_v35 = vsel %vm694_vm1, %v698_v25, %v699_v26  ;;  %v492_v40 = vld [vmem:[%s2065_s23 + $0x28] sm:$0x1]  ;;  %v1688_v41 = vld [vmem:[%s2697_s5 + $0x190] sm:$0xff] }
  0x35   : > { %1024 = vmatpush.msrb.mxu1 %v1675_v42  ;;  %758 = vmatpush.msrb.mxu2 %v1623_v43  ;;  %v969_v37 = vrot.slane %v517_v33, 1  ;;  %v701_v42 = vrot.slane %v2214_v55, 1  ;;  %v702_v43 = vrot.slane %v492_v40, 1  ;;  %v532_v0 = vld [vmem:[%s2307_s15 + $0x20] sm:$0xff]  ;;  %v523_v21 = vld [vmem:[%s2271_s0 + $0x48] sm:$0x1] }
  0x36   : > { %840 = vmatpush.msrb.mxu3 %v1639_v44  ;;  %920 = vmatpush.msrb.mxu0 %v1657_v45  ;;  %v531_v44 = vld [vmem:[%s2307_s15 + $0x10] sm:$0xff]  ;;  %v1293_v22 = vld [vmem:[%s2699_s7] sm:$0xff]  ;;  %v978_v26 = vrot.slane %v523_v21, 1 }
  0x37   : > { %1612 = vmatmul.msk.f32.gmra.mxu2 %vm555_vm0, %v2183_v46  ;;  %1025 = vmatpush.msrb.mxu1 %v1674_v48  ;;  %v970_v45 = vsel %vm694_vm1, %v968_v36, %v969_v37  ;;  %v1704_v48 = vld [vmem:[%s2697_s5 + $0x1d0] sm:$0xff]  ;;  %v522_v23 = vld [vmem:[%s2271_s0 + $0x40] sm:$0xff]  ;;  %v525_v36 = vld [vmem:[%s2271_s0 + $0x58] sm:$0x1] }
  0x38   : > { %1620 = vmatmul.msk.f32.gmra.mxu3 %vm555_vm0, %v2186_v47  ;;  %759 = vmatpush.msrb.mxu2 %v1622_v49  ;;  %v1721_v49 = vld [vmem:[%s2697_s5 + $0x218] sm:$0xff]  ;;  %v977_v25 = vrot.slane %v522_v23, 1  ;;  %v534_v33 = vld [vmem:[%s2307_s15 + $0x40] sm:$0xff]  ;;  %v524_v37 = vld [vmem:[%s2271_s0 + $0x50] sm:$0xff] }
  0x39   : > { %841 = vmatpush.msrb.mxu3 %v1638_v50  ;;  %921 = vmatpush.msrb.mxu0 %v1656_v51  ;;  %v519_v50 = vld [vmem:[%s2271_s0 + $0x28] sm:$0x1] }
  0x3a   : > { %1026 = vmatpush.msrb.mxu1 %v1673_v52  ;;  %1083 = vmatpush.msra.mxu2 %v1693_v53  ;;  %v1294_v51 = vld [vmem:[%s2699_s7 + $0x8] sm:$0xff]  ;;  %v518_v52 = vld [vmem:[%s2271_s0 + $0x20] sm:$0xff]  ;;  %v2354_v53 = vsel %vm694_vm1, %v701_v42, %v702_v43  ;;  %v981_v42 = vrot.slane %v525_v36, 1 }
  0x3b   : > { %1608 = vmatmul.msk.f32.gmra.mxu0 %vm555_vm0, %v2211_v54  ;;  %1616 = vmatmul.msk.f32.gmra.mxu1 %vm555_vm0, %v2214_v55  ;;  %v500_v43 = vld [vmem:[%s2065_s23 + $0x68] sm:$0x1] }
  0x3c   : > { %922 = vmatpush.msrb.mxu0 %v1655_v56  ;;  %1144 = vmatpush.msra.mxu3 %v1709_v57  ;;  %v971_v56 = vrot.slane %v518_v52, 1  ;;  %v972_v57 = vrot.slane %v519_v50, 1  ;;  %v527_v50 = vld [vmem:[%s2271_s0 + $0x68] sm:$0x1] }
  0x3d   : > { %1027 = vmatpush.msrb.mxu1 %v1672_v58  ;;  %1084 = vmatpush.msra.mxu2 %v1692_v59  ;;  %v494_v58 = vld [vmem:[%s2065_s23 + $0x38] sm:$0x1]  ;;  %v1687_v59 = vld [vmem:[%s2697_s5 + $0x188] sm:$0xff] }
  0x3e   : > { %923 = vmatpush.msrb.mxu0 %v1654_v60  ;;  %1145 = vmatpush.msra.mxu3 %v1708_v61  ;;  %v704_v60 = vrot.slane %v2278_v10, 1  ;;  %v705_v61 = vrot.slane %v494_v58, 1  ;;  %v502_v58 = vld [vmem:[%s2065_s23 + $0x78] sm:$0x1] }
  0x3f   : > { %1613 = vmatmul.msk.f32.gmra.mxu2 %vm555_vm0, %v2239_v62  ;;  %1028 = vmatpush.msrb.mxu1 %v1671_v1  ;;  %v973_v1 = vsel %vm694_vm1, %v971_v56, %v972_v57  ;;  %v984_v57 = vrot.slane %v527_v50, 1 }
  0x40   : > { %1621 = vmatmul.msk.f32.gmra.mxu3 %vm555_vm0, %v2242_v63  ;;  %1208 = vmatpush.msra.mxu0 %v1725_v2  ;;  %v1703_v2 = vld [vmem:[%s2697_s5 + $0x1c8] sm:$0xff] }
  0x41   : > { %1085 = vmatpush.msra.mxu2 %v1691_v3  ;;  %1146 = vmatpush.msra.mxu3 %v1707_v4  ;;  %v1720_v3 = vld [vmem:[%s2697_s5 + $0x210] sm:$0xff]  ;;  %v521_v4 = vld [vmem:[%s2271_s0 + $0x38] sm:$0x1] }
  0x42   : > { %1029 = vmatpush.msrb.mxu1 %v1670_v5  ;;  %1209 = vmatpush.msra.mxu0 %v1724_v6  ;;  %v520_v5 = vld [vmem:[%s2271_s0 + $0x30] sm:$0xff]  ;;  %v2377_v6 = vsel %vm694_vm1, %v704_v60, %v705_v61  ;;  %v975_v8 = vrot.slane %v521_v4, 1  ;;  %v717_v60 = vrot.slane %v502_v58, 1  ;;  %v536_v61 = vld [vmem:[%s2307_s15 + $0x60] sm:$0xff] }
  0x43   : > { %1609 = vmatmul.msk.f32.gmra.mxu0 %vm555_vm0, %v2275_v9  ;;  %1617 = vmatmul.msk.f32.gmra.mxu1 %vm555_vm0, %v2278_v10  ;;  %v974_v7 = vrot.slane %v520_v5, 1 }
  0x44   : > { %1338 = vmatpush.msra.mxu1 %v1296_v12  ;;  %1086 = vmatpush.msra.mxu2 %v1690_v13  ;;  %v1686_v12 = vld [vmem:[%s2697_s5 + $0x180] sm:$0xff]  ;;  %v707_v13 = vrot.slane %v2083_v17, 1 }
  0x45   : > { %1147 = vmatpush.msra.mxu3 %v1706_v14  ;;  %1210 = vmatpush.msra.mxu0 %v1723_v15  ;;  %v708_v14 = vrot.slane %v496_v11, 1  ;;  %v533_v15 = vld [vmem:[%s2307_s15 + $0x30] sm:$0xff]  ;;  %v1285_v11 = vld [vmem:[%s2461_s16] sm:$0xff] }
  0x46   : > { %1339 = vmatpush.msra.mxu1 %v1295_v19  ;;  %1087 = vmatpush.msra.mxu2 %v1689_v24  ;;  %v1702_v19 = vld [vmem:[%s2697_s5 + $0x1c0] sm:$0xff] }
  0x47   : > { %1630 = vmatmul.msk.f32.vlgmr.msrb.gmra.mxu2 %vm555_vm0, %v697_v20  ;;  %1148 = vmatpush.msra.mxu3 %v1705_v29  ;;  %v1719_v20 = vld [vmem:[%s2697_s5 + $0x208] sm:$0xff]  ;;  %v2403_v24 = vsel %vm694_vm1, %v707_v13, %v708_v14  ;;  %v710_v29 = vrot.slane %v2130_v31, 1 }
  0x48   : > { %1646 = vmatmul.msk.f32.vlgmr.msrb.gmra.mxu3 %vm555_vm0, %v514_v18  ;;  %1211 = vmatpush.msra.mxu0 %v1722_v32  ;;  %v976_v18 = vsel %vm694_vm1, %v974_v7, %v975_v8  ;;  %v537_v7 = vld [vmem:[%s2307_s15 + $0x70] sm:$0xff] }
  0x49   : > { %1088 = vmatpush.msra.mxu2 %v1688_v41  ;;  %1149 = vmatpush.msra.mxu3 %v1704_v48  ;;  %v980_v41 = vrot.slane %v524_v37, 1  ;;  %v535_v48 = vld [vmem:[%s2307_s15 + $0x50] sm:$0xff] }
  0x4a   : > { %1212 = vmatpush.msra.mxu0 %v1721_v49  ;;  %1340 = vmatpush.msra.mxu1 %v1294_v51  ;;  %v526_v51 = vld [vmem:[%s2271_s0 + $0x60] sm:$0xff] }
  0x4b   : > { %1662 = vmatmul.msk.f32.vlgmr.msrb.gmra.mxu0 %vm555_vm0, %v530_v27  ;;  %1678 = vmatmul.msk.f32.vlgmr.msrb.gmra.mxu1 %vm555_vm0, %v967_v28  ;;  %v498_v27 = vld [vmem:[%s2065_s23 + $0x58] sm:$0x1]  ;;  %v1718_v28 = vld [vmem:[%s2697_s5 + $0x200] sm:$0xff]  ;;  %v982_v49 = vsel %vm694_vm1, %v980_v41, %v981_v42  ;;  %v983_v56 = vrot.slane %v526_v51, 1 }
  0x4c   : > { %1089 = vmatpush.msra.mxu2 %v1687_v59  ;;  %1150 = vmatpush.msra.mxu3 %v1703_v2  ;;  %v711_v32 = vrot.slane %v498_v27, 1  ;;  %v716_v59 = vrot.slane %v2242_v63, 1  ;;  %v528_v2 = vld [vmem:[%s2271_s0 + $0x70] sm:$0xff] }
  0x4d   : > { %1213 = vmatpush.msra.mxu0 %v1720_v3  ;;  %1341 = vmatpush.msra.mxu1 %v1293_v22  ;;  %v986_v4 = vrot.slane %v528_v2, 1 }
  0x4e   : > { %1090 = vmatpush.msra.mxu2 %v1686_v12  ;;  %1151 = vmatpush.msra.mxu3 %v1702_v19  ;;  %v2420_v40 = vsel %vm694_vm1, %v710_v29, %v711_v32  ;;  %v2448_v3 = vsel %vm694_vm1, %v716_v59, %v717_v60  ;;  %v1286_v12 = vld [vmem:[%s2461_s16 + $0x8] sm:$0xff]  ;;  %v1292_v29 = vld [vmem:[%s2461_s16 + $0x38] sm:$0xff] }
  0x4f   : > { %1631 = vmatmul.msk.f32.gmra.mxu2 %vm555_vm0, %v2328_v35  ;;  %1214 = vmatpush.msra.mxu0 %v1719_v20  ;;  %v504_v20 = vld [vmem:[%s2065_s23 + $0x88] sm:$0x1] }
  0x50   : > { %1647 = vmatmul.msk.f32.gmra.mxu3 %vm555_vm0, %v516_v34  ;;  %v979_v34 = vsel %vm694_vm1, %v977_v25, %v978_v26  ;;  %v513_v25 = vld [vmem:[%s2071_s27 + $0x80] sm:$0xff] }
  0x51   : > { %1215 = vmatpush.msra.mxu0 %v1718_v28 }
  0x53   : > { %1663 = vmatmul.msk.f32.gmra.mxu0 %vm555_vm0, %v531_v44  ;;  %1679 = vmatmul.msk.f32.gmra.mxu1 %vm555_vm0, %v970_v45  ;;  %v713_v44 = vrot.slane %v2186_v47, 1  ;;  %v714_v45 = vrot.slane %v500_v43, 1 }
  0x57   : > { %1632 = vmatmul.msk.f32.gmra.mxu2 %vm555_vm0, %v2354_v53 }
  0x58   : > { %1648 = vmatmul.msk.f32.gmra.mxu3 %vm555_vm0, %v518_v52  ;;  %v2434_v52 = vsel %vm694_vm1, %v713_v44, %v714_v45 }
  0x5b   : > { %1664 = vmatmul.msk.f32.gmra.mxu0 %vm555_vm0, %v532_v0  ;;  %1680 = vmatmul.msk.f32.gmra.mxu1 %vm555_vm0, %v973_v1  ;;  %v985_v0 = vsel %vm694_vm1, %v983_v56, %v984_v57  ;;  %v529_v1 = vld [vmem:[%s2271_s0 + $0x78] sm:$0x1]  ;;  %s1404_s0 = scalar_lea.hbm %s2701_s9, %s1748_s25 }
  0x5c   : > { %s1407_s12 = sshll.u32 %s1404_s0, 4  ;;  %s1408_s12 = int_to_ptr.hbm [resolvable:$true] %s1407_s12 }
  0x5d   : > { %s1839_s24 = sshra.s32 %s1408_s12, 4  ;;  %s1840_s24 = int_to_ptr.hbm [resolvable:$true] %s1839_s24 }
  0x5e   : > { %p1846_p1 = scmp.lt.s32.totalorder %s1840_s24, %s2701_s9 }
  0x5f   : > { %1633 = vmatmul.msk.f32.gmra.mxu2 %vm555_vm0, %v2377_v6 }
  0x60   : > { %1649 = vmatmul.msk.f32.gmra.mxu3 %vm555_vm0, %v520_v5  ;;  %v987_v5 = vrot.slane %v529_v1, 1 }
  0x62   : > { %v988_v8 = vsel %vm694_vm1, %v986_v4, %v987_v5 }
  0x63   : > { %1665 = vmatmul.msk.f32.gmra.mxu0 %vm555_vm0, %v533_v15  ;;  %1681 = vmatmul.msk.f32.gmra.mxu1 %vm555_vm0, %v976_v18  ;;  %v1291_v18 = vld [vmem:[%s2461_s16 + $0x30] sm:$0xff] }
  0x67   : > { %1634 = vmatmul.msk.f32.gmra.mxu2 %vm555_vm0, %v2403_v24 }
  0x68   : > { %1650 = vmatmul.msk.f32.gmra.mxu3 %vm555_vm0, %v522_v23 }
  0x6b   : > { %1666 = vmatmul.msk.f32.gmra.mxu0 %vm555_vm0, %v534_v33  ;;  %1682 = vmatmul.msk.f32.gmra.mxu1 %vm555_vm0, %v979_v34 }
  0x6f   : > { %1635 = vmatmul.msk.f32.gmra.mxu2 %vm555_vm0, %v2420_v40 }
  0x70   : > { %1651 = vmatmul.msk.f32.gmra.mxu3 %vm555_vm0, %v524_v37 }
  0x73   : > { %1667 = vmatmul.msk.f32.gmra.mxu0 %vm555_vm0, %v535_v48  ;;  %1683 = vmatmul.msk.f32.gmra.mxu1 %vm555_vm0, %v982_v49 }
  0x77   : > { %1636 = vmatmul.msk.f32.gmra.mxu2 %vm555_vm0, %v2434_v52 }
  0x78   : > { %1652 = vmatmul.msk.f32.gmra.mxu3 %vm555_vm0, %v526_v51 }
  0x7b   : > { %1668 = vmatmul.msk.f32.gmra.mxu0 %vm555_vm0, %v536_v61  ;;  %1684 = vmatmul.msk.f32.gmra.mxu1 %vm555_vm0, %v985_v0 }
  0x7f   : > { %1637 = vmatmul.msk.f32.gmra.mxu2 %vm555_vm0, %v2448_v3 }
  0x80   : > { %1653 = vmatmul.msk.f32.gmra.mxu3 %vm555_vm0, %v528_v2 }
  0x83   : > { %1669 = vmatmul.msk.f32.gmra.mxu0 %vm555_vm0, %v537_v7  ;;  %1685 = vmatmul.msk.f32.gmra.mxu1 %vm555_vm0, %v988_v8 }
  0x87   : > { %1694 = vmatmul.msk.f32.vlgmr.msra.gmra.mxu2 %vm555_vm0, %v2158_v39  ;;  %v1288_v39 = vld [vmem:[%s2461_s16 + $0x18] sm:$0xff] }
  0x88   : > { %1710 = vmatmul.msk.f32.vlgmr.msra.gmra.mxu3 %vm555_vm0, %v2155_v38  ;;  %v1287_v38 = vld [vmem:[%s2461_s16 + $0x10] sm:$0xff] }
  0x8b   : > { %1726 = vmatmul.msk.f32.vlgmr.msra.gmra.mxu0 %vm555_vm0, %v2328_v35  ;;  %1734 = vmatmul.msk.f32.vlgmr.msra.gmra.mxu1 %vm1301_vm2, %v1285_v11 }
  0x8f   : > { %1695 = vmatmul.msk.f32.gmra.mxu2 %vm555_vm0, %v2214_v55 }
  0x90   : > { %1711 = vmatmul.msk.f32.gmra.mxu3 %vm555_vm0, %v2211_v54 }
  0x93   : > { %1727 = vmatmul.msk.f32.gmra.mxu0 %vm555_vm0, %v2354_v53  ;;  %1735 = vmatmul.msk.f32.gmra.mxu1 %vm1301_vm2, %v1286_v12  ;;  %v1290_v53 = vld [vmem:[%s2461_s16 + $0x28] sm:$0xff] }
  0x97   : > { %1696 = vmatmul.msk.f32.gmra.mxu2 %vm555_vm0, %v2278_v10 }
  0x98   : > { %1712 = vmatmul.msk.f32.gmra.mxu3 %vm555_vm0, %v2275_v9  ;;  %v1289_v9 = vld [vmem:[%s2461_s16 + $0x20] sm:$0xff]  ;;  %s1392_s16 = scalar_lea.sflag [#allocation3], %s445_s17 }
  0x9b   : > { %1728 = vmatmul.msk.f32.gmra.mxu0 %vm555_vm0, %v2377_v6  ;;  %1736 = vmatmul.msk.f32.gmra.mxu1 %vm1301_vm2, %v1287_v38 }
  0x9f   : > { %1697 = vmatmul.msk.f32.gmra.mxu2 %vm555_vm0, %v2083_v17 }
  0xa0   : > { %1713 = vmatmul.msk.f32.gmra.mxu3 %vm555_vm0, %v2080_v16 }
  0xa3   : > { %1729 = vmatmul.msk.f32.gmra.mxu0 %vm555_vm0, %v2403_v24  ;;  %1737 = vmatmul.msk.f32.gmra.mxu1 %vm1301_vm2, %v1288_v39  ;;  %v503_v24 = vld [vmem:[%s2065_s23 + $0x80] sm:$0xff]  ;;  %s1841_s23 = scalar_lea.hbm %s1840_s24, 64 }
  0xa4   : > { %p1842_p12 = scmp.ne.s32.totalorder %s1840_s24, %s1841_s23  ;;  %p1847_p2 = scmp.lt.s32.totalorder %s1845_s20, %s1841_s23 }
  0xa6   : > { %p1843_p13 = pnand %p1842_p12, %p1997_p4  ;;  %p1848_p3 = por %p1847_p2, %p1846_p1 }
  0xa7   : > { %1698 = vmatmul.msk.f32.gmra.mxu2 %vm555_vm0, %v2130_v31  ;;  %v597_v54 = vpop.f32.mrf.mxu0 }
  0xa8   : > { %1714 = vmatmul.msk.f32.gmra.mxu3 %vm555_vm0, %v2127_v30  ;;  %v662_v55 = vpop.f32.mrf.mxu1  ;;  %p1844_p0 = pneg %p1843_p13 }
  0xa9   : > { %v2500_v17 = vadd.f32 %v662_v55, %v597_v54 }
  0xaa   : > { %v609_v10 = vpop.f32.mrf.mxu2  ;;  %p1849_p5 = pnand %p1848_p3, %p1844_p0 }
  0xab   : > { %v674_v16 = vpop.f32.mrf.mxu3  ;;  %1730 = vmatmul.msk.f32.gmra.mxu0 %vm555_vm0, %v2420_v40  ;;  %1738 = vmatmul.msk.f32.gmra.mxu1 %vm1301_vm2, %v1289_v9 }
  0xac   : > { %v2502_v35 = vadd.f32 %v674_v16, %v609_v10 }
  0xaf   : > { %1699 = vmatmul.msk.f32.gmra.mxu2 %vm555_vm0, %v2186_v47 }
  0xb0   : > { %1715 = vmatmul.msk.f32.gmra.mxu3 %vm555_vm0, %v2183_v46  ;;  %v600_v30 = vpop.f32.mrf.mxu0  ;;  %v665_v31 = vpop.f32.mrf.mxu1 }
  0xb1   : > { %v2512_v6 = vadd.f32 %v665_v31, %v600_v30 }
  0xb2   : > { %v612_v13 = vpop.f32.mrf.mxu2 }
  0xb3   : > { %v677_v14 = vpop.f32.mrf.mxu3  ;;  %1731 = vmatmul.msk.f32.gmra.mxu0 %vm555_vm0, %v2434_v52  ;;  %1739 = vmatmul.msk.f32.gmra.mxu1 %vm1301_vm2, %v1290_v53 }
  0xb4   : > { %v2514_v15 = vadd.f32 %v677_v14, %v612_v13 }
  0xb7   : > { %1700 = vmatmul.msk.f32.gmra.mxu2 %vm555_vm0, %v2242_v63  ;;  %v1186_v63 = vrot.slane %v503_v24, 1 }
  0xb8   : > { %1716 = vmatmul.msk.f32.gmra.mxu3 %vm555_vm0, %v2239_v62  ;;  %v603_v46 = vpop.f32.mrf.mxu0  ;;  %v668_v47 = vpop.f32.mrf.mxu1  ;;  %v1187_v62 = vrot.slane %v504_v20, 1 }
  0xb9   : > { %v2524_v19 = vadd.f32 %v668_v47, %v603_v46 }
  0xba   : > { %v615_v21 = vpop.f32.mrf.mxu2  ;;  %v1188_v28 = vsel %vm694_vm1, %v1186_v63, %v1187_v62 }
  0xbb   : > { %v680_v22 = vpop.f32.mrf.mxu3  ;;  %1732 = vmatmul.msk.f32.gmra.mxu0 %vm555_vm0, %v2448_v3  ;;  %1740 = vmatmul.msk.f32.gmra.mxu1 %vm1301_vm2, %v1291_v18 }
  0xbc   : > { %v2527_v23 = vadd.f32 %v680_v22, %v615_v21  ;;  %v2586_v22 = vld [vmem:[%s2698_s6] ss:$0 sm:$0xff] }
  0xbf   : > { %1701 = vmatmul.msk.f32.gmra.mxu2 %vm555_vm0, %v503_v24 }
  0xc0   : > { %1717 = vmatmul.msk.f32.gmra.mxu3 %vm555_vm0, %v513_v25  ;;  %v606_v26 = vpop.f32.mrf.mxu0  ;;  %v671_v27 = vpop.f32.mrf.mxu1 }
  0xc1   : > { %v2538_v32 = vadd.f32 %v671_v27, %v606_v26 }
  0xc2   : > { %v618_v33 = vpop.f32.mrf.mxu2 }
  0xc3   : > { %v683_v34 = vpop.f32.mrf.mxu3  ;;  %1733 = vmatmul.msk.f32.gmra.mxu0 %vm555_vm0, %v1188_v28  ;;  %1741 = vmatmul.msk.f32.gmra.mxu1 %vm1301_vm2, %v1292_v29 }
  0xc4   : > { %v2540_v36 = vadd.f32 %v683_v34, %v618_v33 }
  0xc8   : > { %v925_v37 = vpop.f32.mrf.mxu0  ;;  %v1031_v40 = vpop.f32.mrf.mxu1 }
  0xca   : > { %v761_v41 = vpop.f32.mrf.mxu2 }
  0xcb   : > { %v843_v42 = vpop.f32.mrf.mxu3  ;;  %v785_v38 = vadd.f32 %v761_v41, %v2500_v17 }
  0xcd   : > { %v867_v55 = vadd.f32 %v843_v42, %v785_v38 }
  0xcf   : > { %v949_v16 = vadd.f32 %v925_v37, %v867_v55 }
  0xd0   : > { %v928_v43 = vpop.f32.mrf.mxu0  ;;  %v1034_v44 = vpop.f32.mrf.mxu1 }
  0xd1   : > { %v1055_v13 = vadd.f32 %v1031_v40, %v949_v16 }
  0xd2   : > { %v764_v45 = vpop.f32.mrf.mxu2 }
  0xd3   : > { %v846_v48 = vpop.f32.mrf.mxu3  ;;  %v786_v30 = vadd.f32 %v764_v45, %v2512_v6  ;;  %v2591_v6 = vld [vmem:[%s2700_s8] ss:$0 sm:$0xff] }
  0xd5   : > { %v868_v14 = vadd.f32 %v846_v48, %v786_v30 }
  0xd7   : > { %v950_v18 = vadd.f32 %v928_v43, %v868_v14 }
  0xd8   : > { %v931_v49 = vpop.f32.mrf.mxu0  ;;  %v1037_v50 = vpop.f32.mrf.mxu1 }
  0xd9   : > { %v1056_v62 = vadd.f32 %v1034_v44, %v950_v18 }
  0xda   : > { %v767_v51 = vpop.f32.mrf.mxu2 }
  0xdb   : > { %v849_v52 = vpop.f32.mrf.mxu3  ;;  %v787_v20 = vadd.f32 %v767_v51, %v2524_v19 }
  0xdd   : > { %v869_v26 = vadd.f32 %v849_v52, %v787_v20 }
  0xdf   : > { %v951_v37 = vadd.f32 %v931_v49, %v869_v26 }
  0xe0   : > { %v2544_v56 = vpop.f32.mrf.mxu0  ;;  %v2546_v57 = vpop.f32.mrf.mxu1 }
  0xe1   : > { %v1057_v52 = vadd.f32 %v1037_v50, %v951_v37 }
  0xe2   : > { %v770_v58 = vpop.f32.mrf.mxu2 }
  0xe3   : > { %v852_v59 = vpop.f32.mrf.mxu3  ;;  %v788_v40 = vadd.f32 %v770_v58, %v2538_v32 }
  0xe5   : > { %v870_v38 = vadd.f32 %v852_v59, %v788_v40 }
  0xe8   : > { %v2548_v60 = vpop.f32.mrf.mxu0  ;;  %v2550_v61 = vpop.f32.mrf.mxu1 }
  0xea   : > { %v2552_v0 = vpop.f32.mrf.mxu2 }
  0xeb   : > { %v2554_v1 = vpop.f32.mrf.mxu3  ;;  %v789_v50 = vadd.f32 %v2552_v0, %v2502_v35 }
  0xed   : > { %v871_v20 = vadd.f32 %v2554_v1, %v789_v50 }
  0xf0   : > { %v2556_v2 = vpop.f32.mrf.mxu0  ;;  %v2558_v3 = vpop.f32.mrf.mxu1 }
  0xf2   : > { %v2560_v4 = vpop.f32.mrf.mxu2 }
  0xf3   : > { %v2562_v5 = vpop.f32.mrf.mxu3 }
  0xf8   : > { %v2564_v7 = vpop.f32.mrf.mxu0  ;;  %v2566_v8 = vpop.f32.mrf.mxu1 }
  0xfa   : > { %v2568_v11 = vpop.f32.mrf.mxu2 }
  0xfb   : > { %v2570_v12 = vpop.f32.mrf.mxu3 }
 0x100   : > { %v2573_v39 = vpop.f32.mrf.mxu0  ;;  %v2575_v54 = vpop.f32.mrf.mxu1 }
 0x102   : > { %v2577_v9 = vpop.f32.mrf.mxu2 }
 0x103   : > { %v2579_v10 = vpop.f32.mrf.mxu3 }
 0x108   : > { %v1217_v31 = vpop.f32.mrf.mxu0  ;;  %v1343_v53 = vpop.f32.mrf.mxu1 }
 0x109   : > { %v1344_v28 = vadd.f32 %v2591_v6, %v1343_v53 }
 0x10a   : > { %v1092_v46 = vpop.f32.mrf.mxu2 }
 0x10b   : > { %v1153_v47 = vpop.f32.mrf.mxu3  ;;  %v1116_v17 = vadd.f32 %v1092_v46, %v1055_v13 }
 0x10d   : > { %v1177_v21 = vadd.f32 %v1153_v47, %v1116_v17 }
 0x10f   : > { %v1241_v24 = vadd.f32 %v1217_v31, %v1177_v21  ;;  %v952_v31 = vadd.f32 %v2544_v56, %v870_v38 }
 0x110   : > { %v1220_v63 = vpop.f32.mrf.mxu0  ;;  %v1346_v25 = vpop.f32.mrf.mxu1 }
 0x111   : > { %v1253_v27 = vadd.f32 %v2586_v22, %v1241_v24  ;;  %v1347_v49 = vadd.f32 %v2591_v6, %v1346_v25  ;;  %v1058_v18 = vadd.f32 %v2546_v57, %v952_v31  ;;  %v953_v25 = vadd.f32 %v2548_v60, %v871_v20 }
 0x112   : > { %v1095_v19 = vpop.f32.mrf.mxu2 }
 0x113   : > { %v1156_v29 = vpop.f32.mrf.mxu3  ;;  %v1269_v33 = vmul.f32 0.2, %v1253_v27  ;;  %v1117_v34 = vadd.f32 %v1095_v19, %v1056_v62  ;;  %vm1261_vm3 = vcmp.ge.f32.partialorder %v1253_v27, 0.0  ;;  %v790_v62 = vadd.f32 %v2560_v4, %v2514_v15 }
 0x115   : > { %v1277_v41 = vsel %vm1261_vm3, %v1253_v27, %v1269_v33  ;;  %v1178_v42 = vadd.f32 %v1156_v29, %v1117_v34  ;;  %v1059_v29 = vadd.f32 %v2550_v61, %v953_v25  ;;  %v872_v33 = vadd.f32 %v2562_v5, %v790_v62 }
 0x116   : > { %v1367_v43 = vadd.f32 %v1344_v28, %v1277_v41  ;;  %v791_v61 = vadd.f32 %v2568_v11, %v2527_v23 }
 0x117   : > { %v1242_v44 = vadd.f32 %v1220_v63, %v1178_v42  ;;  %v954_v42 = vadd.f32 %v2556_v2, %v872_v33 }
 0x118   : > { %v1375_v45 = vmul.f32 0.70710677, %v1367_v43  ;;  %v1223_v48 = vpop.f32.mrf.mxu0  ;;  %v1349_v51 = vpop.f32.mrf.mxu1  ;;  %v873_v38 = vadd.f32 %v2570_v12, %v791_v61 }
 0x119   : > { %v1254_v55 = vadd.f32 %v2586_v22, %v1242_v44  ;;  %v1350_v56 = vadd.f32 %v2591_v6, %v1349_v51 }
 0x11a   : > { %1383 = vst.msk [vmem:[%s2600_s18] sm:$0xff] %vm555_vm0, %v1375_v45  ;;  %v1098_v16 = vpop.f32.mrf.mxu2 }
 0x11b   : > { %v1159_v32 = vpop.f32.mrf.mxu3  ;;  %v1270_v58 = vmul.f32 0.2, %v1254_v55  ;;  %v1118_v30 = vadd.f32 %v1098_v16, %v1057_v52  ;;  %vm1262_vm4 = vcmp.ge.f32.partialorder %v1254_v55, 0.0  ;;  %v1060_v52 = vadd.f32 %v2558_v3, %v954_v42 }
 0x11c   : > { %v792_v3 = vadd.f32 %v2577_v9, %v2540_v36 }
 0x11d   : > { %v1278_v59 = vsel %vm1262_vm4, %v1254_v55, %v1270_v58  ;;  %v1179_v53 = vadd.f32 %v1159_v32, %v1118_v30  ;;  %v955_v58 = vadd.f32 %v2564_v7, %v873_v38 }
 0x11e   : > { %v1368_v13 = vadd.f32 %v1347_v49, %v1278_v59 }
 0x11f   : > { %v1243_v14 = vadd.f32 %v1223_v48, %v1179_v53  ;;  %v1061_v53 = vadd.f32 %v2566_v8, %v955_v58 }
 0x120   : > { %v1376_v46 = vmul.f32 0.70710677, %v1368_v13  ;;  %v1226_v47 = vpop.f32.mrf.mxu0  ;;  %v1352_v17 = vpop.f32.mrf.mxu1  ;;  %v874_v13 = vadd.f32 %v2579_v10, %v792_v3 }
 0x121   : > { %v1255_v21 = vadd.f32 %v2586_v22, %v1243_v14  ;;  %v1353_v60 = vadd.f32 %v2591_v6, %v1352_v17 }
 0x122   : > { %1384 = vst.msk [vmem:[%s2600_s18 + $0x8] sm:$0xff] %vm555_vm0, %v1376_v46  ;;  %v1101_v24 = vpop.f32.mrf.mxu2 }
 0x123   : > { %v1162_v63 = vpop.f32.mrf.mxu3  ;;  %v1271_v35 = vmul.f32 0.2, %v1255_v21  ;;  %v1119_v0 = vadd.f32 %v1101_v24, %v1058_v18  ;;  %vm1263_vm5 = vcmp.ge.f32.partialorder %v1255_v21, 0.0  ;;  %v956_v18 = vadd.f32 %v2573_v39, %v874_v13 }
 0x125   : > { %v1279_v57 = vsel %vm1263_vm5, %v1255_v21, %v1271_v35  ;;  %v1180_v26 = vadd.f32 %v1162_v63, %v1119_v0  ;;  %v1062_v63 = vadd.f32 %v2575_v54, %v956_v18 }
 0x126   : > { %v1369_v1 = vadd.f32 %v1350_v56, %v1279_v57 }
 0x127   : > { %v1244_v27 = vadd.f32 %v1226_v47, %v1180_v26 }
 0x128   : > { %v1377_v19 = vmul.f32 0.70710677, %v1369_v1  ;;  %v1229_v28 = vpop.f32.mrf.mxu0  ;;  %v1355_v37 = vpop.f32.mrf.mxu1 }
 0x129   : > { %v1256_v34 = vadd.f32 %v2586_v22, %v1244_v27  ;;  %v1356_v2 = vadd.f32 %v2591_v6, %v1355_v37 }
 0x12a   : > { %1385 = vst.msk [vmem:[%s2600_s18 + $0x10] sm:$0xff] %vm555_vm0, %v1377_v19  ;;  %v1104_v40 = vpop.f32.mrf.mxu2 }
 0x12b   : > { %v1165_v15 = vpop.f32.mrf.mxu3  ;;  %v1272_v4 = vmul.f32 0.2, %v1256_v34  ;;  %v1120_v41 = vadd.f32 %v1104_v40, %v1059_v29  ;;  %vm1264_vm6 = vcmp.ge.f32.partialorder %v1256_v34, 0.0 }
 0x12d   : > { %v1280_v43 = vsel %vm1264_vm6, %v1256_v34, %v1272_v4  ;;  %v1181_v5 = vadd.f32 %v1165_v15, %v1120_v41 }
 0x12e   : > { %v1370_v44 = vadd.f32 %v1353_v60, %v1280_v43 }
 0x12f   : > { %v1245_v45 = vadd.f32 %v1229_v28, %v1181_v5 }
 0x130   : > { %v1378_v48 = vmul.f32 0.70710677, %v1370_v44  ;;  %v1232_v51 = vpop.f32.mrf.mxu0  ;;  %v1358_v32 = vpop.f32.mrf.mxu1 }
 0x131   : > { %v1257_v55 = vadd.f32 %v2586_v22, %v1245_v45  ;;  %v1359_v7 = vadd.f32 %v2591_v6, %v1358_v32 }
 0x132   : > { %1386 = vst.msk [vmem:[%s2600_s18 + $0x18] sm:$0xff] %vm555_vm0, %v1378_v48  ;;  %v1107_v16 = vpop.f32.mrf.mxu2 }
 0x133   : > { %v1168_v49 = vpop.f32.mrf.mxu3  ;;  %v1273_v23 = vmul.f32 0.2, %v1257_v55  ;;  %v1121_v11 = vadd.f32 %v1107_v16, %v1060_v52  ;;  %vm1265_vm7 = vcmp.ge.f32.partialorder %v1257_v55, 0.0 }
 0x135   : > { %v1281_v30 = vsel %vm1265_vm7, %v1257_v55, %v1273_v23  ;;  %v1182_v12 = vadd.f32 %v1168_v49, %v1121_v11 }
 0x136   : > { %v1371_v31 = vadd.f32 %v1356_v2, %v1281_v30 }
 0x137   : > { %v1246_v50 = vadd.f32 %v1232_v51, %v1182_v12 }
 0x138   : > { %v1379_v59 = vmul.f32 0.70710677, %v1371_v31  ;;  %v1235_v46 = vpop.f32.mrf.mxu0  ;;  %v1361_v8 = vpop.f32.mrf.mxu1 }
 0x139   : > { %v1258_v14 = vadd.f32 %v2586_v22, %v1246_v50  ;;  %v1362_v25 = vadd.f32 %v2591_v6, %v1361_v8 }
 0x13a   : > { %1387 = vst.msk [vmem:[%s2600_s18 + $0x20] sm:$0xff] %vm555_vm0, %v1379_v59  ;;  %v1110_v47 = vpop.f32.mrf.mxu2 }
 0x13b   : > { %v1171_v17 = vpop.f32.mrf.mxu3  ;;  %v1274_v36 = vmul.f32 0.2, %v1258_v14  ;;  %v1122_v9 = vadd.f32 %v1110_v47, %v1061_v53  ;;  %vm1266_vm8 = vcmp.ge.f32.partialorder %v1258_v14, 0.0 }
 0x13d   : > { %v1282_v20 = vsel %vm1266_vm8, %v1258_v14, %v1274_v36  ;;  %v1183_v21 = vadd.f32 %v1171_v17, %v1122_v9 }
 0x13e   : > { %v1372_v24 = vadd.f32 %v1359_v7, %v1282_v20 }
 0x13f   : > { %v1247_v10 = vadd.f32 %v1235_v46, %v1183_v21 }
 0x140   : > { %v1380_v56 = vmul.f32 0.70710677, %v1372_v24  ;;  %v1238_v26 = vpop.f32.mrf.mxu0  ;;  %v1364_v54 = vpop.f32.mrf.mxu1 }
 0x141   : > { %v1259_v35 = vadd.f32 %v2586_v22, %v1247_v10  ;;  %v1365_v34 = vadd.f32 %v2591_v6, %v1364_v54 }
 0x142   : > { %1388 = vst.msk [vmem:[%s2600_s18 + $0x28] sm:$0xff] %vm555_vm0, %v1380_v56  ;;  %v1113_v0 = vpop.f32.mrf.mxu2 }
 0x143   : > { %v1174_v62 = vpop.f32.mrf.mxu3  ;;  %v1275_v57 = vmul.f32 0.2, %v1259_v35  ;;  %v1123_v39 = vadd.f32 %v1113_v0, %v1062_v63  ;;  %vm1267_vm9 = vcmp.ge.f32.partialorder %v1259_v35, 0.0 }
 0x145   : > { %v1283_v1 = vsel %vm1267_vm9, %v1259_v35, %v1275_v57  ;;  %v1184_v27 = vadd.f32 %v1174_v62, %v1123_v39 }
 0x146   : > { %v1373_v19 = vadd.f32 %v1362_v25, %v1283_v1 }
 0x147   : > { %v1248_v28 = vadd.f32 %v1238_v26, %v1184_v27 }
 0x148   : > { %v1381_v29 = vmul.f32 0.70710677, %v1373_v19 }
 0x149   : > { %v1260_v33 = vadd.f32 %v2586_v22, %v1248_v28 }
 0x14a   : > { %1389 = vst.msk [vmem:[%s2600_s18 + $0x30] sm:$0xff] %vm555_vm0, %v1381_v29 }
 0x14b   : > { %v1276_v37 = vmul.f32 0.2, %v1260_v33  ;;  %vm1268_vm10 = vcmp.ge.f32.partialorder %v1260_v33, 0.0 }
 0x14d   : > { %v1284_v40 = vsel %vm1268_vm10, %v1260_v33, %v1276_v37 }
 0x14e   : > { %v1374_v60 = vadd.f32 %v1365_v34, %v1284_v40 }
 0x150   : > { %v1382_v15 = vmul.f32 0.70710677, %v1374_v60 }
 0x152   : > { %1390 = vst.msk [vmem:[%s2600_s18 + $0x38] sm:$0xff] %vm555_vm0, %v1382_v15 }
 0x153   : > { %1852 = shalt.err (!%p1849_p5)
}
 0x154   : > { %s1905_s17 = smov 128   ;;  %s1906_s18 = smov 8  }
 0x155   : > { %1766 = dma.vmem_to_hbm [thread:$0]  (%p1997_p4), %s1406_s29, 1024, %s1408_s12, %s1392_s16, %s1905_s17, %s1905_s17, %s1906_s18  }
 0x156 PF: > { %p1772_p6 = scmp.ge.s32.totalorder %s1903_s14, 2  ;;  %s1422_s28 = sand.u32 1, %s1883_s30  }
 0x157   : > { %s1423_s0 = scalar_lea.sflag [#allocation3], %s1422_s28 }
 0x158   : > { %p1769_p7 = pnand %p1772_p6, %p2004_p8 }
 0x15a   : > { %p1770_p9 = pneg %p1769_p7 }
 0x15c   : > { %1878 = dma.done.wait (%p1770_p9), %s1423_s0, 1024  }
 0x15d   : > { %1880 = vsyncadd (%p1770_p9), %s1423_s0, 4294966272  ;;  %s22_s14 = sadd.s32 1, %s1903_s14   ;;  %s2708_s19 = sld [smem:[#allocation5_spill]] }
 0x15e   : > { %p19_p10 = scmp.ge.s32.totalorder %s22_s14, 4   ;;  %s2709_s30 = smov %s1887_s10 }
 0x15f   : > { %s2710_s10 = smov %s1891_s11  ;;  %s2711_s11 = smov %s2010_s22 }
 0x160   : > { %s2712_s12 = smov %s1899_s13  ;;  %21 = sbr.rel (!%p19_p10) target bundleno = 6 (0x6), region = 123 }
 0x163   : > { %s2713_s13 = smov %s2708_s19 }
 0x165   :  { %1429 = vsyncpa [#allocation3], 1 }
 0x166   :  { %1431 = vsyncpa [#allocation3 + $0x1], 1 }

// kernel: strided_residual_conv_block.2
= control target key start
LH: loop header
LB: loop body
LE: loop exit
PB: predicated region body
PF: predicated region fallthrough
CT: control target
= control target key end

     0   :  { %s2723_s12 = smov 0   ;;  %s2725_s13 = smov 0   ;;  %s4181_s0 = inlined_call_operand.vmem [shape: f32[2,18,18,32], index: 0, kind: input, shape index: {}]   ;;  %s4182_s1 = inlined_call_operand.vmem [shape: f32[9,32,64], index: 1, kind: input, shape index: {}]   ;;  %s4183_s2 = inlined_call_operand.vmem [shape: f32[1,64], index: 2, kind: input, shape index: {}]   ;;  %s4184_s3 = inlined_call_operand.vmem [shape: f32[2,16,16,64], index: 3, kind: output, shape index: {}]  }
   0x1   :  { %s2727_s14 = smov 0  }
   0x2 LB: > { %s25_s15 = sadd.s32 1, %s2697_s13  ;;  %p2290_p0 = scmp.ge.s32.totalorder %s2701_s14, 1  ;;  %s2701_s14 = sphi %s2727_s14, %s13_s14   ;;  %s2697_s13 = sphi %s2725_s13, %s4399_s13   ;;  %s2693_s12 = sphi %s2723_s12, %s4398_s12  }
   0x3   : > { %p27_p1 = scmp.ge.s32.totalorder %s25_s15, 2  ;;  %p168_p2 = scmp.lt.s32.totalorder %s2701_s14, 3 }
   0x5   : > { %s4401_s15 = smov (%p27_p1, %s25_s15), 0  ;;  %p169_p3 = pnand %p2290_p0, %p168_p2 }
   0x7   : > { %172 = sbr.rel (%p169_p3) target bundleno = 736 (0x2e0), region = 32 }
   0xc   : > { %v2297_v0 = vld [vmem:[%s4182_s1 + $0x38] sm:$0xff]  ;;  %v2296_v1 = vld [vmem:[%s4182_s1 + $0x30] sm:$0xff]  ;;  %p202_p4 = scmp.lt.s32.totalorder %s2693_s12, 1  ;;  %v2295_v2 = vld [vmem:[%s4182_s1 + $0x28] sm:$0xff]  ;;  %vm328_vm0 = vcmask 1046528   ;;  %vm414_vm1 = vcmask 261120  }
   0xd   : > { %2617 = vmatpush.msra.mxu1 %v2297_v0  ;;  %2618 = vmatpush.msra.mxu2 %v2297_v0  ;;  %v2294_v3 = vld [vmem:[%s4182_s1 + $0x20] sm:$0xff]  ;;  %v2365_v4 = vld [vmem:[%s4182_s1 + $0x58] sm:$0xff]  ;;  %v2364_v8 = vld [vmem:[%s4182_s1 + $0x50] sm:$0xff]  ;;  %vm769_vm2 = vcmask 1045504   ;;  %vm2146_vm4 = vcmask 523264  }
   0xe   : > { %2619 = vmatpush.msra.mxu3 %v2297_v0  ;;  %s4403_s12 = smov (!%p202_p4, %s2693_s12), 1  ;;  %491 = vmatpush.msra.mxu0 %v2297_v0  ;;  %v2401_v5 = vld [vmem:[%s4182_s1 + $0x78] sm:$0xff]  ;;  %v2400_v18 = vld [vmem:[%s4182_s1 + $0x70] sm:$0xff]  ;;  %v2363_v48 = vld [vmem:[%s4182_s1 + $0x48] sm:$0xff] }
   0xf   : > { %2620 = vmatpush.msra.mxu1 %v2296_v1  ;;  %2621 = vmatpush.msra.mxu2 %v2296_v1  ;;  %s2629_s24 = smul.u32 432, %s4403_s12  ;;  %v279_v6 = vld [vmem:[%s4182_s1 + $0x18] sm:$0xff]  ;;  %v278_v28 = vld [vmem:[%s4182_s1 + $0x10] sm:$0xff]  ;;  %v2399_v50 = vld [vmem:[%s4182_s1 + $0x68] sm:$0xff]  ;;  %s2616_s27 = sshll.u32 %s4403_s12, 8 }
  0x10   : > { %2622 = vmatpush.msra.mxu3 %v2296_v1  ;;  %492 = vmatpush.msra.mxu0 %v2296_v1  ;;  %v2437_v7 = vld [vmem:[%s4182_s1 + $0x98] sm:$0xff]  ;;  %v2436_v35 = vld [vmem:[%s4182_s1 + $0x90] sm:$0xff]  ;;  %v277_v51 = vld [vmem:[%s4182_s1 + $0x8] sm:$0xff]  ;;  %s3931_s30 = scalar_lea.vmem %s4184_s3, %s2616_s27 }
  0x11   : > { %2623 = vmatpush.msra.mxu1 %v2295_v2  ;;  %2624 = vmatpush.msra.mxu2 %v2295_v2  ;;  %s2765_s4 = scalar_lea.vmem %s4181_s0, %s2629_s24  ;;  %v2435_v61 = vld [vmem:[%s4182_s1 + $0x88] sm:$0xff] }
  0x12   : > { %2625 = vmatpush.msra.mxu3 %v2295_v2  ;;  %493 = vmatpush.msra.mxu0 %v2295_v2  ;;  %v2777_v9 = vld [vmem:[%s2765_s4 + $0x60] sm:$0xff]  ;;  %v2780_v10 = vld [vmem:[%s2765_s4 + $0x68] sm:$0xff]  ;;  %v2804_v22 = vld [vmem:[%s2765_s4 + $0x70] sm:$0x3] }
  0x13   : > { %2626 = vmatpush.msra.mxu1 %v2294_v3  ;;  %2627 = vmatpush.msra.mxu2 %v2294_v3  ;;  %v2783_v11 = vld [vmem:[%s2765_s4 + $0xc0] sm:$0xff]  ;;  %v349_v12 = vrot.slane %v2777_v9, 1  ;;  %v350_v13 = vrot.slane %v2780_v10, 1  ;;  %v2788_v14 = vld [vmem:[%s2765_s4 + $0xc8] sm:$0xff]  ;;  %v2813_v25 = vld [vmem:[%s2765_s4 + $0xd0] sm:$0x3] }
  0x14   : > { %v369_v15 = vrot.slane %v2783_v11, 1  ;;  %2628 = vmatpush.msra.mxu3 %v2294_v3  ;;  %v2792_v16 = vld [vmem:[%s2765_s4 + $0x120] sm:$0xff]  ;;  %v2795_v17 = vld [vmem:[%s2765_s4 + $0x128] sm:$0xff]  ;;  %v370_v19 = vrot.slane %v2788_v14, 1  ;;  %494 = vmatpush.msra.mxu0 %v2294_v3  ;;  %v2832_v32 = vld [vmem:[%s2765_s4 + $0x130] sm:$0x3] }
  0x15   : > { %931 = vmatpush.msrb.mxu2 %v2365_v4  ;;  %4260 = vst [vmem:[#allocation2_spill] sm:$0xff] %v2792_v16  ;;  %v389_v20 = vrot.slane %v2792_v16, 1  ;;  %v390_v21 = vrot.slane %v2795_v17, 1  ;;  %668 = vmatpush.msrb.mxu1 %v279_v6  ;;  %v2807_v23 = vld [vmem:[%s2765_s4] sm:$0xff]  ;;  %v2810_v24 = vsel %vm328_vm0, %v349_v12, %v350_v13  ;;  %v2816_v26 = vld [vmem:[%s2765_s4 + $0x8] sm:$0xff]  ;;  %v352_v33 = vrot.slane %v2804_v22, 1 }
  0x16   : > { %4261 = vst [vmem:[#allocation3_spill] sm:$0xff] %v2795_v17  ;;  %1087 = vmatpush.msrb.mxu3 %v2401_v5  ;;  %v329_v27 = vrot.slane %v2807_v23, 1  ;;  %2306 = vmatmul.msk.f32.vlgmr.msra.gmra.mxu1 %vm414_vm1, %v2810_v24  ;;  %v2825_v29 = vsel %vm328_vm0, %v369_v15, %v370_v19  ;;  %v330_v31 = vrot.slane %v2816_v26, 1  ;;  %v2840_v34 = vld [vmem:[%s2765_s4 + $0x10] sm:$0x3]  ;;  %v372_v36 = vrot.slane %v2813_v25, 1 }
  0x17   : > { %932 = vmatpush.msrb.mxu2 %v2364_v8  ;;  %4262 = vst [vmem:[#allocation4_spill] sm:$0xff] %v2825_v29  ;;  %v2828_v30 = vsel %vm328_vm0, %v389_v20, %v390_v21  ;;  %1247 = vmatpush.msrb.mxu0 %v2437_v7  ;;  %v392_v38 = vrot.slane %v2832_v32, 1  ;;  %v332_v39 = vrot.slane %v2840_v34, 1  ;;  %v2851_v40 = vsel %vm328_vm0, %v350_v13, %v352_v33  ;;  %v2854_v41 = vld [vmem:[%s2765_s4 + $0x78] sm:$0xff]  ;;  %v2857_v42 = vld [vmem:[%s2765_s4 + $0x80] sm:$0xff] }
  0x18   : > { %4263 = vst [vmem:[#allocation5_spill] sm:$0xff] %v2828_v30  ;;  %2314 = vmatmul.msk.f32.vlgmr.msra.gmra.mxu2 %vm414_vm1, %v2825_v29  ;;  %2322 = vmatmul.msk.f32.vlgmr.msra.gmra.mxu3 %vm414_vm1, %v2828_v30  ;;  %v331_v37 = vsel %vm328_vm0, %v329_v27, %v330_v31  ;;  %v2860_v43 = vld [vmem:[%s2765_s4 + $0xd8] sm:$0xff]  ;;  %v2863_v44 = vsel %vm328_vm0, %v370_v19, %v372_v36  ;;  %v2869_v46 = vld [vmem:[%s2765_s4 + $0xe0] sm:$0xff]  ;;  %v354_v53 = vrot.slane %v2854_v41, 1  ;;  %v355_v54 = vrot.slane %v2857_v42, 1 }
  0x19   : > { %4264 = vst [vmem:[#allocation6_spill] sm:$0xff] %v2832_v32  ;;  %1088 = vmatpush.msrb.mxu3 %v2400_v18  ;;  %669 = vmatpush.msrb.mxu1 %v278_v28  ;;  %v2866_v45 = vsel %vm328_vm0, %v390_v21, %v392_v38  ;;  %v2872_v47 = vld [vmem:[%s2765_s4 + $0x138] sm:$0xff]  ;;  %v2878_v49 = vld [vmem:[%s2765_s4 + $0x140] sm:$0xff]  ;;  %v333_v52 = vsel %vm328_vm0, %v330_v31, %v332_v39  ;;  %v374_v57 = vrot.slane %v2860_v43, 1  ;;  %v375_v58 = vrot.slane %v2869_v46, 1  ;;  %v2966_v31 = vld [vmem:[%s2765_s4 + $0x90] sm:$0xff] }
  0x1a   : > { %2298 = vmatmul.msk.f32.vlgmr.msra.gmra.mxu0 %vm414_vm1, %v331_v37  ;;  %4265 = vst [vmem:[#allocation7_spill] sm:$0xff] %v2851_v40  ;;  %933 = vmatpush.msrb.mxu2 %v2363_v48  ;;  %v2896_v55 = vld [vmem:[%s2765_s4 + $0x18] sm:$0xff]  ;;  %v2899_v56 = vld [vmem:[%s2765_s4 + $0x20] sm:$0xff]  ;;  %v394_v59 = vrot.slane %v2872_v47, 1  ;;  %v395_v60 = vrot.slane %v2878_v49, 1  ;;  %v2912_v0 = vsel %vm328_vm0, %v354_v53, %v355_v54  ;;  %v2978_v37 = vld [vmem:[%s2765_s4 + $0x150] sm:$0xff] }
  0x1b   : > { %1248 = vmatpush.msrb.mxu0 %v2436_v35  ;;  %4266 = vst [vmem:[#allocation8_spill] sm:$0xff] %v2863_v44  ;;  %1089 = vmatpush.msrb.mxu3 %v2399_v50  ;;  %v334_v62 = vrot.slane %v2896_v55, 1  ;;  %v335_v63 = vrot.slane %v2899_v56, 1  ;;  %v2915_v1 = vsel %vm328_vm0, %v374_v57, %v375_v58  ;;  %v2921_v3 = vld [vmem:[%s2765_s4 + $0x88] sm:$0x3]  ;;  %v2362_v12 = vld [vmem:[%s4182_s1 + $0x40] sm:$0xff] }
  0x1c   : > { %4267 = vst [vmem:[#allocation9_spill] sm:$0xff] %v2866_v45  ;;  %670 = vmatpush.msrb.mxu1 %v277_v51  ;;  %v2918_v2 = vsel %vm328_vm0, %v394_v59, %v395_v60  ;;  %v2924_v4 = vld [vmem:[%s2765_s4 + $0xe8] sm:$0x3]  ;;  %v357_v8 = vrot.slane %v2921_v3, 1  ;;  %v2398_v13 = vld [vmem:[%s4182_s1 + $0x60] sm:$0xff]  ;;  %934 = vmatpush.msrb.mxu2 %v2362_v12  ;;  %v2969_v33 = vld [vmem:[%s2765_s4 + $0x98] sm:$0xff] }
  0x1d   : > { %4268 = vst [vmem:[#allocation10_spill] sm:$0xff] %v2872_v47  ;;  %1249 = vmatpush.msrb.mxu0 %v2435_v61  ;;  %v2927_v5 = vld [vmem:[%s2765_s4 + $0x148] sm:$0x3]  ;;  %v2932_v6 = vsel %vm328_vm0, %v334_v62, %v335_v63  ;;  %v276_v15 = vld [vmem:[%s4182_s1] sm:$0xff]  ;;  %v377_v18 = vrot.slane %v2924_v4, 1  ;;  %1090 = vmatpush.msrb.mxu3 %v2398_v13  ;;  %v2972_v35 = vld [vmem:[%s2765_s4 + $0xf0] sm:$0xff] }
  0x1e   : > { %4269 = vst [vmem:[#allocation11_spill] sm:$0xff] %v2878_v49  ;;  %2307 = vmatmul.msk.f32.gmra.mxu1 %vm414_vm1, %v2851_v40  ;;  %v2935_v7 = vld [vmem:[%s2765_s4 + $0x28] sm:$0x3]  ;;  %v397_v19 = vrot.slane %v2927_v5, 1  ;;  %v2957_v21 = vsel %vm328_vm0, %v355_v54, %v357_v8  ;;  %v2975_v36 = vld [vmem:[%s2765_s4 + $0xf8] sm:$0xff]  ;;  %v359_v48 = vrot.slane %v2966_v31, 1 }
  0x1f   : > { %4270 = vst [vmem:[#allocation12_spill] sm:$0xff] %v2912_v0  ;;  %671 = vmatpush.msrb.mxu1 %v276_v15  ;;  %v337_v20 = vrot.slane %v2935_v7, 1  ;;  %v2960_v27 = vsel %vm328_vm0, %v375_v58, %v377_v18  ;;  %v2981_v38 = vld [vmem:[%s2765_s4 + $0x158] sm:$0xff]  ;;  %v360_v50 = vrot.slane %v2969_v33, 1  ;;  %v2995_v51 = vld [vmem:[%s2765_s4 + $0x30] sm:$0xff]  ;;  %v2434_v53 = vld [vmem:[%s4182_s1 + $0x80] sm:$0xff] }
  0x20   : > { %2315 = vmatmul.msk.f32.gmra.mxu2 %vm414_vm1, %v2863_v44  ;;  %2323 = vmatmul.msk.f32.gmra.mxu3 %vm414_vm1, %v2866_v45  ;;  %4271 = vst [vmem:[#allocation13_spill] sm:$0xff] %v2918_v2  ;;  %v2963_v28 = vsel %vm328_vm0, %v395_v60, %v397_v19  ;;  %v379_v54 = vrot.slane %v2972_v35, 1  ;;  %v380_v57 = vrot.slane %v2975_v36, 1  ;;  %v399_v58 = vrot.slane %v2978_v37, 1  ;;  %v3021_v12 = vld [vmem:[%s2765_s4 + $0xa0] sm:$0x3] }
  0x21   : > { %4272 = vst [vmem:[#allocation14_spill] sm:$0xff] %v2927_v5  ;;  %v2986_v39 = vsel %vm328_vm0, %v335_v63, %v337_v20  ;;  %v400_v59 = vrot.slane %v2981_v38, 1  ;;  %1250 = vmatpush.msrb.mxu0 %v2434_v53  ;;  %v339_v60 = vrot.slane %v2995_v51, 1  ;;  %v3012_v62 = vsel %vm328_vm0, %v359_v48, %v360_v50  ;;  %v3024_v13 = vld [vmem:[%s2765_s4 + $0x100] sm:$0x3]  ;;  %v2509_v48 = vld [vmem:[%s4182_s1 + $0xd8] sm:$0xff] }
  0x22   : > { %2299 = vmatmul.msk.f32.gmra.mxu0 %vm414_vm1, %v333_v52  ;;  %4273 = vst [vmem:[#allocation15_spill] sm:$0xff] %v2957_v21  ;;  %v2998_v52 = vld [vmem:[%s2765_s4 + $0x38] sm:$0xff]  ;;  %v3015_v63 = vsel %vm328_vm0, %v379_v54, %v380_v57  ;;  %v3027_v15 = vld [vmem:[%s2765_s4 + $0x160] sm:$0x3]  ;;  %v362_v20 = vrot.slane %v3021_v12, 1  ;;  %1562 = vmatpush.msra.mxu2 %v2509_v48  ;;  %v3069_v48 = vld [vmem:[%s2765_s4 + $0xb0] sm:$0xff] }
  0x23   : > { %4274 = vst [vmem:[#allocation16_spill] sm:$0xff] %v2963_v28  ;;  %v340_v61 = vrot.slane %v2998_v52, 1  ;;  %v3018_v8 = vsel %vm328_vm0, %v399_v58, %v400_v59  ;;  %v3035_v19 = vld [vmem:[%s2765_s4 + $0x40] sm:$0x3]  ;;  %v2545_v53 = vld [vmem:[%s4182_s1 + $0xf8] sm:$0xff]  ;;  %v382_v58 = vrot.slane %v3024_v13, 1 }
  0x24   : > { %4275 = vst [vmem:[#allocation17_spill] sm:$0xff] %v2978_v37  ;;  %v2473_v54 = vld [vmem:[%s4182_s1 + $0xb8] sm:$0xff]  ;;  %1722 = vmatpush.msra.mxu3 %v2545_v53  ;;  %v3072_v53 = vld [vmem:[%s2765_s4 + $0x108] sm:$0xff]  ;;  %v3081_v49 = vld [vmem:[%s2765_s4 + $0x170] sm:$0xff] }
  0x25   : > { %4276 = vst [vmem:[#allocation18_spill] sm:$0xff] %v2981_v38  ;;  %v3032_v18 = vsel %vm328_vm0, %v339_v60, %v340_v61  ;;  %v402_v60 = vrot.slane %v3027_v15, 1  ;;  %1406 = vmatpush.msra.mxu1 %v2473_v54  ;;  %v342_v38 = vrot.slane %v3035_v19, 1  ;;  %v3060_v5 = vsel %vm328_vm0, %v380_v57, %v382_v58  ;;  %v3075_v54 = vld [vmem:[%s2765_s4 + $0x110] sm:$0xff] }
  0x26   : > { %2308 = vmatmul.msk.f32.gmra.mxu1 %vm414_vm1, %v2912_v0  ;;  %4277 = vst [vmem:[#allocation19_spill] sm:$0xff] %v3012_v62  ;;  %v3098_v58 = vld [vmem:[%s2765_s4 + $0x50] sm:$0xff] }
  0x27   : > { %4278 = vst [vmem:[#allocation20_spill] sm:$0xff] %v3018_v8  ;;  %v3063_v37 = vsel %vm328_vm0, %v400_v59, %v402_v60  ;;  %v365_v59 = vrot.slane %v3069_v48, 1  ;;  %v385_v60 = vrot.slane %v3075_v54, 1  ;;  %v345_v47 = vrot.slane %v3098_v58, 1 }
  0x28   : > { %2316 = vmatmul.msk.f32.gmra.mxu2 %vm414_vm1, %v2915_v1  ;;  %2324 = vmatmul.msk.f32.gmra.mxu3 %vm414_vm1, %v2918_v2  ;;  %4279 = vst [vmem:[#allocation21_spill] sm:$0xff] %v3024_v13  ;;  %v405_v2 = vrot.slane %v3081_v49, 1 }
  0x29   : > { %4280 = vst [vmem:[#allocation22_spill] sm:$0xff] %v3027_v15  ;;  %v3066_v15 = vld [vmem:[%s2765_s4 + $0xa8] sm:$0xff] }
  0x2a   : > { %2300 = vmatmul.msk.f32.gmra.mxu0 %vm414_vm1, %v2932_v6  ;;  %4282 = vst [vmem:[#allocation24_spill] sm:$0xff] %v3063_v37  ;;  %v364_v57 = vrot.slane %v3066_v15, 1 }
  0x2b   : > { %4283 = vst [vmem:[#allocation25_spill] sm:$0xff] %v3075_v54 }
  0x2c   : > { %4285 = vst [vmem:[#allocation27_spill] sm:$0xff] %v3081_v49  ;;  %v3112_v45 = vsel %vm328_vm0, %v364_v57, %v365_v59  ;;  %v3124_v49 = vld [vmem:[%s2765_s4 + $0x118] sm:$0x3] }
  0x2d   : > { %4286 = vst [vmem:[#allocation28_spill] sm:$0xff] %v3112_v45  ;;  %v3140_v57 = vld [vmem:[%s2765_s4 + $0x58] sm:$0x3] }
  0x2e   : > { %2309 = vmatmul.msk.f32.gmra.mxu1 %vm414_vm1, %v2957_v21  ;;  %4289 = vst [vmem:[#allocation31_spill] sm:$0xff] %v3124_v49 }
  0x30   : > { %2317 = vmatmul.msk.f32.gmra.mxu2 %vm414_vm1, %v2960_v27  ;;  %2325 = vmatmul.msk.f32.gmra.mxu3 %vm414_vm1, %v2963_v28  ;;  %v3078_v28 = vld [vmem:[%s2765_s4 + $0x168] sm:$0xff] }
  0x31   : > { %4284 = vst [vmem:[#allocation26_spill] sm:$0xff] %v3078_v28 }
  0x32   : > { %2301 = vmatmul.msk.f32.gmra.mxu0 %vm414_vm1, %v2986_v39 }
  0x36   : > { %2310 = vmatmul.msk.f32.gmra.mxu1 %vm414_vm1, %v3012_v62 }
  0x38   : > { %2318 = vmatmul.msk.f32.gmra.mxu2 %vm414_vm1, %v3015_v63  ;;  %2326 = vmatmul.msk.f32.gmra.mxu3 %vm414_vm1, %v3018_v8  ;;  %v3057_v8 = vsel %vm328_vm0, %v360_v50, %v362_v20  ;;  %v3086_v50 = vsel %vm328_vm0, %v340_v61, %v342_v38  ;;  %v3095_v20 = vld [vmem:[%s2765_s4 + $0x48] sm:$0xff]  ;;  %v2581_v38 = vld [vmem:[%s4182_s1 + $0x118] sm:$0xff]  ;;  %v384_v61 = vrot.slane %v3072_v53, 1 }
  0x39   : > { %4281 = vst [vmem:[#allocation23_spill] sm:$0xff] %v3057_v8  ;;  %1881 = vmatpush.msra.mxu0 %v2581_v38  ;;  %v344_v32 = vrot.slane %v3095_v20, 1  ;;  %v3127_v38 = vld [vmem:[%s2765_s4 + $0x178] sm:$0x3] }
  0x3a   : > { %2302 = vmatmul.msk.f32.gmra.mxu0 %vm414_vm1, %v3032_v18  ;;  %v3115_v17 = vsel %vm328_vm0, %v384_v61, %v385_v60  ;;  %v387_v61 = vrot.slane %v3124_v49, 1  ;;  %v407_v54 = vrot.slane %v3127_v38, 1 }
  0x3b   : > { %4287 = vst [vmem:[#allocation29_spill] sm:$0xff] %v3115_v17  ;;  %v3132_v16 = vsel %vm328_vm0, %v344_v32, %v345_v47  ;;  %v347_v32 = vrot.slane %v3140_v57, 1 }
  0x3d   : > { %v3159_v49 = vsel %vm328_vm0, %v345_v47, %v347_v32  ;;  %v773_v47 = vrot.slane %v2840_v34, 2  ;;  %v783_v32 = vrot.slane %v3035_v19, 2  ;;  %v2580_v19 = vld [vmem:[%s4182_s1 + $0x110] sm:$0xff] }
  0x3e   : > { %2311 = vmatmul.msk.f32.gmra.mxu1 %vm414_vm1, %v3057_v8  ;;  %1882 = vmatpush.msra.mxu0 %v2580_v19 }
  0x40   : > { %2319 = vmatmul.msk.f32.gmra.mxu2 %vm414_vm1, %v3060_v5  ;;  %2327 = vmatmul.msk.f32.gmra.mxu3 %vm414_vm1, %v3063_v37  ;;  %v404_v37 = vrot.slane %v3078_v28, 1  ;;  %v3121_v28 = vld [vmem:[%s2765_s4 + $0xb8] sm:$0x3] }
  0x42   : > { %2303 = vmatmul.msk.f32.gmra.mxu0 %vm414_vm1, %v3086_v50  ;;  %v3118_v30 = vsel %vm328_vm0, %v404_v37, %v405_v2  ;;  %v367_v37 = vrot.slane %v3121_v28, 1 }
  0x43   : > { %4288 = vst [vmem:[#allocation30_spill] sm:$0xff] %v3118_v30 }
  0x44   : > { %v3148_v13 = vsel %vm328_vm0, %v365_v59, %v367_v37  ;;  %v770_v59 = vrot.slane %v2807_v23, 2  ;;  %v776_v37 = vrot.slane %v2899_v56, 2 }
  0x45   : > { %4290 = vst [vmem:[#allocation32_spill] sm:$0xff] %v3148_v13 }
  0x46   : > { %2312 = vmatmul.msk.f32.gmra.mxu1 %vm414_vm1, %v3112_v45 }
  0x48   : > { %2320 = vmatmul.msk.f32.gmra.mxu2 %vm414_vm1, %v3115_v17  ;;  %2328 = vmatmul.msk.f32.gmra.mxu3 %vm414_vm1, %v3118_v30  ;;  %v3151_v17 = vsel %vm328_vm0, %v385_v60, %v387_v61  ;;  %v3154_v30 = vsel %vm328_vm0, %v405_v2, %v407_v54  ;;  %v771_v60 = vrot.slane %v2816_v26, 2  ;;  %v2544_v61 = vld [vmem:[%s4182_s1 + $0xf0] sm:$0xff] }
  0x49   : > { %4291 = vst [vmem:[#allocation33_spill] sm:$0xff] %v3154_v30  ;;  %1723 = vmatpush.msra.mxu3 %v2544_v61  ;;  %v793_v61 = vrot.slane %v2804_v22, 2  ;;  %v795_v22 = vrot.slane %v2854_v41, 2 }
  0x4a   : > { %2304 = vmatmul.msk.f32.gmra.mxu0 %vm414_vm1, %v3132_v16  ;;  %v772_v2 = vsel %vm769_vm2, %v770_v59, %v771_v60  ;;  %v774_v54 = vsel %vm769_vm2, %v771_v60, %v773_v47  ;;  %v2472_v59 = vld [vmem:[%s4182_s1 + $0xb0] sm:$0xff]  ;;  %v786_v47 = vrot.slane %v3098_v58, 2 }
  0x4b   : > { %1407 = vmatpush.msra.mxu1 %v2472_v59 }
  0x4e   : > { %2313 = vmatmul.msk.f32.gmra.mxu1 %vm414_vm1, %v3148_v13 }
  0x50   : > { %2321 = vmatmul.msk.f32.gmra.mxu2 %vm414_vm1, %v3151_v17  ;;  %2329 = vmatmul.msk.f32.gmra.mxu3 %vm414_vm1, %v3154_v30 }
  0x52   : > { %2305 = vmatmul.msk.f32.gmra.mxu0 %vm414_vm1, %v3159_v49 }
  0x56   : > { %2330 = vmatmul.msk.f32.vlgmr.msrb.gmra.mxu1 %vm414_vm1, %v2807_v23  ;;  %v775_v23 = vrot.slane %v2896_v55, 2 }
  0x58   : > { %2366 = vmatmul.msk.f32.vlgmr.msrb.gmra.mxu2 %vm414_vm1, %v772_v2  ;;  %2402 = vmatmul.msk.f32.vlgmr.msrb.gmra.mxu3 %vm414_vm1, %v2896_v55  ;;  %v3189_v34 = vsel %vm769_vm2, %v775_v23, %v776_v37  ;;  %v785_v2 = vrot.slane %v3095_v20, 2  ;;  %v788_v23 = vrot.slane %v3140_v57, 2 }
  0x5a   : > { %2438 = vmatmul.msk.f32.vlgmr.msrb.gmra.mxu0 %vm414_vm1, %v2932_v6 }
  0x5e   : > { %2331 = vmatmul.msk.f32.gmra.mxu1 %vm414_vm1, %v2816_v26  ;;  %v778_v26 = vrot.slane %v2935_v7, 2 }
  0x60   : > { %2367 = vmatmul.msk.f32.gmra.mxu2 %vm414_vm1, %v774_v54  ;;  %2403 = vmatmul.msk.f32.gmra.mxu3 %vm414_vm1, %v2899_v56  ;;  %v3201_v6 = vsel %vm769_vm2, %v776_v37, %v778_v26  ;;  %v3251_v54 = vsel %vm769_vm2, %v785_v2, %v786_v47  ;;  %v3263_v37 = vsel %vm769_vm2, %v786_v47, %v788_v23  ;;  %v790_v26 = vrot.slane %v2777_v9, 2 }
  0x61   : > { %v796_v47 = vrot.slane %v2857_v42, 2 }
  0x62   : > { %2439 = vmatmul.msk.f32.gmra.mxu0 %vm414_vm1, %v2986_v39  ;;  %v781_v39 = vrot.slane %v2998_v52, 2 }
  0x64   : > { %v3235_v60 = vsel %vm769_vm2, %v781_v39, %v783_v32 }
  0x66   : > { %2332 = vmatmul.msk.f32.gmra.mxu1 %vm414_vm1, %v2896_v55  ;;  %v780_v55 = vrot.slane %v2995_v51, 2 }
  0x68   : > { %2368 = vmatmul.msk.f32.gmra.mxu2 %vm414_vm1, %v3189_v34  ;;  %2404 = vmatmul.msk.f32.gmra.mxu3 %vm414_vm1, %v2995_v51  ;;  %v3214_v7 = vsel %vm769_vm2, %v780_v55, %v781_v39  ;;  %v791_v55 = vrot.slane %v2780_v10, 2 }
  0x6a   : > { %2440 = vmatmul.msk.f32.gmra.mxu0 %vm414_vm1, %v3032_v18  ;;  %v3278_v39 = vsel %vm769_vm2, %v790_v26, %v791_v55 }
  0x6b   : > { %4292 = vst [vmem:[#allocation34_spill] sm:$0xff] %v3278_v39 }
  0x6e   : > { %2333 = vmatmul.msk.f32.gmra.mxu1 %vm414_vm1, %v2899_v56  ;;  %v2508_v56 = vld [vmem:[%s4182_s1 + $0xd0] sm:$0xff] }
  0x6f   : > { %1563 = vmatpush.msra.mxu2 %v2508_v56 }
  0x70   : > { %2369 = vmatmul.msk.f32.gmra.mxu2 %vm414_vm1, %v3201_v6  ;;  %2405 = vmatmul.msk.f32.gmra.mxu3 %vm414_vm1, %v2998_v52 }
  0x72   : > { %2441 = vmatmul.msk.f32.gmra.mxu0 %vm414_vm1, %v3086_v50 }
  0x76   : > { %2334 = vmatmul.msk.f32.gmra.mxu1 %vm414_vm1, %v2995_v51 }
  0x78   : > { %2370 = vmatmul.msk.f32.gmra.mxu2 %vm414_vm1, %v3214_v7  ;;  %2406 = vmatmul.msk.f32.gmra.mxu3 %vm414_vm1, %v3095_v20 }
  0x7a   : > { %2442 = vmatmul.msk.f32.gmra.mxu0 %vm414_vm1, %v3132_v16 }
  0x7e   : > { %2335 = vmatmul.msk.f32.gmra.mxu1 %vm414_vm1, %v2998_v52 }
  0x80   : > { %2371 = vmatmul.msk.f32.gmra.mxu2 %vm414_vm1, %v3235_v60  ;;  %2407 = vmatmul.msk.f32.gmra.mxu3 %vm414_vm1, %v3098_v58 }
  0x82   : > { %2443 = vmatmul.msk.f32.gmra.mxu0 %vm414_vm1, %v3159_v49 }
  0x86   : > { %2336 = vmatmul.msk.f32.gmra.mxu1 %vm414_vm1, %v3095_v20 }
  0x88   : > { %2372 = vmatmul.msk.f32.gmra.mxu2 %vm414_vm1, %v3251_v54  ;;  %2408 = vmatmul.msk.f32.gmra.mxu3 %vm414_vm1, %v2777_v9 }
  0x8a   : > { %2444 = vmatmul.msk.f32.gmra.mxu0 %vm414_vm1, %v2810_v24 }
  0x8e   : > { %2337 = vmatmul.msk.f32.gmra.mxu1 %vm414_vm1, %v3098_v58 }
  0x90   : > { %2373 = vmatmul.msk.f32.gmra.mxu2 %vm414_vm1, %v3263_v37  ;;  %2409 = vmatmul.msk.f32.gmra.mxu3 %vm414_vm1, %v2780_v10 }
  0x92   : > { %2445 = vmatmul.msk.f32.gmra.mxu0 %vm414_vm1, %v2851_v40 }
  0x93   : > { %v3275_v57 = vpop.f32.mrf.mxu1 }
  0x96   : > { %2338 = vmatmul.msk.f32.gmra.mxu1 %vm414_vm1, %v2777_v9  ;;  %v3298_v9 = vsel %vm769_vm2, %v791_v55, %v793_v61  ;;  %v3319_v55 = vsel %vm769_vm2, %v795_v22, %v796_v47 }
  0x97   : > { %v3282_v56 = vpop.f32.mrf.mxu0  ;;  %4294 = vst [vmem:[#allocation36_spill] sm:$0xff] %v3298_v9 }
  0x98   : > { %2374 = vmatmul.msk.f32.gmra.mxu2 %vm414_vm1, %v3278_v39  ;;  %2410 = vmatmul.msk.f32.gmra.mxu3 %vm414_vm1, %v2854_v41  ;;  %4296 = vst [vmem:[#allocation38_spill] sm:$0xff] %v3319_v55 }
  0x9a   : > { %2446 = vmatmul.msk.f32.gmra.mxu0 %vm414_vm1, %v2912_v0 }
  0x9b   : > { %v3291_v32 = vpop.f32.mrf.mxu2  ;;  %v3293_v59 = vpop.f32.mrf.mxu3 }
  0x9c   : > { %4293 = vst [vmem:[#allocation35_spill] sm:$0xff] %v3293_v59  ;;  %v3295_v19 = vpop.f32.mrf.mxu1  ;;  %v798_v59 = vrot.slane %v2921_v3, 2  ;;  %v800_v3 = vrot.slane %v2966_v31, 2 }
  0x9e   : > { %2339 = vmatmul.msk.f32.gmra.mxu1 %vm414_vm1, %v2780_v10 }
  0x9f   : > { %v3302_v2 = vpop.f32.mrf.mxu0 }
  0xa0   : > { %2375 = vmatmul.msk.f32.gmra.mxu2 %vm414_vm1, %v3298_v9  ;;  %2411 = vmatmul.msk.f32.gmra.mxu3 %vm414_vm1, %v2857_v42  ;;  %v2471_v9 = vld [vmem:[%s4182_s1 + $0xa8] sm:$0xff] }
  0xa1   : > { %1408 = vmatpush.msra.mxu1 %v2471_v9 }
  0xa2   : > { %2447 = vmatmul.msk.f32.gmra.mxu0 %vm414_vm1, %v2957_v21 }
  0xa3   : > { %v3312_v23 = vpop.f32.mrf.mxu2  ;;  %v3314_v26 = vpop.f32.mrf.mxu3 }
  0xa4   : > { %4295 = vst [vmem:[#allocation37_spill] sm:$0xff] %v3314_v26  ;;  %v3316_v10 = vpop.f32.mrf.mxu1 }
  0xa6   : > { %2340 = vmatmul.msk.f32.gmra.mxu1 %vm414_vm1, %v2854_v41  ;;  %v3339_v41 = vsel %vm769_vm2, %v796_v47, %v798_v59 }
  0xa7   : > { %v3323_v61 = vpop.f32.mrf.mxu0  ;;  %4298 = vst [vmem:[#allocation40_spill] sm:$0xff] %v3339_v41 }
  0xa8   : > { %2376 = vmatmul.msk.f32.gmra.mxu2 %vm414_vm1, %v3319_v55  ;;  %2412 = vmatmul.msk.f32.gmra.mxu3 %vm414_vm1, %v2966_v31 }
  0xaa   : > { %2448 = vmatmul.msk.f32.gmra.mxu0 %vm414_vm1, %v3012_v62 }
  0xab   : > { %v3332_v26 = vpop.f32.mrf.mxu2  ;;  %v3334_v22 = vpop.f32.mrf.mxu3 }
  0xac   : > { %4297 = vst [vmem:[#allocation39_spill] sm:$0xff] %v3334_v22  ;;  %v3336_v21 = vpop.f32.mrf.mxu1  ;;  %v801_v22 = vrot.slane %v2969_v33, 2 }
  0xae   : > { %2341 = vmatmul.msk.f32.gmra.mxu1 %vm414_vm1, %v2857_v42  ;;  %v3360_v62 = vsel %vm769_vm2, %v800_v3, %v801_v22  ;;  %v2543_v3 = vld [vmem:[%s4182_s1 + $0xe8] sm:$0xff] }
  0xaf   : > { %v3343_v55 = vpop.f32.mrf.mxu0  ;;  %4300 = vst [vmem:[#allocation42_spill] sm:$0xff] %v3360_v62  ;;  %1724 = vmatpush.msra.mxu3 %v2543_v3  ;;  %v805_v3 = vrot.slane %v3066_v15, 2 }
  0xb0   : > { %2377 = vmatmul.msk.f32.gmra.mxu2 %vm414_vm1, %v3339_v41  ;;  %2413 = vmatmul.msk.f32.gmra.mxu3 %vm414_vm1, %v2969_v33 }
  0xb2   : > { %2449 = vmatmul.msk.f32.gmra.mxu0 %vm414_vm1, %v3057_v8  ;;  %v803_v8 = vrot.slane %v3021_v12, 2 }
  0xb3   : > { %v3353_v59 = vpop.f32.mrf.mxu2  ;;  %v3355_v47 = vpop.f32.mrf.mxu3 }
  0xb4   : > { %4299 = vst [vmem:[#allocation41_spill] sm:$0xff] %v3355_v47  ;;  %v3357_v42 = vpop.f32.mrf.mxu1  ;;  %v2507_v47 = vld [vmem:[%s4182_s1 + $0xc8] sm:$0xff]  ;;  %v3389_v40 = vsel %vm769_vm2, %v801_v22, %v803_v8  ;;  %v806_v8 = vrot.slane %v3069_v48, 2 }
  0xb5   : > { %1564 = vmatpush.msra.mxu2 %v2507_v47  ;;  %4302 = vst [vmem:[#allocation44_spill] sm:$0xff] %v3389_v40  ;;  %v2579_v47 = vld [vmem:[%s4182_s1 + $0x108] sm:$0xff] }
  0xb6   : > { %2342 = vmatmul.msk.f32.gmra.mxu1 %vm414_vm1, %v2966_v31  ;;  %1883 = vmatpush.msra.mxu0 %v2579_v47  ;;  %v808_v47 = vrot.slane %v3121_v28, 2  ;;  %v810_v28 = vrot.slane %v2783_v11, 2 }
  0xb7   : > { %v3364_v41 = vpop.f32.mrf.mxu0 }
  0xb8   : > { %2378 = vmatmul.msk.f32.gmra.mxu2 %vm414_vm1, %v3360_v62  ;;  %2414 = vmatmul.msk.f32.gmra.mxu3 %vm414_vm1, %v3066_v15 }
  0xba   : > { %2450 = vmatmul.msk.f32.gmra.mxu0 %vm414_vm1, %v3112_v45 }
  0xbb   : > { %v3379_v31 = vpop.f32.mrf.mxu2  ;;  %v3381_v62 = vpop.f32.mrf.mxu3 }
  0xbc   : > { %4301 = vst [vmem:[#allocation43_spill] sm:$0xff] %v3381_v62  ;;  %v3383_v0 = vpop.f32.mrf.mxu1  ;;  %v3413_v62 = vsel %vm769_vm2, %v805_v3, %v806_v8 }
  0xbd   : > { %4305 = vst [vmem:[#allocation47_spill] sm:$0xff] %v3413_v62 }
  0xbe   : > { %2343 = vmatmul.msk.f32.gmra.mxu1 %vm414_vm1, %v2969_v33 }
  0xbf   : > { %v3393_v12 = vpop.f32.mrf.mxu0 }
  0xc0   : > { %2379 = vmatmul.msk.f32.gmra.mxu2 %vm414_vm1, %v3389_v40  ;;  %2415 = vmatmul.msk.f32.gmra.mxu3 %vm414_vm1, %v3069_v48 }
  0xc2   : > { %2451 = vmatmul.msk.f32.gmra.mxu0 %vm414_vm1, %v3148_v13 }
  0xc3   : > { %v3406_v33 = vpop.f32.mrf.mxu2  ;;  %v3408_v9 = vpop.f32.mrf.mxu3 }
  0xc4   : > { %4303 = vst [vmem:[#allocation45_spill] sm:$0xff] %v3406_v33  ;;  %v3410_v22 = vpop.f32.mrf.mxu1 }
  0xc5   : > { %4304 = vst [vmem:[#allocation46_spill] sm:$0xff] %v3408_v9 }
  0xc6   : > { %2344 = vmatmul.msk.f32.gmra.mxu1 %vm414_vm1, %v3066_v15  ;;  %v3433_v15 = vsel %vm769_vm2, %v806_v8, %v808_v47 }
  0xc7   : > { %v3417_v45 = vpop.f32.mrf.mxu0  ;;  %4308 = vst [vmem:[#allocation50_spill] sm:$0xff] %v3433_v15 }
  0xc8   : > { %2380 = vmatmul.msk.f32.gmra.mxu2 %vm414_vm1, %v3413_v62  ;;  %2416 = vmatmul.msk.f32.gmra.mxu3 %vm414_vm1, %v2783_v11 }
  0xca   : > { %2452 = vmatmul.msk.f32.gmra.mxu0 %vm414_vm1, %v2825_v29 }
  0xcb   : > { %v3426_v9 = vpop.f32.mrf.mxu2  ;;  %v3428_v3 = vpop.f32.mrf.mxu3 }
  0xcc   : > { %4306 = vst [vmem:[#allocation48_spill] sm:$0xff] %v3426_v9  ;;  %v3430_v13 = vpop.f32.mrf.mxu1 }
  0xcd   : > { %4307 = vst [vmem:[#allocation49_spill] sm:$0xff] %v3428_v3  ;;  %v811_v3 = vrot.slane %v2788_v14, 2 }
  0xce   : > { %2345 = vmatmul.msk.f32.gmra.mxu1 %vm414_vm1, %v3069_v48 }
  0xcf   : > { %v3437_v62 = vpop.f32.mrf.mxu0  ;;  %v3452_v29 = vsel %vm769_vm2, %v810_v28, %v811_v3 }
  0xd0   : > { %2381 = vmatmul.msk.f32.gmra.mxu2 %vm414_vm1, %v3433_v15  ;;  %2417 = vmatmul.msk.f32.gmra.mxu3 %vm414_vm1, %v2788_v14  ;;  %4311 = vst [vmem:[#allocation53_spill] sm:$0xff] %v3452_v29 }
  0xd2   : > { %2453 = vmatmul.msk.f32.gmra.mxu0 %vm414_vm1, %v2863_v44  ;;  %v813_v44 = vrot.slane %v2813_v25, 2  ;;  %v815_v25 = vrot.slane %v2860_v43, 2 }
  0xd3   : > { %v3447_v8 = vpop.f32.mrf.mxu2  ;;  %v3449_v47 = vpop.f32.mrf.mxu3 }
  0xd4   : > { %4309 = vst [vmem:[#allocation51_spill] sm:$0xff] %v3447_v8  ;;  %v673_v48 = vpop.f32.mrf.mxu1 }
  0xd5   : > { %4310 = vst [vmem:[#allocation52_spill] sm:$0xff] %v3449_v47  ;;  %v674_v40 = vadd.f32 %v673_v48, %v3282_v56 }
  0xd6   : > { %2346 = vmatmul.msk.f32.gmra.mxu1 %vm414_vm1, %v2783_v11  ;;  %v3465_v11 = vsel %vm769_vm2, %v811_v3, %v813_v44 }
  0xd7   : > { %v1252_v15 = vpop.f32.mrf.mxu0 }
  0xd8   : > { %2382 = vmatmul.msk.f32.gmra.mxu2 %vm414_vm1, %v3452_v29  ;;  %2418 = vmatmul.msk.f32.gmra.mxu3 %vm414_vm1, %v2860_v43 }
  0xda   : > { %2454 = vmatmul.msk.f32.gmra.mxu0 %vm414_vm1, %v2915_v1 }
  0xdb   : > { %v936_v47 = vpop.f32.mrf.mxu2  ;;  %v1092_v28 = vpop.f32.mrf.mxu3 }
  0xdc   : > { %v1032_v8 = vadd.f32 %v936_v47, %v674_v40  ;;  %v676_v9 = vpop.f32.mrf.mxu1  ;;  %v816_v40 = vrot.slane %v2869_v46, 2 }
  0xdd   : > { %v677_v44 = vadd.f32 %v676_v9, %v3302_v2  ;;  %v818_v2 = vrot.slane %v2924_v4, 2  ;;  %v820_v4 = vrot.slane %v2972_v35, 2 }
  0xde   : > { %v1188_v33 = vadd.f32 %v1092_v28, %v1032_v8  ;;  %2347 = vmatmul.msk.f32.gmra.mxu1 %vm414_vm1, %v2788_v14 }
  0xdf   : > { %v1255_v29 = vpop.f32.mrf.mxu0 }
  0xe0   : > { %v3469_v39 = vadd.f32 %v1252_v15, %v1188_v33  ;;  %2383 = vmatmul.msk.f32.gmra.mxu2 %vm414_vm1, %v3465_v11  ;;  %2419 = vmatmul.msk.f32.gmra.mxu3 %vm414_vm1, %v2869_v46  ;;  %v3481_v15 = vsel %vm769_vm2, %v815_v25, %v816_v40 }
  0xe2   : > { %2455 = vmatmul.msk.f32.gmra.mxu0 %vm414_vm1, %v2960_v27 }
  0xe3   : > { %v939_v56 = vpop.f32.mrf.mxu2  ;;  %v1095_v14 = vpop.f32.mrf.mxu3 }
  0xe4   : > { %v1033_v3 = vadd.f32 %v939_v56, %v677_v44  ;;  %v679_v33 = vpop.f32.mrf.mxu1 }
  0xe5   : > { %v680_v9 = vadd.f32 %v679_v33, %v3323_v61  ;;  %v821_v61 = vrot.slane %v2975_v36, 2 }
  0xe6   : > { %v1189_v8 = vadd.f32 %v1095_v14, %v1033_v3  ;;  %2348 = vmatmul.msk.f32.gmra.mxu1 %vm414_vm1, %v2860_v43 }
  0xe7   : > { %v1258_v47 = vpop.f32.mrf.mxu0 }
  0xe8   : > { %v3485_v48 = vadd.f32 %v1255_v29, %v1189_v8  ;;  %2384 = vmatmul.msk.f32.gmra.mxu2 %vm414_vm1, %v3481_v15  ;;  %2420 = vmatmul.msk.f32.gmra.mxu3 %vm414_vm1, %v2972_v35  ;;  %v3496_v29 = vsel %vm769_vm2, %v816_v40, %v818_v2  ;;  %v3512_v2 = vsel %vm769_vm2, %v820_v4, %v821_v61 }
  0xea   : > { %2456 = vmatmul.msk.f32.gmra.mxu0 %vm414_vm1, %v3015_v63 }
  0xeb   : > { %v942_v28 = vpop.f32.mrf.mxu2  ;;  %v1098_v25 = vpop.f32.mrf.mxu3 }
  0xec   : > { %v1034_v44 = vadd.f32 %v942_v28, %v680_v9  ;;  %v682_v43 = vpop.f32.mrf.mxu1 }
  0xed   : > { %v683_v40 = vadd.f32 %v682_v43, %v3343_v55  ;;  %v2506_v55 = vld [vmem:[%s4182_s1 + $0xc0] sm:$0xff]  ;;  %v4313_v43 = vld [vmem:[#allocation21_spill] sm:$0xff] }
  0xee   : > { %v1190_v56 = vadd.f32 %v1098_v25, %v1034_v44  ;;  %2349 = vmatmul.msk.f32.gmra.mxu1 %vm414_vm1, %v2869_v46  ;;  %v2542_v44 = vld [vmem:[%s4182_s1 + $0xe0] sm:$0xff]  ;;  %1565 = vmatpush.msra.mxu2 %v2506_v55  ;;  %v4316_v55 = vld [vmem:[#allocation25_spill] sm:$0xff] }
  0xef   : > { %v1261_v14 = vpop.f32.mrf.mxu0  ;;  %1725 = vmatpush.msra.mxu3 %v2542_v44  ;;  %v2578_v44 = vld [vmem:[%s4182_s1 + $0x100] sm:$0xff] }
  0xf0   : > { %v3500_v3 = vadd.f32 %v1258_v47, %v1190_v56  ;;  %2385 = vmatmul.msk.f32.gmra.mxu2 %vm414_vm1, %v3496_v29  ;;  %2421 = vmatmul.msk.f32.gmra.mxu3 %vm414_vm1, %v2975_v36  ;;  %v823_v56 = vrot.slane %v4313_v43, 2 }
  0xf1   : > { %1884 = vmatpush.msra.mxu0 %v2578_v44 }
  0xf2   : > { %2457 = vmatmul.msk.f32.gmra.mxu0 %vm414_vm1, %v3060_v5 }
  0xf3   : > { %v945_v33 = vpop.f32.mrf.mxu2  ;;  %v1101_v46 = vpop.f32.mrf.mxu3 }
  0xf4   : > { %v1035_v8 = vadd.f32 %v945_v33, %v683_v40  ;;  %v685_v47 = vpop.f32.mrf.mxu1 }
  0xf6   : > { %v1191_v9 = vadd.f32 %v1101_v46, %v1035_v8  ;;  %2350 = vmatmul.msk.f32.gmra.mxu1 %vm414_vm1, %v2972_v35  ;;  %v686_v35 = vadd.f32 %v685_v47, %v3364_v41  ;;  %v2470_v8 = vld [vmem:[%s4182_s1 + $0xa0] sm:$0xff] }
  0xf7   : > { %v1264_v28 = vpop.f32.mrf.mxu0  ;;  %1409 = vmatpush.msra.mxu1 %v2470_v8 }
  0xf8   : > { %v3516_v25 = vadd.f32 %v1261_v14, %v1191_v9  ;;  %2386 = vmatmul.msk.f32.gmra.mxu2 %vm414_vm1, %v3512_v2  ;;  %2422 = vmatmul.msk.f32.gmra.mxu3 %vm414_vm1, %v3072_v53  ;;  %v4314_v14 = vld [vmem:[#allocation29_spill] sm:$0xff]  ;;  %v3536_v9 = vsel %vm769_vm2, %v821_v61, %v823_v56  ;;  %v825_v61 = vrot.slane %v3072_v53, 2  ;;  %v826_v56 = vrot.slane %v4316_v55, 2 }
  0xfa   : > { %4312 = vst [vmem:[#allocation54_spill] sm:$0xff] %v3516_v25  ;;  %2458 = vmatmul.msk.f32.gmra.mxu0 %vm414_vm1, %v4314_v14 }
  0xfb   : > { %v948_v4 = vpop.f32.mrf.mxu2  ;;  %v1104_v40 = vpop.f32.mrf.mxu3 }
  0xfc   : > { %v1036_v33 = vadd.f32 %v948_v4, %v686_v35  ;;  %v688_v46 = vpop.f32.mrf.mxu1 }
  0xfe   : > { %v1192_v43 = vadd.f32 %v1104_v40, %v1036_v33  ;;  %2351 = vmatmul.msk.f32.gmra.mxu1 %vm414_vm1, %v2975_v36  ;;  %v689_v36 = vadd.f32 %v688_v46, %v3393_v12  ;;  %v3555_v33 = vsel %vm769_vm2, %v825_v61, %v826_v56  ;;  %v4318_v12 = vld [vmem:[#allocation2_spill] sm:$0xff]  ;;  %v4319_v46 = vld [vmem:[#allocation31_spill] sm:$0xff] }
  0xff   : > { %v1267_v41 = vpop.f32.mrf.mxu0  ;;  %v828_v44 = vrot.slane %v4319_v46, 2 }
 0x100   : > { %v3540_v47 = vadd.f32 %v1264_v28, %v1192_v43  ;;  %2387 = vmatmul.msk.f32.gmra.mxu2 %vm414_vm1, %v3536_v9  ;;  %2423 = vmatmul.msk.f32.gmra.mxu3 %vm414_vm1, %v4316_v55 }
 0x102   : > { %4315 = vst [vmem:[#allocation21_spill] sm:$0xff] %v3540_v47  ;;  %2459 = vmatmul.msk.f32.gmra.mxu0 %vm414_vm1, %v3151_v17 }
 0x103   : > { %v951_v28 = vpop.f32.mrf.mxu2  ;;  %v1107_v35 = vpop.f32.mrf.mxu3 }
 0x104   : > { %v1037_v4 = vadd.f32 %v951_v28, %v689_v36  ;;  %v691_v40 = vpop.f32.mrf.mxu1  ;;  %v4320_v28 = vld [vmem:[#allocation5_spill] sm:$0xff] }
 0x105   : > { %v692_v36 = vadd.f32 %v691_v40, %v3417_v45  ;;  %v4322_v45 = vld [vmem:[#allocation3_spill] sm:$0xff]  ;;  %v830_v40 = vrot.slane %v4318_v12, 2 }
 0x106   : > { %v1193_v8 = vadd.f32 %v1107_v35, %v1037_v4  ;;  %2352 = vmatmul.msk.f32.gmra.mxu1 %vm414_vm1, %v3072_v53  ;;  %v831_v46 = vrot.slane %v4322_v45, 2 }
 0x107   : > { %v1270_v43 = vpop.f32.mrf.mxu0 }
 0x108   : > { %v3559_v47 = vadd.f32 %v1267_v41, %v1193_v8  ;;  %2388 = vmatmul.msk.f32.gmra.mxu2 %vm414_vm1, %v3555_v33  ;;  %2424 = vmatmul.msk.f32.gmra.mxu3 %vm414_vm1, %v4318_v12  ;;  %v3570_v41 = vsel %vm769_vm2, %v826_v56, %v828_v44  ;;  %v4323_v44 = vld [vmem:[#allocation9_spill] sm:$0xff] }
 0x10a   : > { %4317 = vst [vmem:[#allocation29_spill] sm:$0xff] %v3559_v47  ;;  %2460 = vmatmul.msk.f32.gmra.mxu0 %vm414_vm1, %v4320_v28 }
 0x10b   : > { %v954_v61 = vpop.f32.mrf.mxu2  ;;  %v1110_v35 = vpop.f32.mrf.mxu3 }
 0x10c   : > { %v1038_v4 = vadd.f32 %v954_v61, %v692_v36  ;;  %v694_v53 = vpop.f32.mrf.mxu1 }
 0x10d   : > { %v695_v56 = vadd.f32 %v694_v53, %v3437_v62  ;;  %v4326_v62 = vld [vmem:[#allocation10_spill] sm:$0xff] }
 0x10e   : > { %v1194_v8 = vadd.f32 %v1110_v35, %v1038_v4  ;;  %2353 = vmatmul.msk.f32.gmra.mxu1 %vm414_vm1, %v4316_v55  ;;  %v3586_v35 = vsel %vm769_vm2, %v830_v40, %v831_v46  ;;  %v4327_v53 = vld [vmem:[#allocation6_spill] sm:$0xff] }
 0x10f   : > { %v1273_v47 = vpop.f32.mrf.mxu0  ;;  %4324 = vst [vmem:[#allocation2_spill] sm:$0xff] %v3586_v35 }
 0x110   : > { %v3574_v25 = vadd.f32 %v1270_v43, %v1194_v8  ;;  %2389 = vmatmul.msk.f32.gmra.mxu2 %vm414_vm1, %v3570_v41  ;;  %2425 = vmatmul.msk.f32.gmra.mxu3 %vm414_vm1, %v4322_v45 }
 0x112   : > { %4321 = vst [vmem:[#allocation25_spill] sm:$0xff] %v3574_v25  ;;  %2461 = vmatmul.msk.f32.gmra.mxu0 %vm414_vm1, %v4323_v44  ;;  %v833_v44 = vrot.slane %v4327_v53, 2 }
 0x113   : > { %v957_v36 = vpop.f32.mrf.mxu2  ;;  %v1113_v55 = vpop.f32.mrf.mxu3 }
 0x114   : > { %v1039_v61 = vadd.f32 %v957_v36, %v695_v56  ;;  %v697_v43 = vpop.f32.mrf.mxu1  ;;  %v4328_v36 = vld [vmem:[#allocation13_spill] sm:$0xff] }
 0x115   : > { %v698_v56 = vadd.f32 %v697_v43, %v3275_v57  ;;  %v4330_v57 = vld [vmem:[#allocation11_spill] sm:$0xff]  ;;  %v835_v43 = vrot.slane %v4326_v62, 2 }
 0x116   : > { %v1195_v4 = vadd.f32 %v1113_v55, %v1039_v61  ;;  %2354 = vmatmul.msk.f32.gmra.mxu1 %vm414_vm1, %v4318_v12  ;;  %v836_v53 = vrot.slane %v4330_v57, 2 }
 0x117   : > { %v1276_v8 = vpop.f32.mrf.mxu0 }
 0x118   : > { %v3590_v25 = vadd.f32 %v1273_v47, %v1195_v4  ;;  %2390 = vmatmul.msk.f32.gmra.mxu2 %vm414_vm1, %v3586_v35  ;;  %2426 = vmatmul.msk.f32.gmra.mxu3 %vm414_vm1, %v4326_v62  ;;  %v3601_v47 = vsel %vm769_vm2, %v831_v46, %v833_v44  ;;  %v4331_v44 = vld [vmem:[#allocation16_spill] sm:$0xff] }
 0x11a   : > { %4325 = vst [vmem:[#allocation31_spill] sm:$0xff] %v3590_v25  ;;  %2462 = vmatmul.msk.f32.gmra.mxu0 %vm414_vm1, %v4328_v36 }
 0x11b   : > { %v960_v40 = vpop.f32.mrf.mxu2  ;;  %v1116_v55 = vpop.f32.mrf.mxu3 }
 0x11c   : > { %v1040_v61 = vadd.f32 %v960_v40, %v698_v56  ;;  %v700_v12 = vpop.f32.mrf.mxu1 }
 0x11d   : > { %v701_v46 = vadd.f32 %v700_v12, %v3295_v19  ;;  %v4334_v19 = vld [vmem:[#allocation17_spill] sm:$0xff]  ;;  %v4335_v12 = vld [vmem:[#allocation14_spill] sm:$0xff] }
 0x11e   : > { %v1196_v4 = vadd.f32 %v1116_v55, %v1040_v61  ;;  %2355 = vmatmul.msk.f32.gmra.mxu1 %vm414_vm1, %v4322_v45  ;;  %v3617_v55 = vsel %vm769_vm2, %v835_v43, %v836_v53 }
 0x11f   : > { %v1279_v25 = vpop.f32.mrf.mxu0  ;;  %4332 = vst [vmem:[#allocation3_spill] sm:$0xff] %v3617_v55 }
 0x120   : > { %v3605_v35 = vadd.f32 %v1276_v8, %v1196_v4  ;;  %2391 = vmatmul.msk.f32.gmra.mxu2 %vm414_vm1, %v3601_v47  ;;  %2427 = vmatmul.msk.f32.gmra.mxu3 %vm414_vm1, %v4330_v57 }
 0x122   : > { %4329 = vst [vmem:[#allocation5_spill] sm:$0xff] %v3605_v35  ;;  %2463 = vmatmul.msk.f32.gmra.mxu0 %vm414_vm1, %v4331_v44  ;;  %v838_v44 = vrot.slane %v4335_v12, 2 }
 0x123   : > { %v963_v56 = vpop.f32.mrf.mxu2  ;;  %v1119_v45 = vpop.f32.mrf.mxu3 }
 0x124   : > { %v1041_v40 = vadd.f32 %v963_v56, %v701_v46  ;;  %v703_v8 = vpop.f32.mrf.mxu1  ;;  %v4336_v56 = vld [vmem:[#allocation20_spill] sm:$0xff] }
 0x125   : > { %v704_v46 = vadd.f32 %v703_v8, %v3316_v10  ;;  %v4338_v10 = vld [vmem:[#allocation18_spill] sm:$0xff]  ;;  %v840_v8 = vrot.slane %v4334_v19, 2 }
 0x126   : > { %v1197_v61 = vadd.f32 %v1119_v45, %v1041_v40  ;;  %2356 = vmatmul.msk.f32.gmra.mxu1 %vm414_vm1, %v4326_v62  ;;  %v841_v12 = vrot.slane %v4338_v10, 2 }
 0x127   : > { %v1282_v4 = vpop.f32.mrf.mxu0 }
 0x128   : > { %v3621_v35 = vadd.f32 %v1279_v25, %v1197_v61  ;;  %2392 = vmatmul.msk.f32.gmra.mxu2 %vm414_vm1, %v3617_v55  ;;  %2428 = vmatmul.msk.f32.gmra.mxu3 %vm414_vm1, %v4334_v19  ;;  %v3632_v25 = vsel %vm769_vm2, %v836_v53, %v838_v44  ;;  %v4339_v44 = vld [vmem:[#allocation24_spill] sm:$0xff] }
 0x12a   : > { %4333 = vst [vmem:[#allocation10_spill] sm:$0xff] %v3621_v35  ;;  %2464 = vmatmul.msk.f32.gmra.mxu0 %vm414_vm1, %v4336_v56 }
 0x12b   : > { %v966_v43 = vpop.f32.mrf.mxu2  ;;  %v1122_v45 = vpop.f32.mrf.mxu3 }
 0x12c   : > { %v1042_v40 = vadd.f32 %v966_v43, %v704_v46  ;;  %v706_v62 = vpop.f32.mrf.mxu1 }
 0x12d   : > { %v707_v53 = vadd.f32 %v706_v62, %v3336_v21  ;;  %v4342_v21 = vld [vmem:[#allocation26_spill] sm:$0xff] }
 0x12e   : > { %v1198_v61 = vadd.f32 %v1122_v45, %v1042_v40  ;;  %2357 = vmatmul.msk.f32.gmra.mxu1 %vm414_vm1, %v4330_v57  ;;  %v3648_v45 = vsel %vm769_vm2, %v840_v8, %v841_v12  ;;  %v4343_v62 = vld [vmem:[#allocation22_spill] sm:$0xff] }
 0x12f   : > { %v1285_v35 = vpop.f32.mrf.mxu0  ;;  %4340 = vst [vmem:[#allocation13_spill] sm:$0xff] %v3648_v45  ;;  %v4344_v8 = vld [vmem:[#allocation30_spill] sm:$0xff] }
 0x130   : > { %v3636_v55 = vadd.f32 %v1282_v4, %v1198_v61  ;;  %2393 = vmatmul.msk.f32.gmra.mxu2 %vm414_vm1, %v3632_v25  ;;  %2429 = vmatmul.msk.f32.gmra.mxu3 %vm414_vm1, %v4338_v10 }
 0x132   : > { %4337 = vst [vmem:[#allocation6_spill] sm:$0xff] %v3636_v55  ;;  %2465 = vmatmul.msk.f32.gmra.mxu0 %vm414_vm1, %v4339_v44 }
 0x133   : > { %v969_v46 = vpop.f32.mrf.mxu2  ;;  %v1125_v57 = vpop.f32.mrf.mxu3 }
 0x134   : > { %v1043_v43 = vadd.f32 %v969_v46, %v707_v53  ;;  %v709_v4 = vpop.f32.mrf.mxu1  ;;  %v843_v53 = vrot.slane %v4343_v62, 2  ;;  %v845_v62 = vrot.slane %v4342_v21, 2 }
 0x135   : > { %v710_v46 = vadd.f32 %v709_v4, %v3357_v42  ;;  %v4346_v42 = vld [vmem:[#allocation27_spill] sm:$0xff] }
 0x136   : > { %v1199_v40 = vadd.f32 %v1125_v57, %v1043_v43  ;;  %2358 = vmatmul.msk.f32.gmra.mxu1 %vm414_vm1, %v4334_v19  ;;  %v3674_v4 = vld [vmem:[%s2765_s4 + $0x188] sm:$0xff] }
 0x137   : > { %v1288_v61 = vpop.f32.mrf.mxu0 }
 0x138   : > { %v3652_v55 = vadd.f32 %v1285_v35, %v1199_v40  ;;  %2394 = vmatmul.msk.f32.gmra.mxu2 %vm414_vm1, %v3648_v45  ;;  %2430 = vmatmul.msk.f32.gmra.mxu3 %vm414_vm1, %v4342_v21  ;;  %v3663_v40 = vsel %vm769_vm2, %v841_v12, %v843_v53  ;;  %v846_v12 = vrot.slane %v4346_v42, 2 }
 0x13a   : > { %4341 = vst [vmem:[#allocation11_spill] sm:$0xff] %v3652_v55  ;;  %2466 = vmatmul.msk.f32.gmra.mxu0 %vm414_vm1, %v4344_v8 }
 0x13b   : > { %v972_v57 = vpop.f32.mrf.mxu2  ;;  %v1128_v19 = vpop.f32.mrf.mxu3 }
 0x13c   : > { %v1044_v43 = vadd.f32 %v972_v57, %v710_v46  ;;  %v712_v35 = vpop.f32.mrf.mxu1  ;;  %v3680_v46 = vld [vmem:[%s2765_s4 + $0x180] sm:$0xff]  ;;  %v1222_v57 = vrot.slane %v3674_v4, 1 }
 0x13d   : > { %v713_v53 = vadd.f32 %v712_v35, %v3383_v0  ;;  %4347 = vst [vmem:[#allocation14_spill] sm:$0xff] %v3680_v46 }
 0x13e   : > { %v1200_v55 = vadd.f32 %v1128_v19, %v1044_v43  ;;  %2359 = vmatmul.msk.f32.gmra.mxu1 %vm414_vm1, %v4338_v10 }
 0x13f   : > { %v1291_v44 = vpop.f32.mrf.mxu0 }
 0x140   : > { %v3667_v45 = vadd.f32 %v1288_v61, %v1200_v55  ;;  %2395 = vmatmul.msk.f32.gmra.mxu2 %vm414_vm1, %v3663_v40  ;;  %2431 = vmatmul.msk.f32.gmra.mxu3 %vm414_vm1, %v4346_v42  ;;  %v1221_v61 = vrot.slane %v3680_v46, 1 }
 0x142   : > { %4345 = vst [vmem:[#allocation17_spill] sm:$0xff] %v3667_v45  ;;  %2467 = vmatmul.msk.f32.gmra.mxu0 %vm414_vm1, %v3154_v30  ;;  %v3687_v45 = vsel %vm769_vm2, %v845_v62, %v846_v12  ;;  %v3692_v35 = vsel %vm328_vm0, %v1221_v61, %v1222_v57  ;;  %v848_v62 = vrot.slane %v3127_v38, 2 }
 0x143   : > { %v975_v55 = vpop.f32.mrf.mxu2  ;;  %v1131_v10 = vpop.f32.mrf.mxu3 }
 0x144   : > { %v1045_v19 = vadd.f32 %v975_v55, %v713_v53  ;;  %v715_v43 = vpop.f32.mrf.mxu1  ;;  %v3701_v53 = vld [vmem:[%s2765_s4 + $0x190] sm:$0x3] }
 0x145   : > { %v716_v55 = vadd.f32 %v715_v43, %v3410_v22 }
 0x146   : > { %v1201_v8 = vadd.f32 %v1131_v10, %v1045_v19  ;;  %2360 = vmatmul.msk.f32.gmra.mxu1 %vm414_vm1, %v4342_v21  ;;  %v3709_v19 = vsel %vm769_vm2, %v846_v12, %v848_v62 }
 0x147   : > { %v1294_v0 = vpop.f32.mrf.mxu0 }
 0x148   : > { %v3694_v30 = vadd.f32 %v1291_v44, %v1201_v8  ;;  %2396 = vmatmul.msk.f32.gmra.mxu2 %vm414_vm1, %v3687_v45  ;;  %2432 = vmatmul.msk.f32.gmra.mxu3 %vm414_vm1, %v3680_v46  ;;  %v1224_v44 = vrot.slane %v3701_v53, 1 }
 0x14a   : > { %4348 = vst [vmem:[#allocation20_spill] sm:$0xff] %v3694_v30  ;;  %2468 = vmatmul.msk.f32.gmra.mxu0 %vm414_vm1, %v3692_v35  ;;  %v3714_v38 = vsel %vm328_vm0, %v1222_v57, %v1224_v44 }
 0x14b   : > { %v978_v21 = vpop.f32.mrf.mxu2  ;;  %v1134_v10 = vpop.f32.mrf.mxu3 }
 0x14c   : > { %v1046_v8 = vadd.f32 %v978_v21, %v716_v55  ;;  %v718_v61 = vpop.f32.mrf.mxu1 }
 0x14d   : > { %v719_v43 = vadd.f32 %v718_v61, %v3430_v13 }
 0x14e   : > { %v1202_v30 = vadd.f32 %v1134_v10, %v1046_v8  ;;  %2361 = vmatmul.msk.f32.gmra.mxu1 %vm414_vm1, %v4346_v42 }
 0x14f   : > { %v1297_v46 = vpop.f32.mrf.mxu0 }
 0x150   : > { %v3716_v22 = vadd.f32 %v1294_v0, %v1202_v30  ;;  %2397 = vmatmul.msk.f32.gmra.mxu2 %vm414_vm1, %v3709_v19  ;;  %2433 = vmatmul.msk.f32.gmra.mxu3 %vm414_vm1, %v3674_v4 }
 0x152   : > { %2469 = vmatmul.msk.f32.gmra.mxu0 %vm414_vm1, %v3714_v38 }
 0x153   : > { %v981_v12 = vpop.f32.mrf.mxu2  ;;  %v1137_v62 = vpop.f32.mrf.mxu3 }
 0x154   : > { %v1047_v42 = vadd.f32 %v981_v12, %v719_v43  ;;  %v721_v55 = vpop.f32.mrf.mxu1 }
 0x155   : > { %v722_v13 = vadd.f32 %v721_v55, %v3291_v32 }
 0x156   : > { %v1203_v21 = vadd.f32 %v1137_v62, %v1047_v42  ;;  %2474 = vmatmul.msk.f32.vlgmr.msra.gmra.mxu1 %vm414_vm1, %v3189_v34 }
 0x157   : > { %v1300_v30 = vpop.f32.mrf.mxu0 }
 0x158   : > { %v3727_v57 = vadd.f32 %v1297_v46, %v1203_v21  ;;  %2510 = vmatmul.msk.f32.vlgmr.msra.gmra.mxu2 %vm414_vm1, %v2995_v51  ;;  %2546 = vmatmul.msk.f32.vlgmr.msra.gmra.mxu3 %vm414_vm1, %v3032_v18 }
 0x15a   : > { %2582 = vmatmul.msk.f32.vlgmr.msra.gmra.mxu0 %vm414_vm1, %v3214_v7 }
 0x15b   : > { %v984_v0 = vpop.f32.mrf.mxu2  ;;  %v1140_v10 = vpop.f32.mrf.mxu3 }
 0x15c   : > { %v1048_v44 = vadd.f32 %v984_v0, %v722_v13  ;;  %v724_v8 = vpop.f32.mrf.mxu1 }
 0x15d   : > { %v725_v51 = vadd.f32 %v724_v8, %v3312_v23 }
 0x15e   : > { %v1204_v61 = vadd.f32 %v1140_v10, %v1048_v44  ;;  %2475 = vmatmul.msk.f32.gmra.mxu1 %vm414_vm1, %v3201_v6 }
 0x15f   : > { %v1303_v34 = vpop.f32.mrf.mxu0 }
 0x160   : > { %v3738_v46 = vadd.f32 %v1300_v30, %v1204_v61  ;;  %2511 = vmatmul.msk.f32.gmra.mxu2 %vm414_vm1, %v2998_v52  ;;  %2547 = vmatmul.msk.f32.gmra.mxu3 %vm414_vm1, %v3086_v50 }
 0x162   : > { %2583 = vmatmul.msk.f32.gmra.mxu0 %vm414_vm1, %v3235_v60 }
 0x163   : > { %v987_v18 = vpop.f32.mrf.mxu2  ;;  %v1143_v32 = vpop.f32.mrf.mxu3 }
 0x164   : > { %v1049_v43 = vadd.f32 %v987_v18, %v725_v51  ;;  %v727_v12 = vpop.f32.mrf.mxu1 }
 0x165   : > { %v728_v52 = vadd.f32 %v727_v12, %v3332_v26  ;;  %v2656_v12 = vld [vmem:[%s2765_s4 + $0x68] sm:$0xff] }
 0x166   : > { %v1205_v62 = vadd.f32 %v1143_v32, %v1049_v43  ;;  %2476 = vmatmul.msk.f32.gmra.mxu1 %vm414_vm1, %v3214_v7 }
 0x167   : > { %v1306_v6 = vpop.f32.mrf.mxu0 }
 0x168   : > { %v3749_v42 = vadd.f32 %v1303_v34, %v1205_v62  ;;  %2512 = vmatmul.msk.f32.gmra.mxu2 %vm414_vm1, %v3095_v20  ;;  %2548 = vmatmul.msk.f32.gmra.mxu3 %vm414_vm1, %v3132_v16 }
 0x16a   : > { %2584 = vmatmul.msk.f32.gmra.mxu0 %vm414_vm1, %v3251_v54 }
 0x16b   : > { %v990_v50 = vpop.f32.mrf.mxu2  ;;  %v1146_v23 = vpop.f32.mrf.mxu3 }
 0x16c   : > { %v1050_v55 = vadd.f32 %v990_v50, %v728_v52  ;;  %v730_v21 = vpop.f32.mrf.mxu1 }
 0x16d   : > { %v731_v16 = vadd.f32 %v730_v21, %v3353_v59  ;;  %v4349_v59 = vld [vmem:[#allocation34_spill] sm:$0xff] }
 0x16e   : > { %v1206_v30 = vadd.f32 %v1146_v23, %v1050_v55  ;;  %2477 = vmatmul.msk.f32.gmra.mxu1 %vm414_vm1, %v3235_v60 }
 0x16f   : > { %v1309_v7 = vpop.f32.mrf.mxu0 }
 0x170   : > { %v3760_v13 = vadd.f32 %v1306_v6, %v1206_v30  ;;  %2513 = vmatmul.msk.f32.gmra.mxu2 %vm414_vm1, %v3098_v58  ;;  %2549 = vmatmul.msk.f32.gmra.mxu3 %vm414_vm1, %v3159_v49  ;;  %v2655_v58 = vld [vmem:[%s2765_s4 + $0x60] sm:$0xff]  ;;  %v4352_v6 = vld [vmem:[#allocation36_spill] sm:$0xff] }
 0x172   : > { %2585 = vmatmul.msk.f32.gmra.mxu0 %vm414_vm1, %v3263_v37 }
 0x173   : > { %v993_v20 = vpop.f32.mrf.mxu2  ;;  %v1149_v26 = vpop.f32.mrf.mxu3 }
 0x174   : > { %v1051_v0 = vadd.f32 %v993_v20, %v731_v16  ;;  %v733_v10 = vpop.f32.mrf.mxu1  ;;  %v4353_v16 = vld [vmem:[#allocation12_spill] sm:$0xff] }
 0x175   : > { %v734_v49 = vadd.f32 %v733_v10, %v3379_v31  ;;  %v4351_v31 = vld [vmem:[#allocation45_spill] sm:$0xff]  ;;  %v4354_v20 = vld [vmem:[#allocation48_spill] sm:$0xff] }
 0x176   : > { %v1207_v44 = vadd.f32 %v1149_v26, %v1051_v0  ;;  %2478 = vmatmul.msk.f32.gmra.mxu1 %vm414_vm1, %v3251_v54  ;;  %v4355_v0 = vld [vmem:[#allocation38_spill] sm:$0xff] }
 0x177   : > { %v1312_v60 = vpop.f32.mrf.mxu0 }
 0x178   : > { %v3771_v8 = vadd.f32 %v1309_v7, %v1207_v44  ;;  %2514 = vmatmul.msk.f32.gmra.mxu2 %vm414_vm1, %v2655_v58  ;;  %2550 = vmatmul.msk.f32.gmra.mxu3 %vm414_vm1, %v2810_v24  ;;  %v4350_v24 = vld [vmem:[#allocation7_spill] sm:$0xff]  ;;  %v2657_v7 = vld [vmem:[%s2765_s4 + $0x78] sm:$0xff] }
 0x17a   : > { %2586 = vmatmul.msk.f32.gmra.mxu0 %vm414_vm1, %v4349_v59 }
 0x17b   : > { %v996_v61 = vpop.f32.mrf.mxu2  ;;  %v1152_v34 = vpop.f32.mrf.mxu3 }
 0x17c   : > { %v1052_v51 = vadd.f32 %v996_v61, %v734_v49  ;;  %v736_v18 = vpop.f32.mrf.mxu1 }
 0x17d   : > { %v737_v62 = vadd.f32 %v736_v18, %v4351_v31  ;;  %v4357_v18 = vld [vmem:[#allocation51_spill] sm:$0xff] }
 0x17e   : > { %v1208_v54 = vadd.f32 %v1152_v34, %v1052_v51  ;;  %2479 = vmatmul.msk.f32.gmra.mxu1 %vm414_vm1, %v3263_v37  ;;  %v2658_v34 = vld [vmem:[%s2765_s4 + $0x80] sm:$0xff]  ;;  %v4356_v51 = vld [vmem:[#allocation15_spill] sm:$0xff] }
 0x17f   : > { %v1315_v32 = vpop.f32.mrf.mxu0 }
 0x180   : > { %v3782_v43 = vadd.f32 %v1312_v60, %v1208_v54  ;;  %2515 = vmatmul.msk.f32.gmra.mxu2 %vm414_vm1, %v2656_v12  ;;  %2551 = vmatmul.msk.f32.gmra.mxu3 %vm414_vm1, %v4350_v24 }
 0x182   : > { %2587 = vmatmul.msk.f32.gmra.mxu0 %vm414_vm1, %v4352_v6 }
 0x183   : > { %v999_v52 = vpop.f32.mrf.mxu2  ;;  %v1155_v50 = vpop.f32.mrf.mxu3 }
 0x184   : > { %v1053_v23 = vadd.f32 %v999_v52, %v737_v62  ;;  %v739_v55 = vpop.f32.mrf.mxu1 }
 0x185   : > { %v740_v26 = vadd.f32 %v739_v55, %v4354_v20  ;;  %v4359_v55 = vld [vmem:[#allocation19_spill] sm:$0xff] }
 0x186   : > { %v1209_v37 = vadd.f32 %v1155_v50, %v1053_v23  ;;  %2480 = vmatmul.msk.f32.gmra.mxu1 %vm414_vm1, %v4349_v59  ;;  %v2659_v23 = vld [vmem:[%s2765_s4 + $0x90] sm:$0xff] }
 0x187   : > { %v1318_v21 = vpop.f32.mrf.mxu0 }
 0x188   : > { %v3793_v30 = vadd.f32 %v1315_v32, %v1209_v37  ;;  %2516 = vmatmul.msk.f32.gmra.mxu2 %vm414_vm1, %v2657_v7  ;;  %2552 = vmatmul.msk.f32.gmra.mxu3 %vm414_vm1, %v4353_v16  ;;  %v4358_v32 = vld [vmem:[#allocation40_spill] sm:$0xff]  ;;  %v4360_v37 = vld [vmem:[#allocation35_spill] sm:$0xff]  ;;  %v4361_v7 = vld [vmem:[#allocation42_spill] sm:$0xff] }
 0x18a   : > { %2588 = vmatmul.msk.f32.gmra.mxu0 %vm414_vm1, %v4355_v0 }
 0x18b   : > { %v1002_v10 = vpop.f32.mrf.mxu2  ;;  %v1158_v44 = vpop.f32.mrf.mxu3 }
 0x18c   : > { %v1054_v60 = vadd.f32 %v1002_v10, %v740_v26  ;;  %v742_v58 = vpop.f32.mrf.mxu1 }
 0x18d   : > { %v743_v54 = vadd.f32 %v742_v58, %v4357_v18  ;;  %v2660_v58 = vld [vmem:[%s2765_s4 + $0x98] sm:$0xff] }
 0x18e   : > { %v1210_v49 = vadd.f32 %v1158_v44, %v1054_v60  ;;  %2481 = vmatmul.msk.f32.gmra.mxu1 %vm414_vm1, %v4352_v6 }
 0x18f   : > { %v1321_v59 = vpop.f32.mrf.mxu0 }
 0x190   : > { %v3804_v61 = vadd.f32 %v1318_v21, %v1210_v49  ;;  %2517 = vmatmul.msk.f32.gmra.mxu2 %vm414_vm1, %v2658_v34  ;;  %2553 = vmatmul.msk.f32.gmra.mxu3 %vm414_vm1, %v4356_v51  ;;  %v4362_v49 = vld [vmem:[#allocation23_spill] sm:$0xff]  ;;  %v4364_v51 = vld [vmem:[#allocation44_spill] sm:$0xff] }
 0x192   : > { %2589 = vmatmul.msk.f32.gmra.mxu0 %vm414_vm1, %v4358_v32 }
 0x193   : > { %v1005_v12 = vpop.f32.mrf.mxu2  ;;  %v1161_v24 = vpop.f32.mrf.mxu3 }
 0x194   : > { %v1055_v31 = vadd.f32 %v1005_v12, %v743_v54  ;;  %v745_v62 = vpop.f32.mrf.mxu1 }
 0x195   : > { %v746_v21 = vadd.f32 %v745_v62, %v4360_v37  ;;  %v4367_v37 = vld [vmem:[#allocation47_spill] sm:$0xff] }
 0x196   : > { %v1211_v6 = vadd.f32 %v1161_v24, %v1055_v31  ;;  %2482 = vmatmul.msk.f32.gmra.mxu1 %vm414_vm1, %v4355_v0 }
 0x197   : > { %v1324_v52 = vpop.f32.mrf.mxu0 }
 0x198   : > { %v3815_v50 = vadd.f32 %v1321_v59, %v1211_v6  ;;  %2518 = vmatmul.msk.f32.gmra.mxu2 %vm414_vm1, %v2659_v23  ;;  %2554 = vmatmul.msk.f32.gmra.mxu3 %vm414_vm1, %v4359_v55  ;;  %v4363_v59 = vld [vmem:[#allocation37_spill] sm:$0xff]  ;;  %v2661_v6 = vld [vmem:[%s2765_s4 + $0xa8] sm:$0xff] }
 0x199   : > { %v4366_v23 = vld [vmem:[#allocation39_spill] sm:$0xff] }
 0x19a   : > { %2590 = vmatmul.msk.f32.gmra.mxu0 %vm414_vm1, %v4361_v7 }
 0x19b   : > { %v1008_v16 = vpop.f32.mrf.mxu2  ;;  %v1164_v20 = vpop.f32.mrf.mxu3 }
 0x19c   : > { %v1056_v26 = vadd.f32 %v1008_v16, %v746_v21  ;;  %v748_v10 = vpop.f32.mrf.mxu1 }
 0x19d   : > { %v749_v34 = vadd.f32 %v748_v10, %v4363_v59 }
 0x19e   : > { %v1212_v0 = vadd.f32 %v1164_v20, %v1056_v26  ;;  %2483 = vmatmul.msk.f32.gmra.mxu1 %vm414_vm1, %v4358_v32 }
 0x19f   : > { %v1327_v44 = vpop.f32.mrf.mxu0 }
 0x1a0   : > { %v3826_v60 = vadd.f32 %v1324_v52, %v1212_v0  ;;  %2519 = vmatmul.msk.f32.gmra.mxu2 %vm414_vm1, %v2660_v58  ;;  %2555 = vmatmul.msk.f32.gmra.mxu3 %vm414_vm1, %v4362_v49  ;;  %v4365_v52 = vld [vmem:[#allocation28_spill] sm:$0xff]  ;;  %v4369_v49 = vld [vmem:[#allocation41_spill] sm:$0xff] }
 0x1a1   : > { %v4368_v58 = vld [vmem:[#allocation32_spill] sm:$0xff] }
 0x1a2   : > { %2591 = vmatmul.msk.f32.gmra.mxu0 %vm414_vm1, %v4364_v51 }
 0x1a3   : > { %v1011_v18 = vpop.f32.mrf.mxu2  ;;  %v1167_v54 = vpop.f32.mrf.mxu3 }
 0x1a4   : > { %v1057_v12 = vadd.f32 %v1011_v18, %v749_v34  ;;  %v751_v24 = vpop.f32.mrf.mxu1  ;;  %v4370_v34 = vld [vmem:[#allocation50_spill] sm:$0xff] }
 0x1a5   : > { %v752_v55 = vadd.f32 %v751_v24, %v4366_v23  ;;  %v4372_v23 = vld [vmem:[#allocation43_spill] sm:$0xff] }
 0x1a6   : > { %v1213_v32 = vadd.f32 %v1167_v54, %v1057_v12  ;;  %2484 = vmatmul.msk.f32.gmra.mxu1 %vm414_vm1, %v4361_v7 }
 0x1a7   : > { %v1330_v31 = vpop.f32.mrf.mxu0 }
 0x1a8   : > { %v3837_v62 = vadd.f32 %v1327_v44, %v1213_v32  ;;  %2520 = vmatmul.msk.f32.gmra.mxu2 %vm414_vm1, %v2661_v6  ;;  %2556 = vmatmul.msk.f32.gmra.mxu3 %vm414_vm1, %v4365_v52  ;;  %v2662_v44 = vld [vmem:[%s2765_s4 + $0xb0] sm:$0xff]  ;;  %v2663_v6 = vld [vmem:[%s2765_s4 + $0xc0] sm:$0xff] }
 0x1a9   : > { %v4371_v52 = vld [vmem:[#allocation4_spill] sm:$0xff] }
 0x1aa   : > { %2592 = vmatmul.msk.f32.gmra.mxu0 %vm414_vm1, %v4367_v37 }
 0x1ab   : > { %v1014_v21 = vpop.f32.mrf.mxu2  ;;  %v1170_v16 = vpop.f32.mrf.mxu3 }
 0x1ac   : > { %v1058_v20 = vadd.f32 %v1014_v21, %v752_v55  ;;  %v754_v26 = vpop.f32.mrf.mxu1  ;;  %v4373_v21 = vld [vmem:[#allocation53_spill] sm:$0xff] }
 0x1ad   : > { %v755_v59 = vadd.f32 %v754_v26, %v4369_v49  ;;  %v4374_v49 = vld [vmem:[#allocation8_spill] sm:$0xff] }
 0x1ae   : > { %v1214_v7 = vadd.f32 %v1170_v16, %v1058_v20  ;;  %2485 = vmatmul.msk.f32.gmra.mxu1 %vm414_vm1, %v4364_v51 }
 0x1af   : > { %v1333_v10 = vpop.f32.mrf.mxu0 }
 0x1b0   : > { %v3848_v0 = vadd.f32 %v1330_v31, %v1214_v7  ;;  %2521 = vmatmul.msk.f32.gmra.mxu2 %vm414_vm1, %v2662_v44  ;;  %2557 = vmatmul.msk.f32.gmra.mxu3 %vm414_vm1, %v4368_v58  ;;  %v2664_v58 = vld [vmem:[%s2765_s4 + $0xc8] sm:$0xff] }
 0x1b2   : > { %2593 = vmatmul.msk.f32.gmra.mxu0 %vm414_vm1, %v4370_v34 }
 0x1b3   : > { %v1017_v18 = vpop.f32.mrf.mxu2  ;;  %v1173_v54 = vpop.f32.mrf.mxu3 }
 0x1b4   : > { %v1059_v12 = vadd.f32 %v1017_v18, %v755_v59  ;;  %v757_v24 = vpop.f32.mrf.mxu1  ;;  %v4375_v59 = vld [vmem:[#allocation46_spill] sm:$0xff] }
 0x1b5   : > { %v758_v55 = vadd.f32 %v757_v24, %v4372_v23  ;;  %v4376_v23 = vld [vmem:[#allocation49_spill] sm:$0xff] }
 0x1b6   : > { %v1215_v51 = vadd.f32 %v1173_v54, %v1059_v12  ;;  %2486 = vmatmul.msk.f32.gmra.mxu1 %vm414_vm1, %v4367_v37 }
 0x1b7   : > { %v1336_v32 = vpop.f32.mrf.mxu0 }
 0x1b8   : > { %v3859_v31 = vadd.f32 %v1333_v10, %v1215_v51  ;;  %2522 = vmatmul.msk.f32.gmra.mxu2 %vm414_vm1, %v2663_v6  ;;  %2558 = vmatmul.msk.f32.gmra.mxu3 %vm414_vm1, %v4371_v52  ;;  %v2665_v52 = vld [vmem:[%s2765_s4 + $0xd8] sm:$0xff] }
 0x1ba   : > { %2594 = vmatmul.msk.f32.gmra.mxu0 %vm414_vm1, %v4373_v21 }
 0x1bb   : > { %v1020_v16 = vpop.f32.mrf.mxu2  ;;  %v1176_v20 = vpop.f32.mrf.mxu3 }
 0x1bc   : > { %v1060_v26 = vadd.f32 %v1020_v16, %v758_v55  ;;  %v760_v7 = vpop.f32.mrf.mxu1 }
 0x1bd   : > { %v761_v18 = vadd.f32 %v760_v7, %v4375_v59 }
 0x1be   : > { %v1216_v37 = vadd.f32 %v1176_v20, %v1060_v26  ;;  %2487 = vmatmul.msk.f32.gmra.mxu1 %vm414_vm1, %v4370_v34 }
 0x1bf   : > { %v1339_v10 = vpop.f32.mrf.mxu0 }
 0x1c0   : > { %v3870_v44 = vadd.f32 %v1336_v32, %v1216_v37  ;;  %2523 = vmatmul.msk.f32.gmra.mxu2 %vm414_vm1, %v2664_v58  ;;  %2559 = vmatmul.msk.f32.gmra.mxu3 %vm414_vm1, %v4374_v49  ;;  %v2666_v58 = vld [vmem:[%s2765_s4 + $0xe0] sm:$0xff] }
 0x1c2   : > { %2595 = vmatmul.msk.f32.gmra.mxu0 %vm414_vm1, %v3465_v11 }
 0x1c3   : > { %v1023_v54 = vpop.f32.mrf.mxu2  ;;  %v1179_v12 = vpop.f32.mrf.mxu3 }
 0x1c4   : > { %v1061_v24 = vadd.f32 %v1023_v54, %v761_v18  ;;  %v763_v51 = vpop.f32.mrf.mxu1 }
 0x1c5   : > { %v764_v55 = vadd.f32 %v763_v51, %v4376_v23 }
 0x1c6   : > { %v1217_v34 = vadd.f32 %v1179_v12, %v1061_v24  ;;  %2488 = vmatmul.msk.f32.gmra.mxu1 %vm414_vm1, %v4373_v21 }
 0x1c7   : > { %v1342_v32 = vpop.f32.mrf.mxu0 }
 0x1c8   : > { %v3881_v6 = vadd.f32 %v1339_v10, %v1217_v34  ;;  %2524 = vmatmul.msk.f32.gmra.mxu2 %vm414_vm1, %v2665_v52  ;;  %2560 = vmatmul.msk.f32.gmra.mxu3 %vm414_vm1, %v2915_v1  ;;  %v4377_v1 = vld [vmem:[#allocation52_spill] sm:$0xff] }
 0x1c9   : > { %v2667_v34 = vld [vmem:[%s2765_s4 + $0xf0] sm:$0xff] }
 0x1ca   : > { %2596 = vmatmul.msk.f32.gmra.mxu0 %vm414_vm1, %v3481_v15 }
 0x1cb   : > { %v1026_v16 = vpop.f32.mrf.mxu2  ;;  %v1182_v20 = vpop.f32.mrf.mxu3 }
 0x1cc   : > { %v1062_v26 = vadd.f32 %v1026_v16, %v764_v55  ;;  %v766_v7 = vpop.f32.mrf.mxu1  ;;  %v3915_v16 = vld [vmem:[%s4183_s2] ss:$0 sm:$0xff] }
 0x1cd   : > { %v767_v49 = vadd.f32 %v766_v7, %v4377_v1 }
 0x1ce   : > { %v1218_v21 = vadd.f32 %v1182_v20, %v1062_v26  ;;  %2489 = vmatmul.msk.f32.gmra.mxu1 %vm414_vm1, %v3465_v11  ;;  %v2668_v26 = vld [vmem:[%s2765_s4 + $0xf8] sm:$0xff] }
 0x1cf   : > { %v1345_v37 = vpop.f32.mrf.mxu0 }
 0x1d0   : > { %v3892_v10 = vadd.f32 %v1342_v32, %v1218_v21  ;;  %2525 = vmatmul.msk.f32.gmra.mxu2 %vm414_vm1, %v2666_v58  ;;  %2561 = vmatmul.msk.f32.gmra.mxu3 %vm414_vm1, %v2960_v27 }
 0x1d2   : > { %2597 = vmatmul.msk.f32.gmra.mxu0 %vm414_vm1, %v3496_v29 }
 0x1d3   : > { %v1029_v59 = vpop.f32.mrf.mxu2  ;;  %v1185_v18 = vpop.f32.mrf.mxu3 }
 0x1d4   : > { %v1063_v54 = vadd.f32 %v1029_v59, %v767_v49  ;;  %v1411_v12 = vpop.f32.mrf.mxu1 }
 0x1d5   : > { %v1507_v27 = vadd.f32 %v1411_v12, %v3469_v39 }
 0x1d6   : > { %v1219_v11 = vadd.f32 %v1185_v18, %v1063_v54  ;;  %2490 = vmatmul.msk.f32.gmra.mxu1 %vm414_vm1, %v3481_v15  ;;  %v2669_v18 = vld [vmem:[%s2765_s4 + $0x108] sm:$0xff] }
 0x1d7   : > { %v1886_v24 = vpop.f32.mrf.mxu0 }
 0x1d8   : > { %v3903_v51 = vadd.f32 %v1345_v37, %v1219_v11  ;;  %2526 = vmatmul.msk.f32.gmra.mxu2 %vm414_vm1, %v2667_v34  ;;  %2562 = vmatmul.msk.f32.gmra.mxu3 %vm414_vm1, %v3015_v63 }
 0x1da   : > { %2598 = vmatmul.msk.f32.gmra.mxu0 %vm414_vm1, %v3512_v2 }
 0x1db   : > { %v1567_v32 = vpop.f32.mrf.mxu2  ;;  %v1727_v52 = vpop.f32.mrf.mxu3 }
 0x1dc   : > { %v1663_v23 = vadd.f32 %v1567_v32, %v1507_v27  ;;  %v1414_v15 = vpop.f32.mrf.mxu1 }
 0x1dd   : > { %v1508_v39 = vadd.f32 %v1414_v15, %v3485_v48  ;;  %v4378_v15 = vld [vmem:[#allocation54_spill] sm:$0xff] }
 0x1de   : > { %v1823_v55 = vadd.f32 %v1727_v52, %v1663_v23  ;;  %2491 = vmatmul.msk.f32.gmra.mxu1 %vm414_vm1, %v3496_v29  ;;  %v2670_v23 = vld [vmem:[%s2765_s4 + $0x110] sm:$0xff] }
 0x1df   : > { %v1889_v20 = vpop.f32.mrf.mxu0 }
 0x1e0   : > { %v1982_v63 = vadd.f32 %v1886_v24, %v1823_v55  ;;  %2527 = vmatmul.msk.f32.gmra.mxu2 %vm414_vm1, %v2668_v26  ;;  %2563 = vmatmul.msk.f32.gmra.mxu3 %vm414_vm1, %v3060_v5 }
 0x1e2   : > { %v2018_v7 = vadd.f32 %v3915_v16, %v1982_v63  ;;  %2599 = vmatmul.msk.f32.gmra.mxu0 %vm414_vm1, %v3536_v9 }
 0x1e3   : > { %v1570_v21 = vpop.f32.mrf.mxu2  ;;  %v1730_v37 = vpop.f32.mrf.mxu3 }
 0x1e4   : > { %vm2050_vm3 = vcmp.ge.f32.partialorder %v2018_v7, 0.0  ;;  %v2082_v29 = vmul.f32 0.2, %v2018_v7  ;;  %v1664_v5 = vadd.f32 %v1570_v21, %v1508_v39  ;;  %v1417_v58 = vpop.f32.mrf.mxu1 }
 0x1e5   : > { %v1509_v54 = vadd.f32 %v1417_v58, %v3500_v3  ;;  %v4379_v58 = vld [vmem:[#allocation21_spill] sm:$0xff] }
 0x1e6   : > { %v2114_v48 = vsel %vm2050_vm3, %v2018_v7, %v2082_v29  ;;  %v1824_v1 = vadd.f32 %v1730_v37, %v1664_v5  ;;  %2492 = vmatmul.msk.f32.gmra.mxu1 %vm414_vm1, %v3512_v2  ;;  %v2671_v5 = vld [vmem:[%s2765_s4 + $0x120] sm:$0xff] }
 0x1e7   : > { %2147 = vst.msk [vmem:[%s3931_s30] sm:$0xff] %vm2146_vm4, %v2114_v48  ;;  %v1892_v49 = vpop.f32.mrf.mxu0 }
 0x1e8   : > { %v1983_v59 = vadd.f32 %v1889_v20, %v1824_v1  ;;  %2528 = vmatmul.msk.f32.gmra.mxu2 %vm414_vm1, %v2669_v18  ;;  %2564 = vmatmul.msk.f32.gmra.mxu3 %vm414_vm1, %v4314_v14 }
 0x1ea   : > { %v2019_v12 = vadd.f32 %v3915_v16, %v1983_v59  ;;  %2600 = vmatmul.msk.f32.gmra.mxu0 %vm414_vm1, %v3555_v33 }
 0x1eb   : > { %v1573_v11 = vpop.f32.mrf.mxu2  ;;  %v1733_v24 = vpop.f32.mrf.mxu3 }
 0x1ec   : > { %vm2051_vm5 = vcmp.ge.f32.partialorder %v2019_v12, 0.0  ;;  %v2083_v2 = vmul.f32 0.2, %v2019_v12  ;;  %v1665_v34 = vadd.f32 %v1573_v11, %v1509_v54  ;;  %v1420_v27 = vpop.f32.mrf.mxu1 }
 0x1ed   : > { %v1510_v55 = vadd.f32 %v1420_v27, %v4378_v15  ;;  %v4381_v27 = vld [vmem:[#allocation9_spill] sm:$0xff] }
 0x1ee   : > { %v2115_v32 = vsel %vm2051_vm5, %v2019_v12, %v2083_v2  ;;  %v1825_v52 = vadd.f32 %v1733_v24, %v1665_v34  ;;  %2493 = vmatmul.msk.f32.gmra.mxu1 %vm414_vm1, %v3536_v9  ;;  %v2672_v34 = vld [vmem:[%s2765_s4 + $0x128] sm:$0xff] }
 0x1ef   : > { %2148 = vst.msk [vmem:[%s3931_s30 + $0x8] sm:$0xff] %vm2146_vm4, %v2115_v32  ;;  %v1895_v14 = vpop.f32.mrf.mxu0  ;;  %v4382_v32 = vld [vmem:[#allocation29_spill] sm:$0xff] }
 0x1f0   : > { %v1984_v3 = vadd.f32 %v1892_v49, %v1825_v52  ;;  %2529 = vmatmul.msk.f32.gmra.mxu2 %vm414_vm1, %v2670_v23  ;;  %2565 = vmatmul.msk.f32.gmra.mxu3 %vm414_vm1, %v3151_v17  ;;  %v4380_v49 = vld [vmem:[#allocation2_spill] sm:$0xff] }
 0x1f2   : > { %v2020_v20 = vadd.f32 %v3915_v16, %v1984_v3  ;;  %2601 = vmatmul.msk.f32.gmra.mxu0 %vm414_vm1, %v3570_v41 }
 0x1f3   : > { %v1576_v63 = vpop.f32.mrf.mxu2  ;;  %v1736_v26 = vpop.f32.mrf.mxu3 }
 0x1f4   : > { %vm2052_vm6 = vcmp.ge.f32.partialorder %v2020_v20, 0.0  ;;  %v2084_v9 = vmul.f32 0.2, %v2020_v20  ;;  %v1666_v39 = vadd.f32 %v1576_v63, %v1510_v55  ;;  %v1423_v7 = vpop.f32.mrf.mxu1 }
 0x1f5   : > { %v1511_v48 = vadd.f32 %v1423_v7, %v4379_v58  ;;  %v4383_v7 = vld [vmem:[#allocation25_spill] sm:$0xff] }
 0x1f6   : > { %v2116_v21 = vsel %vm2052_vm6, %v2020_v20, %v2084_v9  ;;  %v1826_v37 = vadd.f32 %v1736_v26, %v1666_v39  ;;  %2494 = vmatmul.msk.f32.gmra.mxu1 %vm414_vm1, %v3555_v33  ;;  %v2673_v39 = vld [vmem:[%s2765_s4 + $0x138] sm:$0xff] }
 0x1f7   : > { %2149 = vst.msk [vmem:[%s3931_s30 + $0x10] sm:$0xff] %vm2146_vm4, %v2116_v21  ;;  %v1898_v17 = vpop.f32.mrf.mxu0 }
 0x1f8   : > { %v1985_v29 = vadd.f32 %v1895_v14, %v1826_v37  ;;  %2530 = vmatmul.msk.f32.gmra.mxu2 %vm414_vm1, %v2671_v5  ;;  %2566 = vmatmul.msk.f32.gmra.mxu3 %vm414_vm1, %v4320_v28 }
 0x1fa   : > { %v2021_v1 = vadd.f32 %v3915_v16, %v1985_v29  ;;  %2602 = vmatmul.msk.f32.gmra.mxu0 %vm414_vm1, %v4380_v49 }
 0x1fb   : > { %v1579_v59 = vpop.f32.mrf.mxu2  ;;  %v1739_v18 = vpop.f32.mrf.mxu3 }
 0x1fc   : > { %vm2053_vm7 = vcmp.ge.f32.partialorder %v2021_v1, 0.0  ;;  %v2085_v33 = vmul.f32 0.2, %v2021_v1  ;;  %v1667_v54 = vadd.f32 %v1579_v59, %v1511_v48  ;;  %v1426_v12 = vpop.f32.mrf.mxu1 }
 0x1fd   : > { %v1512_v52 = vadd.f32 %v1426_v12, %v4382_v32  ;;  %v4386_v12 = vld [vmem:[#allocation31_spill] sm:$0xff] }
 0x1fe   : > { %v2117_v11 = vsel %vm2053_vm7, %v2021_v1, %v2085_v33  ;;  %v1827_v24 = vadd.f32 %v1739_v18, %v1667_v54  ;;  %2495 = vmatmul.msk.f32.gmra.mxu1 %vm414_vm1, %v3570_v41  ;;  %v2674_v33 = vld [vmem:[%s2765_s4 + $0x140] sm:$0xff]  ;;  %v4385_v54 = vld [vmem:[#allocation16_spill] sm:$0xff] }
 0x1ff   : > { %2150 = vst.msk [vmem:[%s3931_s30 + $0x18] sm:$0xff] %vm2146_vm4, %v2117_v11  ;;  %v1901_v28 = vpop.f32.mrf.mxu0 }
 0x200   : > { %v1986_v2 = vadd.f32 %v1898_v17, %v1827_v24  ;;  %2531 = vmatmul.msk.f32.gmra.mxu2 %vm414_vm1, %v2672_v34  ;;  %2567 = vmatmul.msk.f32.gmra.mxu3 %vm414_vm1, %v4381_v27  ;;  %v4384_v17 = vld [vmem:[#allocation3_spill] sm:$0xff] }
 0x202   : > { %v2022_v14 = vadd.f32 %v3915_v16, %v1986_v2  ;;  %2603 = vmatmul.msk.f32.gmra.mxu0 %vm414_vm1, %v3601_v47 }
 0x203   : > { %v1582_v3 = vpop.f32.mrf.mxu2  ;;  %v1742_v23 = vpop.f32.mrf.mxu3 }
 0x204   : > { %vm2054_vm8 = vcmp.ge.f32.partialorder %v2022_v14, 0.0  ;;  %v2086_v41 = vmul.f32 0.2, %v2022_v14  ;;  %v1668_v15 = vadd.f32 %v1582_v3, %v1512_v52  ;;  %v1429_v55 = vpop.f32.mrf.mxu1 }
 0x205   : > { %v1513_v21 = vadd.f32 %v1429_v55, %v4383_v7 }
 0x206   : > { %v2118_v20 = vsel %vm2054_vm8, %v2022_v14, %v2086_v41  ;;  %v1828_v63 = vadd.f32 %v1742_v23, %v1668_v15  ;;  %2496 = vmatmul.msk.f32.gmra.mxu1 %vm414_vm1, %v4380_v49  ;;  %v2675_v23 = vld [vmem:[%s2765_s4 + $0x150] sm:$0xff]  ;;  %v4387_v41 = vld [vmem:[#allocation5_spill] sm:$0xff] }
 0x207   : > { %2151 = vst.msk [vmem:[%s3931_s30 + $0x20] sm:$0xff] %vm2146_vm4, %v2118_v20  ;;  %v1904_v26 = vpop.f32.mrf.mxu0  ;;  %v4388_v20 = vld [vmem:[#allocation13_spill] sm:$0xff] }
 0x208   : > { %v1987_v9 = vadd.f32 %v1901_v28, %v1828_v63  ;;  %2532 = vmatmul.msk.f32.gmra.mxu2 %vm414_vm1, %v2673_v39  ;;  %2568 = vmatmul.msk.f32.gmra.mxu3 %vm414_vm1, %v4328_v36 }
 0x20a   : > { %v2023_v37 = vadd.f32 %v3915_v16, %v1987_v9  ;;  %2604 = vmatmul.msk.f32.gmra.mxu0 %vm414_vm1, %v4384_v17 }
 0x20b   : > { %v1585_v29 = vpop.f32.mrf.mxu2  ;;  %v1745_v5 = vpop.f32.mrf.mxu3 }
 0x20c   : > { %vm2055_vm9 = vcmp.ge.f32.partialorder %v2023_v37, 0.0  ;;  %v2087_v58 = vmul.f32 0.2, %v2023_v37  ;;  %v1669_v48 = vadd.f32 %v1585_v29, %v1513_v21  ;;  %v1432_v1 = vpop.f32.mrf.mxu1  ;;  %v2676_v29 = vld [vmem:[%s2765_s4 + $0x158] sm:$0xff] }
 0x20d   : > { %v1514_v11 = vadd.f32 %v1432_v1, %v4386_v12 }
 0x20e   : > { %v2119_v49 = vsel %vm2055_vm9, %v2023_v37, %v2087_v58  ;;  %v1829_v59 = vadd.f32 %v1745_v5, %v1669_v48  ;;  %2497 = vmatmul.msk.f32.gmra.mxu1 %vm414_vm1, %v3601_v47  ;;  %v4389_v5 = vld [vmem:[#allocation24_spill] sm:$0xff]  ;;  %v4390_v58 = vld [vmem:[#allocation10_spill] sm:$0xff] }
 0x20f   : > { %2152 = vst.msk [vmem:[%s3931_s30 + $0x28] sm:$0xff] %vm2146_vm4, %v2119_v49  ;;  %v1907_v36 = vpop.f32.mrf.mxu0 }
 0x210   : > { %v1988_v18 = vadd.f32 %v1904_v26, %v1829_v59  ;;  %2533 = vmatmul.msk.f32.gmra.mxu2 %vm414_vm1, %v2674_v33  ;;  %2569 = vmatmul.msk.f32.gmra.mxu3 %vm414_vm1, %v4385_v54 }
 0x212   : > { %v2024_v24 = vadd.f32 %v3915_v16, %v1988_v18  ;;  %2605 = vmatmul.msk.f32.gmra.mxu0 %vm414_vm1, %v3632_v25 }
 0x213   : > { %v1588_v28 = vpop.f32.mrf.mxu2  ;;  %v1748_v2 = vpop.f32.mrf.mxu3 }
 0x214   : > { %vm2056_vm10 = vcmp.ge.f32.partialorder %v2024_v24, 0.0  ;;  %v2088_v47 = vmul.f32 0.2, %v2024_v24  ;;  %v1670_v34 = vadd.f32 %v1588_v28, %v1514_v11  ;;  %v1435_v27 = vpop.f32.mrf.mxu1  ;;  %v4391_v28 = vld [vmem:[#allocation30_spill] sm:$0xff] }
 0x215   : > { %v1515_v15 = vadd.f32 %v1435_v27, %v4387_v41 }
 0x216   : > { %v2120_v32 = vsel %vm2056_vm10, %v2024_v24, %v2088_v47  ;;  %v1830_v52 = vadd.f32 %v1748_v2, %v1670_v34  ;;  %2498 = vmatmul.msk.f32.gmra.mxu1 %vm414_vm1, %v4384_v17  ;;  %v2677_v24 = vld [vmem:[%s2765_s4 + $0x168] sm:$0xff]  ;;  %v4392_v2 = vld [vmem:[#allocation6_spill] sm:$0xff] }
 0x217   : > { %2153 = vst.msk [vmem:[%s3931_s30 + $0x30] sm:$0xff] %vm2146_vm4, %v2120_v32  ;;  %v1910_v14 = vpop.f32.mrf.mxu0 }
 0x218   : > { %v1989_v3 = vadd.f32 %v1907_v36, %v1830_v52  ;;  %2534 = vmatmul.msk.f32.gmra.mxu2 %vm414_vm1, %v2675_v23  ;;  %2570 = vmatmul.msk.f32.gmra.mxu3 %vm414_vm1, %v4336_v56 }
 0x21a   : > { %v2025_v55 = vadd.f32 %v3915_v16, %v1989_v3  ;;  %2606 = vmatmul.msk.f32.gmra.mxu0 %vm414_vm1, %v4388_v20 }
 0x21b   : > { %v1591_v63 = vpop.f32.mrf.mxu2  ;;  %v1751_v26 = vpop.f32.mrf.mxu3 }
 0x21c   : > { %vm2057_vm11 = vcmp.ge.f32.partialorder %v2025_v55, 0.0  ;;  %v2089_v9 = vmul.f32 0.2, %v2025_v55  ;;  %v1671_v39 = vadd.f32 %v1591_v63, %v1515_v15  ;;  %v1438_v7 = vpop.f32.mrf.mxu1  ;;  %v4393_v63 = vld [vmem:[#allocation33_spill] sm:$0xff] }
 0x21d   : > { %v1516_v48 = vadd.f32 %v1438_v7, %v4390_v58  ;;  %v4395_v7 = vld [vmem:[#allocation14_spill] sm:$0xff] }
 0x21e   : > { %v2121_v21 = vsel %vm2057_vm11, %v2025_v55, %v2089_v9  ;;  %v1831_v37 = vadd.f32 %v1751_v26, %v1671_v39  ;;  %2499 = vmatmul.msk.f32.gmra.mxu1 %vm414_vm1, %v3632_v25  ;;  %v4394_v26 = vld [vmem:[#allocation11_spill] sm:$0xff] }
 0x21f   : > { %2154 = vst.msk [vmem:[%s3931_s30 + $0x38] sm:$0xff] %vm2146_vm4, %v2121_v21  ;;  %v1913_v56 = vpop.f32.mrf.mxu0  ;;  %v1380_v21 = vrot.slane %v4395_v7, 2 }
 0x220   : > { %v1990_v17 = vadd.f32 %v1910_v14, %v1831_v37  ;;  %2535 = vmatmul.msk.f32.gmra.mxu2 %vm414_vm1, %v2676_v29  ;;  %2571 = vmatmul.msk.f32.gmra.mxu3 %vm414_vm1, %v4389_v5 }
 0x222   : > { %v2026_v1 = vadd.f32 %v3915_v16, %v1990_v17  ;;  %2607 = vmatmul.msk.f32.gmra.mxu0 %vm414_vm1, %v3663_v40 }
 0x223   : > { %v1594_v49 = vpop.f32.mrf.mxu2  ;;  %v1754_v59 = vpop.f32.mrf.mxu3 }
 0x224   : > { %vm2058_vm12 = vcmp.ge.f32.partialorder %v2026_v1, 0.0  ;;  %v2090_v25 = vmul.f32 0.2, %v2026_v1  ;;  %v1672_v36 = vadd.f32 %v1594_v49, %v1516_v48  ;;  %v1441_v18 = vpop.f32.mrf.mxu1 }
 0x225   : > { %v1517_v47 = vadd.f32 %v1441_v18, %v4392_v2 }
 0x226   : > { %v2122_v33 = vsel %vm2058_vm12, %v2026_v1, %v2090_v25  ;;  %v1832_v54 = vadd.f32 %v1754_v59, %v1672_v36  ;;  %2500 = vmatmul.msk.f32.gmra.mxu1 %vm414_vm1, %v4388_v20  ;;  %v2678_v20 = vld [vmem:[%s2765_s4 + $0x170] sm:$0xff]  ;;  %v4396_v25 = vld [vmem:[#allocation17_spill] sm:$0xff] }
 0x227   : > { %2155 = vst.msk [vmem:[%s3931_s30 + $0x40] sm:$0xff] %vm2146_vm4, %v2122_v33  ;;  %v1916_v12 = vpop.f32.mrf.mxu0 }
 0x228   : > { %v1991_v11 = vadd.f32 %v1913_v56, %v1832_v54  ;;  %2536 = vmatmul.msk.f32.gmra.mxu2 %vm414_vm1, %v2677_v24  ;;  %2572 = vmatmul.msk.f32.gmra.mxu3 %vm414_vm1, %v4391_v28  ;;  %v1383_v54 = vrot.slane %v3701_v53, 2 }
 0x22a   : > { %v2027_v34 = vadd.f32 %v3915_v16, %v1991_v11  ;;  %2608 = vmatmul.msk.f32.gmra.mxu0 %vm414_vm1, %v3687_v45 }
 0x22b   : > { %v1597_v27 = vpop.f32.mrf.mxu2  ;;  %v1757_v32 = vpop.f32.mrf.mxu3 }
 0x22c   : > { %vm2059_vm13 = vcmp.ge.f32.partialorder %v2027_v34, 0.0  ;;  %v2091_v52 = vmul.f32 0.2, %v2027_v34  ;;  %v1673_v14 = vadd.f32 %v1597_v27, %v1517_v47  ;;  %v1444_v3 = vpop.f32.mrf.mxu1  ;;  %v273_v47 = vld [vmem:[%s2765_s4 + $0x198] sm:$0xff] }
 0x22d   : > { %v1518_v9 = vadd.f32 %v1444_v3, %v4394_v26  ;;  %v1696_v53 = vrot.slane %v273_v47, 1 }
 0x22e   : > { %v2123_v23 = vsel %vm2059_vm13, %v2027_v34, %v2091_v52  ;;  %v1833_v41 = vadd.f32 %v1757_v32, %v1673_v14  ;;  %2501 = vmatmul.msk.f32.gmra.mxu1 %vm414_vm1, %v3663_v40  ;;  %v1381_v40 = vrot.slane %v3674_v4, 2  ;;  %v274_v34 = vld [vmem:[%s2765_s4 + $0x1a0] sm:$0xff]  ;;  %v4397_v14 = vld [vmem:[#allocation20_spill] sm:$0xff] }
 0x22f   : > { %2156 = vst.msk [vmem:[%s3931_s30 + $0x48] sm:$0xff] %vm2146_vm4, %v2123_v23  ;;  %v1919_v15 = vpop.f32.mrf.mxu0  ;;  %v1697_v52 = vrot.slane %v274_v34, 1 }
 0x230   : > { %v1992_v55 = vadd.f32 %v1916_v12, %v1833_v41  ;;  %2537 = vmatmul.msk.f32.gmra.mxu2 %vm414_vm1, %v2678_v20  ;;  %2573 = vmatmul.msk.f32.gmra.mxu3 %vm414_vm1, %v4393_v63  ;;  %v1382_v49 = vsel %vm769_vm2, %v1380_v21, %v1381_v40  ;;  %v1384_v27 = vsel %vm769_vm2, %v1381_v40, %v1383_v54 }
 0x232   : > { %v2028_v39 = vadd.f32 %v3915_v16, %v1992_v55  ;;  %2609 = vmatmul.msk.f32.gmra.mxu0 %vm414_vm1, %v3709_v19  ;;  %v1856_v55 = vrot.slane %v274_v34, 2 }
 0x233   : > { %v1600_v37 = vpop.f32.mrf.mxu2  ;;  %v1760_v56 = vpop.f32.mrf.mxu3 }
 0x234   : > { %vm2060_vm14 = vcmp.ge.f32.partialorder %v2028_v39, 0.0  ;;  %v2092_v17 = vmul.f32 0.2, %v2028_v39  ;;  %v1674_v29 = vadd.f32 %v1600_v37, %v1518_v9  ;;  %v1447_v5 = vpop.f32.mrf.mxu1 }
 0x235   : > { %v1519_v36 = vadd.f32 %v1447_v5, %v4396_v25 }
 0x236   : > { %v2124_v58 = vsel %vm2060_vm14, %v2028_v39, %v2092_v17  ;;  %v1834_v48 = vadd.f32 %v1760_v56, %v1674_v29  ;;  %2502 = vmatmul.msk.f32.gmra.mxu1 %vm414_vm1, %v3687_v45  ;;  %v275_v39 = vld [vmem:[%s2765_s4 + $0x1a8] sm:$0x3] }
 0x237   : > { %2157 = vst.msk [vmem:[%s3931_s30 + $0x50] sm:$0xff] %vm2146_vm4, %v2124_v58  ;;  %v1922_v1 = vpop.f32.mrf.mxu0  ;;  %v1699_v37 = vrot.slane %v275_v39, 1  ;;  %v1858_v58 = vrot.slane %v275_v39, 2 }
 0x238   : > { %v1993_v59 = vadd.f32 %v1919_v15, %v1834_v48  ;;  %2538 = vmatmul.msk.f32.gmra.mxu2 %vm414_vm1, %v4395_v7  ;;  %2574 = vmatmul.msk.f32.gmra.mxu3 %vm414_vm1, %v3692_v35  ;;  %v1855_v15 = vrot.slane %v273_v47, 2 }
 0x23a   : > { %v2029_v18 = vadd.f32 %v3915_v16, %v1993_v59  ;;  %2610 = vmatmul.msk.f32.gmra.mxu0 %vm414_vm1, %v1382_v49  ;;  %v1857_v21 = vsel %vm769_vm2, %v1855_v15, %v1856_v55  ;;  %v1700_v59 = vsel %vm328_vm0, %v1697_v52, %v1699_v37 }
 0x23b   : > { %v1603_v45 = vpop.f32.mrf.mxu2  ;;  %v1763_v33 = vpop.f32.mrf.mxu3 }
 0x23c   : > { %vm2061_vm15 = vcmp.ge.f32.partialorder %v2029_v18, 0.0  ;;  %v2093_v12 = vmul.f32 0.2, %v2029_v18  ;;  %v1675_v11 = vadd.f32 %v1603_v45, %v1519_v36  ;;  %v1450_v24 = vpop.f32.mrf.mxu1 }
 0x23d   : > { %v1520_v3 = vadd.f32 %v1450_v24, %v4397_v14 }
 0x23e   : > { %v2125_v28 = vsel %vm2061_vm15, %v2029_v18, %v2093_v12  ;;  %v1835_v2 = vadd.f32 %v1763_v33, %v1675_v11  ;;  %2503 = vmatmul.msk.f32.gmra.mxu1 %vm414_vm1, %v3709_v19  ;;  %v1859_v18 = vsel %vm769_vm2, %v1856_v55, %v1858_v58 }
 0x23f   : > { %2158 = vst.msk [vmem:[%s3931_s30 + $0x58] sm:$0xff] %vm2146_vm4, %v2125_v28  ;;  %v1925_v35 = vpop.f32.mrf.mxu0 }
 0x240   : > { %v1994_v32 = vadd.f32 %v1922_v1, %v1835_v2  ;;  %2539 = vmatmul.msk.f32.gmra.mxu2 %vm414_vm1, %v3674_v4  ;;  %2575 = vmatmul.msk.f32.gmra.mxu3 %vm414_vm1, %v3714_v38  ;;  %v1698_v38 = vsel %vm328_vm0, %v1696_v53, %v1697_v52 }
 0x242   : > { %v2030_v23 = vadd.f32 %v3915_v16, %v1994_v32  ;;  %2611 = vmatmul.msk.f32.gmra.mxu0 %vm414_vm1, %v1384_v27 }
 0x243   : > { %v1606_v19 = vpop.f32.mrf.mxu2  ;;  %v1766_v41 = vpop.f32.mrf.mxu3 }
 0x244   : > { %vm2062_vm3 = vcmp.ge.f32.partialorder %v2030_v23, 0.0  ;;  %v2094_v20 = vmul.f32 0.2, %v2030_v23  ;;  %v1676_v4 = vadd.f32 %v1606_v19, %v1520_v3  ;;  %v1453_v63 = vpop.f32.mrf.mxu1 }
 0x245   : > { %v1521_v56 = vadd.f32 %v1453_v63, %v3716_v22 }
 0x246   : > { %v2126_v26 = vsel %vm2062_vm3, %v2030_v23, %v2094_v20  ;;  %v1836_v9 = vadd.f32 %v1766_v41, %v1676_v4  ;;  %2504 = vmatmul.msk.f32.gmra.mxu1 %vm414_vm1, %v1382_v49 }
 0x247   : > { %2159 = vst.msk [vmem:[%s3931_s30 + $0x60] sm:$0xff] %vm2146_vm4, %v2126_v26  ;;  %v1928_v7 = vpop.f32.mrf.mxu0 }
 0x248   : > { %v1995_v40 = vadd.f32 %v1925_v35, %v1836_v9  ;;  %2540 = vmatmul.msk.f32.gmra.mxu2 %vm414_vm1, %v273_v47  ;;  %2576 = vmatmul.msk.f32.gmra.mxu3 %vm414_vm1, %v1698_v38 }
 0x24a   : > { %v2031_v17 = vadd.f32 %v3915_v16, %v1995_v40  ;;  %2612 = vmatmul.msk.f32.gmra.mxu0 %vm414_vm1, %v1857_v21 }
 0x24b   : > { %v1609_v29 = vpop.f32.mrf.mxu2  ;;  %v1769_v5 = vpop.f32.mrf.mxu3 }
 0x24c   : > { %vm2063_vm5 = vcmp.ge.f32.partialorder %v2031_v17, 0.0  ;;  %v2095_v48 = vmul.f32 0.2, %v2031_v17  ;;  %v1677_v1 = vadd.f32 %v1609_v29, %v1521_v56  ;;  %v1456_v49 = vpop.f32.mrf.mxu1 }
 0x24d   : > { %v1522_v33 = vadd.f32 %v1456_v49, %v3727_v57 }
 0x24e   : > { %v2127_v25 = vsel %vm2063_vm5, %v2031_v17, %v2095_v48  ;;  %v1837_v36 = vadd.f32 %v1769_v5, %v1677_v1  ;;  %2505 = vmatmul.msk.f32.gmra.mxu1 %vm414_vm1, %v1384_v27 }
 0x24f   : > { %2160 = vst.msk [vmem:[%s3931_s30 + $0x68] sm:$0xff] %vm2146_vm4, %v2127_v25  ;;  %v1931_v22 = vpop.f32.mrf.mxu0 }
 0x250   : > { %v1996_v45 = vadd.f32 %v1928_v7, %v1837_v36  ;;  %2541 = vmatmul.msk.f32.gmra.mxu2 %vm414_vm1, %v274_v34  ;;  %2577 = vmatmul.msk.f32.gmra.mxu3 %vm414_vm1, %v1700_v59 }
 0x252   : > { %v2032_v54 = vadd.f32 %v3915_v16, %v1996_v45  ;;  %2613 = vmatmul.msk.f32.gmra.mxu0 %vm414_vm1, %v1859_v18 }
 0x253   : > { %v1612_v12 = vpop.f32.mrf.mxu2  ;;  %v1772_v11 = vpop.f32.mrf.mxu3 }
 0x254   : > { %vm2064_vm0 = vcmp.ge.f32.partialorder %v2032_v54, 0.0  ;;  %v2096_v24 = vmul.f32 0.2, %v2032_v54  ;;  %v1678_v28 = vadd.f32 %v1612_v12, %v1522_v33  ;;  %v1459_v2 = vpop.f32.mrf.mxu1 }
 0x255   : > { %v1523_v32 = vadd.f32 %v1459_v2, %v3738_v46 }
 0x256   : > { %v2128_v47 = vsel %vm2064_vm0, %v2032_v54, %v2096_v24  ;;  %v1838_v35 = vadd.f32 %v1772_v11, %v1678_v28 }
 0x257   : > { %2161 = vst.msk [vmem:[%s3931_s30 + $0x70] sm:$0xff] %vm2146_vm4, %v2128_v47  ;;  %v1934_v34 = vpop.f32.mrf.mxu0 }
 0x258   : > { %v1997_v27 = vadd.f32 %v1931_v22, %v1838_v35 }
 0x25a   : > { %v2033_v57 = vadd.f32 %v3915_v16, %v1997_v27 }
 0x25b   : > { %v1615_v53 = vpop.f32.mrf.mxu2  ;;  %v1775_v52 = vpop.f32.mrf.mxu3 }
 0x25c   : > { %vm2065_vm1 = vcmp.ge.f32.partialorder %v2033_v57, 0.0  ;;  %v2097_v14 = vmul.f32 0.2, %v2033_v57  ;;  %v1679_v3 = vadd.f32 %v1615_v53, %v1523_v32  ;;  %v1462_v23 = vpop.f32.mrf.mxu1 }
 0x25d   : > { %v1524_v20 = vadd.f32 %v1462_v23, %v3749_v42 }
 0x25e   : > { %v2129_v19 = vsel %vm2065_vm1, %v2033_v57, %v2097_v14  ;;  %v1839_v41 = vadd.f32 %v1775_v52, %v1679_v3 }
 0x25f   : > { %2162 = vst.msk [vmem:[%s3931_s30 + $0x78] sm:$0xff] %vm2146_vm4, %v2129_v19  ;;  %v1937_v15 = vpop.f32.mrf.mxu0 }
 0x260   : > { %v1998_v55 = vadd.f32 %v1934_v34, %v1839_v41 }
 0x262   : > { %v2034_v4 = vadd.f32 %v3915_v16, %v1998_v55 }
 0x263   : > { %v1618_v46 = vpop.f32.mrf.mxu2  ;;  %v1778_v63 = vpop.f32.mrf.mxu3 }
 0x264   : > { %vm2066_vm2 = vcmp.ge.f32.partialorder %v2034_v4, 0.0  ;;  %v2098_v38 = vmul.f32 0.2, %v2034_v4  ;;  %v1680_v26 = vadd.f32 %v1618_v46, %v1524_v20  ;;  %v1465_v9 = vpop.f32.mrf.mxu1 }
 0x265   : > { %v1525_v37 = vadd.f32 %v1465_v9, %v3760_v13 }
 0x266   : > { %v2130_v39 = vsel %vm2066_vm2, %v2034_v4, %v2098_v38  ;;  %v1840_v7 = vadd.f32 %v1778_v63, %v1680_v26 }
 0x267   : > { %2163 = vst.msk [vmem:[%s3931_s30 + $0x80] sm:$0xff] %vm2146_vm4, %v2130_v39  ;;  %v1940_v21 = vpop.f32.mrf.mxu0 }
 0x268   : > { %v1999_v40 = vadd.f32 %v1937_v15, %v1840_v7 }
 0x26a   : > { %v2035_v56 = vadd.f32 %v3915_v16, %v1999_v40 }
 0x26b   : > { %v1621_v42 = vpop.f32.mrf.mxu2  ;;  %v1781_v17 = vpop.f32.mrf.mxu3 }
 0x26c   : > { %vm2067_vm6 = vcmp.ge.f32.partialorder %v2035_v56, 0.0  ;;  %v2099_v29 = vmul.f32 0.2, %v2035_v56  ;;  %v1681_v5 = vadd.f32 %v1621_v42, %v1525_v37  ;;  %v1468_v58 = vpop.f32.mrf.mxu1 }
 0x26d   : > { %v1526_v25 = vadd.f32 %v1468_v58, %v3771_v8 }
 0x26e   : > { %v2131_v48 = vsel %vm2067_vm6, %v2035_v56, %v2099_v29  ;;  %v1841_v1 = vadd.f32 %v1781_v17, %v1681_v5 }
 0x26f   : > { %2164 = vst.msk [vmem:[%s3931_s30 + $0x88] sm:$0xff] %vm2146_vm4, %v2131_v48  ;;  %v1943_v49 = vpop.f32.mrf.mxu0 }
 0x270   : > { %v2000_v59 = vadd.f32 %v1940_v21, %v1841_v1 }
 0x272   : > { %v2036_v36 = vadd.f32 %v3915_v16, %v2000_v59 }
 0x273   : > { %v1624_v13 = vpop.f32.mrf.mxu2  ;;  %v1784_v22 = vpop.f32.mrf.mxu3 }
 0x274   : > { %vm2068_vm7 = vcmp.ge.f32.partialorder %v2036_v36, 0.0  ;;  %v2100_v18 = vmul.f32 0.2, %v2036_v36  ;;  %v1682_v45 = vadd.f32 %v1624_v13, %v1526_v25  ;;  %v1471_v33 = vpop.f32.mrf.mxu1 }
 0x275   : > { %v1527_v28 = vadd.f32 %v1471_v33, %v3782_v43 }
 0x276   : > { %v2132_v54 = vsel %vm2068_vm7, %v2036_v36, %v2100_v18  ;;  %v1842_v12 = vadd.f32 %v1784_v22, %v1682_v45 }
 0x277   : > { %2165 = vst.msk [vmem:[%s3931_s30 + $0x90] sm:$0xff] %vm2146_vm4, %v2132_v54  ;;  %v1946_v11 = vpop.f32.mrf.mxu0 }
 0x278   : > { %v2001_v24 = vadd.f32 %v1943_v49, %v1842_v12 }
 0x27a   : > { %v2037_v2 = vadd.f32 %v3915_v16, %v2001_v24 }
 0x27b   : > { %v1627_v8 = vpop.f32.mrf.mxu2  ;;  %v1787_v47 = vpop.f32.mrf.mxu3 }
 0x27c   : > { %vm2069_vm8 = vcmp.ge.f32.partialorder %v2037_v2, 0.0  ;;  %v2101_v35 = vmul.f32 0.2, %v2037_v2  ;;  %v1683_v34 = vadd.f32 %v1627_v8, %v1527_v28  ;;  %v1474_v27 = vpop.f32.mrf.mxu1 }
 0x27d   : > { %v1528_v14 = vadd.f32 %v1474_v27, %v3793_v30 }
 0x27e   : > { %v2133_v32 = vsel %vm2069_vm8, %v2037_v2, %v2101_v35  ;;  %v1843_v57 = vadd.f32 %v1787_v47, %v1683_v34 }
 0x27f   : > { %2166 = vst.msk [vmem:[%s3931_s30 + $0x98] sm:$0xff] %vm2146_vm4, %v2133_v32  ;;  %v1949_v53 = vpop.f32.mrf.mxu0 }
 0x280   : > { %v2002_v52 = vadd.f32 %v1946_v11, %v1843_v57 }
 0x282   : > { %v2038_v3 = vadd.f32 %v3915_v16, %v2002_v52 }
 0x283   : > { %v1630_v43 = vpop.f32.mrf.mxu2  ;;  %v1790_v23 = vpop.f32.mrf.mxu3 }
 0x284   : > { %vm2070_vm9 = vcmp.ge.f32.partialorder %v2038_v3, 0.0  ;;  %v2102_v19 = vmul.f32 0.2, %v2038_v3  ;;  %v1684_v41 = vadd.f32 %v1630_v43, %v1528_v14  ;;  %v1477_v15 = vpop.f32.mrf.mxu1 }
 0x285   : > { %v1529_v63 = vadd.f32 %v1477_v15, %v3804_v61 }
 0x286   : > { %v2134_v55 = vsel %vm2070_vm9, %v2038_v3, %v2102_v19  ;;  %v1844_v20 = vadd.f32 %v1790_v23, %v1684_v41 }
 0x287   : > { %2167 = vst.msk [vmem:[%s3931_s30 + $0xa0] sm:$0xff] %vm2146_vm4, %v2134_v55  ;;  %v1952_v4 = vpop.f32.mrf.mxu0 }
 0x288   : > { %v2003_v46 = vadd.f32 %v1949_v53, %v1844_v20 }
 0x28a   : > { %v2039_v38 = vadd.f32 %v3915_v16, %v2003_v46 }
 0x28b   : > { %v1633_v30 = vpop.f32.mrf.mxu2  ;;  %v1793_v26 = vpop.f32.mrf.mxu3 }
 0x28c   : > { %vm2071_vm10 = vcmp.ge.f32.partialorder %v2039_v38, 0.0  ;;  %v2103_v9 = vmul.f32 0.2, %v2039_v38  ;;  %v1685_v39 = vadd.f32 %v1633_v30, %v1529_v63  ;;  %v1480_v7 = vpop.f32.mrf.mxu1 }
 0x28d   : > { %v1530_v42 = vadd.f32 %v1480_v7, %v3815_v50 }
 0x28e   : > { %v2135_v21 = vsel %vm2071_vm10, %v2039_v38, %v2103_v9  ;;  %v1845_v40 = vadd.f32 %v1793_v26, %v1685_v39 }
 0x28f   : > { %2168 = vst.msk [vmem:[%s3931_s30 + $0xa8] sm:$0xff] %vm2146_vm4, %v2135_v21  ;;  %v1955_v37 = vpop.f32.mrf.mxu0 }
 0x290   : > { %v2004_v56 = vadd.f32 %v1952_v4, %v1845_v40 }
 0x292   : > { %v2040_v17 = vadd.f32 %v3915_v16, %v2004_v56 }
 0x293   : > { %v1636_v61 = vpop.f32.mrf.mxu2  ;;  %v1796_v29 = vpop.f32.mrf.mxu3 }
 0x294   : > { %vm2072_vm11 = vcmp.ge.f32.partialorder %v2040_v17, 0.0  ;;  %v2104_v5 = vmul.f32 0.2, %v2040_v17  ;;  %v1686_v58 = vadd.f32 %v1636_v61, %v1530_v42  ;;  %v1483_v48 = vpop.f32.mrf.mxu1 }
 0x295   : > { %v1531_v36 = vadd.f32 %v1483_v48, %v3826_v60 }
 0x296   : > { %v2136_v1 = vsel %vm2072_vm11, %v2040_v17, %v2104_v5  ;;  %v1846_v49 = vadd.f32 %v1796_v29, %v1686_v58 }
 0x297   : > { %2169 = vst.msk [vmem:[%s3931_s30 + $0xb0] sm:$0xff] %vm2146_vm4, %v2136_v1  ;;  %v1958_v59 = vpop.f32.mrf.mxu0 }
 0x298   : > { %v2005_v25 = vadd.f32 %v1955_v37, %v1846_v49 }
 0x29a   : > { %v2041_v13 = vadd.f32 %v3915_v16, %v2005_v25 }
 0x29b   : > { %v1639_v50 = vpop.f32.mrf.mxu2  ;;  %v1799_v22 = vpop.f32.mrf.mxu3 }
 0x29c   : > { %vm2073_vm12 = vcmp.ge.f32.partialorder %v2041_v13, 0.0  ;;  %v2105_v18 = vmul.f32 0.2, %v2041_v13  ;;  %v1687_v45 = vadd.f32 %v1639_v50, %v1531_v36  ;;  %v1486_v33 = vpop.f32.mrf.mxu1 }
 0x29d   : > { %v1532_v28 = vadd.f32 %v1486_v33, %v3837_v62 }
 0x29e   : > { %v2137_v54 = vsel %vm2073_vm12, %v2041_v13, %v2105_v18  ;;  %v1847_v12 = vadd.f32 %v1799_v22, %v1687_v45 }
 0x29f   : > { %2170 = vst.msk [vmem:[%s3931_s30 + $0xb8] sm:$0xff] %vm2146_vm4, %v2137_v54  ;;  %v1961_v11 = vpop.f32.mrf.mxu0 }
 0x2a0   : > { %v2006_v24 = vadd.f32 %v1958_v59, %v1847_v12 }
 0x2a2   : > { %v2042_v2 = vadd.f32 %v3915_v16, %v2006_v24 }
 0x2a3   : > { %v1642_v60 = vpop.f32.mrf.mxu2  ;;  %v1802_v8 = vpop.f32.mrf.mxu3 }
 0x2a4   : > { %vm2074_vm13 = vcmp.ge.f32.partialorder %v2042_v2, 0.0  ;;  %v2106_v47 = vmul.f32 0.2, %v2042_v2  ;;  %v1688_v35 = vadd.f32 %v1642_v60, %v1532_v28  ;;  %v1489_v34 = vpop.f32.mrf.mxu1 }
 0x2a5   : > { %v1533_v52 = vadd.f32 %v1489_v34, %v3848_v0 }
 0x2a6   : > { %v2138_v27 = vsel %vm2074_vm13, %v2042_v2, %v2106_v47  ;;  %v1848_v32 = vadd.f32 %v1802_v8, %v1688_v35 }
 0x2a7   : > { %2171 = vst.msk [vmem:[%s3931_s30 + $0xc0] sm:$0xff] %vm2146_vm4, %v2138_v27  ;;  %v1964_v57 = vpop.f32.mrf.mxu0 }
 0x2a8   : > { %v2007_v53 = vadd.f32 %v1961_v11, %v1848_v32 }
 0x2aa   : > { %v2043_v14 = vadd.f32 %v3915_v16, %v2007_v53 }
 0x2ab   : > { %v1645_v62 = vpop.f32.mrf.mxu2  ;;  %v1805_v3 = vpop.f32.mrf.mxu3 }
 0x2ac   : > { %vm2075_vm14 = vcmp.ge.f32.partialorder %v2043_v14, 0.0  ;;  %v2107_v43 = vmul.f32 0.2, %v2043_v14  ;;  %v1689_v23 = vadd.f32 %v1645_v62, %v1533_v52  ;;  %v1492_v19 = vpop.f32.mrf.mxu1 }
 0x2ad   : > { %v1534_v4 = vadd.f32 %v1492_v19, %v3859_v31 }
 0x2ae   : > { %v2139_v41 = vsel %vm2075_vm14, %v2043_v14, %v2107_v43  ;;  %v1849_v15 = vadd.f32 %v1805_v3, %v1689_v23 }
 0x2af   : > { %2172 = vst.msk [vmem:[%s3931_s30 + $0xc8] sm:$0xff] %vm2146_vm4, %v2139_v41  ;;  %v1967_v55 = vpop.f32.mrf.mxu0 }
 0x2b0   : > { %v2008_v20 = vadd.f32 %v1964_v57, %v1849_v15 }
 0x2b2   : > { %v2044_v46 = vadd.f32 %v3915_v16, %v2008_v20 }
 0x2b3   : > { %v1648_v0 = vpop.f32.mrf.mxu2  ;;  %v1808_v63 = vpop.f32.mrf.mxu3 }
 0x2b4   : > { %vm2076_vm15 = vcmp.ge.f32.partialorder %v2044_v46, 0.0  ;;  %v2108_v38 = vmul.f32 0.2, %v2044_v46  ;;  %v1690_v30 = vadd.f32 %v1648_v0, %v1534_v4  ;;  %v1495_v26 = vpop.f32.mrf.mxu1 }
 0x2b5   : > { %v1535_v40 = vadd.f32 %v1495_v26, %v3870_v44 }
 0x2b6   : > { %v2140_v9 = vsel %vm2076_vm15, %v2044_v46, %v2108_v38  ;;  %v1850_v39 = vadd.f32 %v1808_v63, %v1690_v30 }
 0x2b7   : > { %2173 = vst.msk [vmem:[%s3931_s30 + $0xd0] sm:$0xff] %vm2146_vm4, %v2140_v9  ;;  %v1970_v7 = vpop.f32.mrf.mxu0 }
 0x2b8   : > { %v2009_v21 = vadd.f32 %v1967_v55, %v1850_v39 }
 0x2ba   : > { %v2045_v37 = vadd.f32 %v3915_v16, %v2009_v21 }
 0x2bb   : > { %v1651_v31 = vpop.f32.mrf.mxu2  ;;  %v1811_v56 = vpop.f32.mrf.mxu3 }
 0x2bc   : > { %vm2077_vm3 = vcmp.ge.f32.partialorder %v2045_v37, 0.0  ;;  %v2109_v42 = vmul.f32 0.2, %v2045_v37  ;;  %v1691_v17 = vadd.f32 %v1651_v31, %v1535_v40  ;;  %v1498_v61 = vpop.f32.mrf.mxu1 }
 0x2bd   : > { %v1536_v1 = vadd.f32 %v1498_v61, %v3881_v6 }
 0x2be   : > { %v2141_v29 = vsel %vm2077_vm3, %v2045_v37, %v2109_v42  ;;  %v1851_v5 = vadd.f32 %v1811_v56, %v1691_v17 }
 0x2bf   : > { %2174 = vst.msk [vmem:[%s3931_s30 + $0xd8] sm:$0xff] %vm2146_vm4, %v2141_v29  ;;  %v1973_v48 = vpop.f32.mrf.mxu0 }
 0x2c0   : > { %v2010_v58 = vadd.f32 %v1970_v7, %v1851_v5 }
 0x2c2   : > { %v2046_v49 = vadd.f32 %v3915_v16, %v2010_v58 }
 0x2c3   : > { %v1654_v44 = vpop.f32.mrf.mxu2  ;;  %v1814_v59 = vpop.f32.mrf.mxu3 }
 0x2c4   : > { %vm2078_vm5 = vcmp.ge.f32.partialorder %v2046_v49, 0.0  ;;  %v2110_v25 = vmul.f32 0.2, %v2046_v49  ;;  %v1692_v36 = vadd.f32 %v1654_v44, %v1536_v1  ;;  %v1501_v13 = vpop.f32.mrf.mxu1 }
 0x2c5   : > { %v1537_v45 = vadd.f32 %v1501_v13, %v3892_v10 }
 0x2c6   : > { %v2142_v50 = vsel %vm2078_vm5, %v2046_v49, %v2110_v25  ;;  %v1852_v22 = vadd.f32 %v1814_v59, %v1692_v36 }
 0x2c7   : > { %2175 = vst.msk [vmem:[%s3931_s30 + $0xe0] sm:$0xff] %vm2146_vm4, %v2142_v50  ;;  %v1976_v54 = vpop.f32.mrf.mxu0 }
 0x2c8   : > { %v2011_v18 = vadd.f32 %v1973_v48, %v1852_v22 }
 0x2ca   : > { %v2047_v33 = vadd.f32 %v3915_v16, %v2011_v18 }
 0x2cb   : > { %v1657_v6 = vpop.f32.mrf.mxu2  ;;  %v1817_v12 = vpop.f32.mrf.mxu3 }
 0x2cc   : > { %vm2079_vm0 = vcmp.ge.f32.partialorder %v2047_v33, 0.0  ;;  %v2111_v11 = vmul.f32 0.2, %v2047_v33  ;;  %v1693_v24 = vadd.f32 %v1657_v6, %v1537_v45  ;;  %v1504_v60 = vpop.f32.mrf.mxu1 }
 0x2cd   : > { %v1538_v47 = vadd.f32 %v1504_v60, %v3903_v51 }
 0x2ce   : > { %v2143_v28 = vsel %vm2079_vm0, %v2047_v33, %v2111_v11  ;;  %v1853_v2 = vadd.f32 %v1817_v12, %v1693_v24 }
 0x2cf   : > { %2176 = vst.msk [vmem:[%s3931_s30 + $0xe8] sm:$0xff] %vm2146_vm4, %v2143_v28  ;;  %v1979_v57 = vpop.f32.mrf.mxu0 }
 0x2d0   : > { %v2012_v8 = vadd.f32 %v1976_v54, %v1853_v2 }
 0x2d2   : > { %v2048_v10 = vadd.f32 %v3915_v16, %v2012_v8 }
 0x2d3   : > { %v1660_v35 = vpop.f32.mrf.mxu2  ;;  %v1820_v34 = vpop.f32.mrf.mxu3 }
 0x2d4   : > { %vm2080_vm1 = vcmp.ge.f32.partialorder %v2048_v10, 0.0  ;;  %v2112_v27 = vmul.f32 0.2, %v2048_v10  ;;  %v1694_v32 = vadd.f32 %v1660_v35, %v1538_v47 }
 0x2d6   : > { %v2144_v53 = vsel %vm2080_vm1, %v2048_v10, %v2112_v27  ;;  %v1854_v52 = vadd.f32 %v1820_v34, %v1694_v32 }
 0x2d7   : > { %2177 = vst.msk [vmem:[%s3931_s30 + $0xf0] sm:$0xff] %vm2146_vm4, %v2144_v53 }
 0x2d8   : > { %v2013_v14 = vadd.f32 %v1979_v57, %v1854_v52 }
 0x2da   : > { %v2049_v62 = vadd.f32 %v3915_v16, %v2013_v14 }
 0x2dc   : > { %vm2081_vm2 = vcmp.ge.f32.partialorder %v2049_v62, 0.0  ;;  %v2113_v3 = vmul.f32 0.2, %v2049_v62 }
 0x2de   : > { %v2145_v43 = vsel %vm2081_vm2, %v2049_v62, %v2113_v3 }
 0x2df   : > { %2178 = vst.msk [vmem:[%s3931_s30 + $0xf8] sm:$0xff] %vm2146_vm4, %v2145_v43 }
 0x2e0 PF: > { %s13_s14 = sadd.s32 1, %s2701_s14   ;;  %s4398_s12 = smov %s2697_s13 }
 0x2e1   : > { %p10_p5 = scmp.ge.s32.totalorder %s13_s14, 4   ;;  %s4399_s13 = smov %s4401_s15 }
 0x2e3   :  { %12 = sbr.rel (!%p10_p5) target bundleno = 2 (0x2), region = 76 }

</bundles_post_ra>
